<compile_context>
chip_gen: v7x
topology: tpu7x:2x2x1
jax: 0.10.0
libtpu: 0.0.40
codegen_flags: <defaults>
</compile_context>

<pallas_src>
import functools
import math

import numpy as np
import jax
import jax.numpy as jnp
from jax import lax
from jax.experimental import pallas as pl
from jax.experimental.pallas import tpu as pltpu


# ----------------------------- packing layout -----------------------------

_WE_FIELDS = ["in_w", "out_w", "g1_wy", "g1_wx", "g1_ug",
              "ff_w1", "g2_wy", "g2_wx", "g2_ug"]
_VEC_FIELDS = ["ln1_g", "ln1_b", "in_b", "out_b", "g1_b",
               "ln2_g", "ln2_b", "ff_b1", "ff_b2", "g2_b"]

_LANE = 128


def _pad_lanes(w):
    return ((w + _LANE - 1) // _LANE) * _LANE


def _field_widths(E, F):
    we_w = {"in_w": 3 * E, "out_w": E, "g1_wy": 3 * E, "g1_wx": 2 * E, "g1_ug": E,
            "ff_w1": F, "g2_wy": 3 * E, "g2_wx": 2 * E, "g2_ug": E}
    vec_w = {"ln1_g": E, "ln1_b": E, "in_b": 3 * E, "out_b": E, "g1_b": E,
             "ln2_g": E, "ln2_b": E, "ff_b1": F, "ff_b2": E, "g2_b": E}
    return we_w, vec_w


def _offsets(fields, widths):
    """128-lane-aligned field offsets inside a packed slab."""
    offs, o = {}, 0
    for f in fields:
        offs[f] = o
        o += _pad_lanes(widths[f])
    return offs, o


def _pack_slab(tensors, fields, widths, dtype):
    """Concatenate fields along lanes, zero-padding each field to a 128-lane boundary."""
    parts = []
    for f in fields:
        m = tensors[f].astype(dtype)
        pad = _pad_lanes(widths[f]) - widths[f]
        if pad:
            m = jnp.concatenate([m, jnp.zeros(m.shape[:-1] + (pad,), dtype)], axis=-1)
        parts.append(m)
    return jnp.concatenate(parts, axis=-1)


def pack_params(params, *, E, F, H):
    """Merge GRU-gate matmuls, fold the query scale, pack per-layer params into 3 slabs.

    Weight slabs are bf16 (MXU-native, half the DMA bytes); bias/gain slab stays f32
    (VPU path, and v5e has no bf16 VPU).
    """
    scale = 1.0 / math.sqrt(E // H)
    inw = params["in_w"].at[:, :, :E].multiply(scale)   # fold 1/sqrt(hd) into Q columns
    inb = params["in_b"].at[:, :, :E].multiply(scale)
    g1, g2 = params["g1_w"], params["g2_w"]
    mats = {
        "in_w": inw,
        "out_w": params["out_w"],
        "g1_wy": jnp.concatenate([g1[:, 0], g1[:, 2], g1[:, 4]], axis=-1),
        "g1_wx": jnp.concatenate([g1[:, 1], g1[:, 3]], axis=-1),
        "g1_ug": g1[:, 5],
        "ff_w1": params["ff_w1"],
        "g2_wy": jnp.concatenate([g2[:, 0], g2[:, 2], g2[:, 4]], axis=-1),
        "g2_wx": jnp.concatenate([g2[:, 1], g2[:, 3]], axis=-1),
        "g2_ug": g2[:, 5],
    }
    vecs = {
        "ln1_g": params["ln1_g"], "ln1_b": params["ln1_b"], "in_b": inb,
        "out_b": params["out_b"], "g1_b": params["g1_b"],
        "ln2_g": params["ln2_g"], "ln2_b": params["ln2_b"],
        "ff_b1": params["ff_b1"], "ff_b2": params["ff_b2"], "g2_b": params["g2_b"],
    }
    we_w, vec_w = _field_widths(E, F)
    w_e = _pack_slab(mats, _WE_FIELDS, we_w, jnp.bfloat16)   # (depth, E, sum 128-padded)
    vec = _pack_slab(vecs, _VEC_FIELDS, vec_w, jnp.float32)  # (depth, 1, sum 128-padded)
    w_f = params["ff_w2"].astype(jnp.bfloat16)               # (depth, F, E)
    return {"w_e": w_e, "w_f": w_f, "vec": vec}


# ----------------------------- kernel helpers -----------------------------

def _dot(a, b):
    """bf16 MXU matmul with f32 accumulation (b is already bf16 from the weight slab)."""
    return jnp.dot(a.astype(jnp.bfloat16), b, preferred_element_type=jnp.float32)


def _layernorm(x, g, b, eps=1e-5):
    mu = jnp.mean(x, axis=-1, keepdims=True)
    var = jnp.mean((x - mu) ** 2, axis=-1, keepdims=True)
    return (x - mu) * lax.rsqrt(var + eps) * g + b


def _gru_gate(x, y, wy, wx, ug, bz, E):
    # wy = [Wr|Wz|Wh] (E,3E) applied to y; wx = [Ur|Uz] (E,2E) applied to x; ug for (r*x).
    yw = _dot(y, wy)                    # (R, 3E) f32
    xw = _dot(x, wx)                    # (R, 2E) f32
    r = jax.nn.sigmoid(yw[:, 0:E] + xw[:, 0:E])
    z = jax.nn.sigmoid(yw[:, E:2 * E] + xw[:, E:2 * E] + bz)
    h = jnp.tanh(yw[:, 2 * E:3 * E] + _dot(r * x, ug))
    return (1.0 - z) * x + z * h


# ------------------------------ the kernel --------------------------------
# grid = (row_blocks,): each grid step handles BB whole batches (BB*S rows).  All layers are
# unrolled inside the step (depth is small); every layer's weights are VMEM-resident and
# sliced lazily from the packed slabs at 128-lane-aligned offsets.

def _encoder_kernel(x_ref, mask_ref, we_ref, wf_ref, vec_ref, out_ref,
                    *, BB, S, E, F, H, depth):
    hd = E // H
    R = BB * S
    we_w, vec_w = _field_widths(E, F)
    we_off, _ = _offsets(_WE_FIELDS, we_w)
    vec_off, _ = _offsets(_VEC_FIELDS, vec_w)

    x = x_ref[...]                                       # (R, E) f32
    # Hoisted mask broadcast (JAX does not CSE broadcast_in_dim inside the loops below).
    mask_b = jnp.broadcast_to(mask_ref[...][None, :, :], (BB, S, S))

    # depth small & static -> fully unrolled (use lax.fori_loop + dynamic ref index for deep stacks)
    for l in range(depth):
        def W(name, _l=l):                               # (E, w) bf16, lane-aligned ref slice
            o = we_off[name]
            return we_ref[_l, :, o:o + we_w[name]]

        def V(name, _l=l):                               # (1, w) f32, lane-aligned ref slice
            o = vec_off[name]
            return vec_ref[_l, :, o:o + vec_w[name]]

        # ----------------- self-attention block -----------------
        x2 = _layernorm(x, V("ln1_g"), V("ln1_b"))
        qkv = _dot(x2, W("in_w")) + V("in_b")            # (R, 3E) f32; Q pre-scaled
        heads = []
        for h in range(H):                               # per-head loop, batched over BB batches
            qh = qkv[:, h * hd:(h + 1) * hd].reshape(BB, S, hd).astype(jnp.bfloat16)
            kh = qkv[:, E + h * hd:E + (h + 1) * hd].reshape(BB, S, hd).astype(jnp.bfloat16)
            vh = qkv[:, 2 * E + h * hd:2 * E + (h + 1) * hd].reshape(BB, S, hd).astype(jnp.bfloat16)
            sc = lax.dot_general(qh, kh, (((2,), (2,)), ((0,), (0,))),
                                 preferred_element_type=jnp.float32) + mask_b
            sc = sc - jnp.max(sc, axis=-1, keepdims=True)
            p = jnp.exp(sc)                              # unnormalized probs (BB, S, S) f32
            l_sum = jnp.sum(p, axis=-1, keepdims=True)   # (BB, S, 1)
            ah = lax.dot_general(p.astype(jnp.bfloat16), vh, (((2,), (1,)), ((0,), (0,))),
                                 preferred_element_type=jnp.float32)
            # normalize the (S, hd) output instead of the (S, S) probability matrix
            ah = ah * pl.reciprocal(l_sum, approx=True)
            heads.append(ah.reshape(R, hd))
        attn = jnp.concatenate(heads, axis=-1)           # (R, E), register-resident
        a = _dot(attn, W("out_w")) + V("out_b")
        y = jnp.maximum(a, 0.0)          # relu(dropout1(src2)); dropout == identity (eval)
        x = _gru_gate(x, y, W("g1_wy"), W("g1_wx"), W("g1_ug"), V("g1_b"), E)

        # ----------------- feed-forward block -----------------
        x2 = _layernorm(x, V("ln2_g"), V("ln2_b"))
        f = jnp.maximum(_dot(x2, W("ff_w1")) + V("ff_b1"), 0.0)
        f = _dot(f, wf_ref[l]) + V("ff_b2")
        y = jnp.maximum(f, 0.0)          # relu(dropout2(src2)); dropout == identity (eval)
        x = _gru_gate(x, y, W("g2_wy"), W("g2_wx"), W("g2_ug"), V("g2_b"), E)

    out_ref[...] = x


def transformer_encoder_pallas(x_bse, mask, packed, *, B, S, E, F, H, depth,
                               num_row_blocks=1):
    """num_row_blocks=1 on v5e/v6e (single TensorCore); use 2 on v7x to feed both cores."""
    assert E % H == 0
    N = B * S
    assert B % num_row_blocks == 0
    BB = B // num_row_blocks
    R = BB * S

    x2d = x_bse.reshape(N, E).astype(jnp.float32)
    mask = mask.astype(jnp.float32)
    we, wf, vec = packed["w_e"], packed["w_f"], packed["vec"]
    kernel = functools.partial(_encoder_kernel, BB=BB, S=S, E=E, F=F, H=H, depth=depth)

    return pl.pallas_call(
        kernel,
        out_shape=jax.ShapeDtypeStruct((N, E), jnp.float32),
        grid_spec=pltpu.PrefetchScalarGridSpec(
            num_scalar_prefetch=0,
            grid=(num_row_blocks,),
            in_specs=[pl.BlockSpec((R, E), lambda bb: (bb, 0)),
                      pl.BlockSpec((S, S), lambda bb: (0, 0)),
                      pl.BlockSpec(we.shape, lambda bb: (0, 0, 0)),
                      pl.BlockSpec(wf.shape, lambda bb: (0, 0, 0)),
                      pl.BlockSpec(vec.shape, lambda bb: (0, 0, 0))],
            out_specs=pl.BlockSpec((R, E), lambda bb: (bb, 0))),
        compiler_params=pltpu.CompilerParams(
            dimension_semantics=("parallel",)),
    )(x2d, mask, we, wf, vec)


# --------------------------- glue (plain JAX) -----------------------------

def make_pos_encoding(max_len, E):
    position = np.arange(max_len, dtype=np.float32)[:, None]
    div_term = np.exp(np.arange(0, E, 2, dtype=np.float32) * (-math.log(10000.0) / E))
    pe = np.zeros((max_len, E), dtype=np.float32)
    pe[:, 0::2] = np.sin(position * div_term)
    pe[:, 1::2] = np.cos(position * div_term)
    return jnp.asarray(pe[:, None, :])          # (max_len, 1, E), like torch buffer


def init_params(key, depth, E, F):
    ks = iter(jax.random.split(key, 16))
    w = lambda k, shape, s=0.08: (s * jax.random.normal(k, shape)).astype(jnp.float32)
    p = {}
    p["ln1_g"] = 1.0 + w(next(ks), (depth, 1, E), 0.05)
    p["ln1_b"] = w(next(ks), (depth, 1, E), 0.05)
    p["in_w"] = w(next(ks), (depth, E, 3 * E))
    p["in_b"] = w(next(ks), (depth, 1, 3 * E), 0.02)
    p["out_w"] = w(next(ks), (depth, E, E))
    p["out_b"] = w(next(ks), (depth, 1, E), 0.02)
    p["g1_w"] = w(next(ks), (depth, 6, E, E))
    p["g1_b"] = -2.0 + w(next(ks), (depth, 1, E), 0.05)
    p["ln2_g"] = 1.0 + w(next(ks), (depth, 1, E), 0.05)
    p["ln2_b"] = w(next(ks), (depth, 1, E), 0.05)
    p["ff_w1"] = w(next(ks), (depth, E, F))
    p["ff_b1"] = w(next(ks), (depth, 1, F), 0.02)
    p["ff_w2"] = w(next(ks), (depth, F, E))
    p["ff_b2"] = w(next(ks), (depth, 1, E), 0.02)
    p["g2_w"] = w(next(ks), (depth, 6, E, E))
    p["g2_b"] = -2.0 + w(next(ks), (depth, 1, E), 0.05)
    return p


def forward(tokens, src_msk, emb_table, pe, packed, *, E, F, H, depth):
    B, S = tokens.shape
    x = emb_table[tokens] * np.sqrt(E)          # Embedding: lookup * sqrt(ninp)   (B, S, E)
    x = x + pe[:B]                              # PositionalEncoding: pe[:x.size(0)] (quirk kept)
    # dropout -> identity (eval); torch then does transpose(0,1) to (S, B, E);
    # our kernel consumes the equivalent batch-major 2D view of the same tokens.
    y2d = transformer_encoder_pallas(x, src_msk, packed, B=B, S=S, E=E, F=F, H=H, depth=depth)
    return y2d.reshape(B, S, E).transpose(1, 0, 2)     # (S, B, E) like torch enc_output


def reference_forward(tokens, src_msk, emb_table, pe, params, *, E, H, depth):
    B, S = tokens.shape
    hd = E // H
    scale = 1.0 / math.sqrt(hd)
    x = emb_table[tokens] * np.sqrt(E) + pe[:B]

    def ln(x, g, b):
        mu = x.mean(-1, keepdims=True)
        var = ((x - mu) ** 2).mean(-1, keepdims=True)
        return (x - mu) / jnp.sqrt(var + 1e-5) * g + b

    def gru(x, y, gw, bz):
        r = jax.nn.sigmoid(y @ gw[0] + x @ gw[1])
        z = jax.nn.sigmoid(y @ gw[2] + x @ gw[3] + bz)
        h = jnp.tanh(y @ gw[4] + (r * x) @ gw[5])
        return (1 - z) * x + z * h

    for l in range(depth):
        g = lambda name: params[name][l]
        x2 = ln(x, g("ln1_g"), g("ln1_b"))
        qkv = x2 @ g("in_w") + g("in_b")
        q, k, v = qkv[..., :E] * scale, qkv[..., E:2 * E], qkv[..., 2 * E:]
        q = q.reshape(B, S, H, hd); k = k.reshape(B, S, H, hd); v = v.reshape(B, S, H, hd)
        sc = jnp.einsum('bqhd,bkhd->bhqk', q, k) + src_msk
        p = jax.nn.softmax(sc, axis=-1)
        a = jnp.einsum('bhqk,bkhd->bqhd', p, v).reshape(B, S, E)
        a = a @ g("out_w") + g("out_b")
        x = gru(x, jax.nn.relu(a), g("g1_w"), g("g1_b"))
        x2 = ln(x, g("ln2_g"), g("ln2_b"))
        f = jax.nn.relu(x2 @ g("ff_w1") + g("ff_b1")) @ g("ff_w2") + g("ff_b2")
        x = gru(x, jax.nn.relu(f), g("g2_w"), g("g2_b"))
    return x.transpose(1, 0, 2)


if __name__ == "__main__":
    vocab_size, E, H, F, depth = 50, 32, 4, 64, 2
    B, S, max_len = 2, 8, 64

    key = jax.random.PRNGKey(0)
    k_tok, k_emb, k_par = jax.random.split(key, 3)

    tokens = jax.random.randint(k_tok, (B, S), 1, vocab_size)            # int32 token ids
    emb_table = 0.1 * jax.random.normal(k_emb, (vocab_size, E), dtype=jnp.float32)
    emb_table = emb_table.at[0].set(0.0)                                  # padding_idx=0
    pe = make_pos_encoding(max_len, E)
    params = init_params(k_par, depth, E, F)
    packed = pack_params(params, E=E, F=F, H=H)
    src_msk = jnp.zeros((S, S), dtype=jnp.float32)                        # additive attn mask

    out = forward(tokens, src_msk, emb_table, pe, packed, E=E, F=F, H=H, depth=depth)
    out = jax.block_until_ready(out)
    assert out.shape == (S, B, E)

    ref = reference_forward(tokens, src_msk, emb_table, pe, params, E=E, H=H, depth=depth)
    diff = float(np.max(np.abs(np.asarray(out) - np.asarray(ref))))
    # bf16 matmul operands (f32 accumulation) + approx softmax reciprocal vs a pure-f32
    # reference: allow a slightly looser tolerance than an all-f32 kernel would need.
    if not np.allclose(np.asarray(out), np.asarray(ref), atol=5e-2, rtol=5e-2):
        raise AssertionError(f"kernel vs reference mismatch, max abs diff = {diff}")

    print("KERNEL_OK")
</pallas_src>

<mosaic_0001>
module attributes {stable_mosaic.version = 11 : i64} {
  func.func @_encoder_kernel(%arg0: i32, %arg1: memref<16x32xf32, #tpu.memory_space<vmem>>, %arg2: memref<8x8xf32, #tpu.memory_space<vmem>>, %arg3: memref<2x32x1152xbf16, #tpu.memory_space<vmem>>, %arg4: memref<2x64x32xbf16, #tpu.memory_space<vmem>>, %arg5: memref<2x1x1280xf32, #tpu.memory_space<vmem>>, %arg6: memref<16x32xf32, #tpu.memory_space<vmem>>) attributes {dimension_semantics = [#tpu.dimension_semantics<parallel>], iteration_bounds = array<i64: 1>, scalar_prefetch = 0 : i64, scratch_operands = 0 : i64, tpu.core_type = #tpu.core_type<tc>, window_params = [{transform_indices = @transform_0, window_bounds = array<i64: 16, 32>}, {pipeline_mode = #tpu.pipeline_mode<synchronous>, transform_indices = @transform_1, window_bounds = array<i64: 8, 8>}, {pipeline_mode = #tpu.pipeline_mode<synchronous>, transform_indices = @transform_2, window_bounds = array<i64: 2, 32, 1152>}, {pipeline_mode = #tpu.pipeline_mode<synchronous>, transform_indices = @transform_3, window_bounds = array<i64: 2, 64, 32>}, {pipeline_mode = #tpu.pipeline_mode<synchronous>, transform_indices = @transform_4, window_bounds = array<i64: 2, 1, 1280>}, {transform_indices = @transform_5, window_bounds = array<i64: 16, 32>}]} {
    %c0 = arith.constant 0 : index
    %c0_0 = arith.constant 0 : index
    %0 = vector.load %arg1[%c0, %c0_0] : memref<16x32xf32, #tpu.memory_space<vmem>>, vector<16x32xf32>
    %c0_1 = arith.constant 0 : index
    %c0_2 = arith.constant 0 : index
    %1 = vector.load %arg2[%c0_1, %c0_2] : memref<8x8xf32, #tpu.memory_space<vmem>>, vector<8x8xf32>
    %2 = vector.shape_cast %1 : vector<8x8xf32> to vector<1x8x8xf32>
    %3 = vector.shape_cast %2 : vector<1x8x8xf32> to vector<1x8x8xf32>
    %4 = vector.broadcast %3 : vector<1x8x8xf32> to vector<2x8x8xf32>
    %c0_3 = arith.constant 0 : index
    %c0_4 = arith.constant 0 : index
    %c0_5 = arith.constant 0 : index
    %5 = vector.load %arg5[%c0_3, %c0_4, %c0_5] : memref<2x1x1280xf32, #tpu.memory_space<vmem>>, vector<1x1x32xf32>
    %6 = vector.shape_cast %5 : vector<1x1x32xf32> to vector<1x32xf32>
    %c0_6 = arith.constant 0 : index
    %c0_7 = arith.constant 0 : index
    %c128 = arith.constant 128 : index
    %7 = vector.load %arg5[%c0_6, %c0_7, %c128] : memref<2x1x1280xf32, #tpu.memory_space<vmem>>, vector<1x1x32xf32>
    %8 = vector.shape_cast %7 : vector<1x1x32xf32> to vector<1x32xf32>
    %cst = arith.constant dense<0.000000e+00> : vector<16xf32>
    %9 = vector.multi_reduction <add>, %0, %cst [1] : vector<16x32xf32> to vector<16xf32>
    %10 = vector.shape_cast %9 : vector<16xf32> to vector<16x1xf32>
    %cst_8 = arith.constant 3.200000e+01 : f32
    %11 = vector.broadcast %cst_8 : f32 to vector<16x1xf32>
    %12 = arith.divf %10, %11 : vector<16x1xf32>
    %13 = vector.broadcast %12 : vector<16x1xf32> to vector<16x32xf32>
    %14 = arith.subf %0, %13 : vector<16x32xf32>
    %15 = arith.mulf %14, %14 : vector<16x32xf32>
    %cst_9 = arith.constant dense<0.000000e+00> : vector<16xf32>
    %16 = vector.multi_reduction <add>, %15, %cst_9 [1] : vector<16x32xf32> to vector<16xf32>
    %17 = vector.shape_cast %16 : vector<16xf32> to vector<16x1xf32>
    %cst_10 = arith.constant 3.200000e+01 : f32
    %18 = vector.broadcast %cst_10 : f32 to vector<16x1xf32>
    %19 = arith.divf %17, %18 : vector<16x1xf32>
    %20 = vector.broadcast %12 : vector<16x1xf32> to vector<16x32xf32>
    %21 = arith.subf %0, %20 : vector<16x32xf32>
    %cst_11 = arith.constant 9.99999974E-6 : f32
    %22 = vector.broadcast %cst_11 : f32 to vector<16x1xf32>
    %23 = arith.addf %19, %22 : vector<16x1xf32>
    %24 = math.rsqrt %23 : vector<16x1xf32>
    %25 = vector.broadcast %24 : vector<16x1xf32> to vector<16x32xf32>
    %26 = arith.mulf %21, %25 : vector<16x32xf32>
    %27 = vector.broadcast %6 : vector<1x32xf32> to vector<16x32xf32>
    %28 = arith.mulf %26, %27 : vector<16x32xf32>
    %29 = vector.broadcast %8 : vector<1x32xf32> to vector<16x32xf32>
    %30 = arith.addf %28, %29 : vector<16x32xf32>
    %c0_12 = arith.constant 0 : index
    %c0_13 = arith.constant 0 : index
    %c0_14 = arith.constant 0 : index
    %31 = vector.load %arg3[%c0_12, %c0_13, %c0_14] : memref<2x32x1152xbf16, #tpu.memory_space<vmem>>, vector<1x32x96xbf16>
    %32 = vector.shape_cast %31 : vector<1x32x96xbf16> to vector<32x96xbf16>
    %33 = arith.truncf %30 : vector<16x32xf32> to vector<16x32xbf16>
    %cst_15 = arith.constant dense<0.000000e+00> : vector<16x96xf32>
    %34 = tpu.matmul %33, %32, %cst_15 {dimension_numbers = #tpu.dot_dimension_numbers<[1], [0], [0], [1], [0, 0, 1, 1], [], []>} : vector<16x32xbf16>, vector<32x96xbf16>, vector<16x96xf32> -> vector<16x96xf32>
    %c0_16 = arith.constant 0 : index
    %c0_17 = arith.constant 0 : index
    %c256 = arith.constant 256 : index
    %35 = vector.load %arg5[%c0_16, %c0_17, %c256] : memref<2x1x1280xf32, #tpu.memory_space<vmem>>, vector<1x1x96xf32>
    %36 = vector.shape_cast %35 : vector<1x1x96xf32> to vector<1x96xf32>
    %37 = vector.broadcast %36 : vector<1x96xf32> to vector<16x96xf32>
    %38 = arith.addf %34, %37 : vector<16x96xf32>
    %39 = vector.extract_strided_slice %38 {offsets = [0, 0], sizes = [16, 8], strides = [1, 1]} : vector<16x96xf32> to vector<16x8xf32>
    %40 = vector.shape_cast %39 : vector<16x8xf32> to vector<2x8x8xf32>
    %41 = arith.truncf %40 : vector<2x8x8xf32> to vector<2x8x8xbf16>
    %42 = vector.extract_strided_slice %38 {offsets = [0, 32], sizes = [16, 8], strides = [1, 1]} : vector<16x96xf32> to vector<16x8xf32>
    %43 = vector.shape_cast %42 : vector<16x8xf32> to vector<2x8x8xf32>
    %44 = arith.truncf %43 : vector<2x8x8xf32> to vector<2x8x8xbf16>
    %45 = vector.extract_strided_slice %38 {offsets = [0, 64], sizes = [16, 8], strides = [1, 1]} : vector<16x96xf32> to vector<16x8xf32>
    %46 = vector.shape_cast %45 : vector<16x8xf32> to vector<2x8x8xf32>
    %47 = arith.truncf %46 : vector<2x8x8xf32> to vector<2x8x8xbf16>
    %cst_18 = arith.constant dense<0.000000e+00> : vector<2x8x8xf32>
    %48 = tpu.matmul %41, %44, %cst_18 {dimension_numbers = #tpu.dot_dimension_numbers<[2], [2], [1], [1], [0, 0, 0, 1, 1, 1], [0], [0]>} : vector<2x8x8xbf16>, vector<2x8x8xbf16>, vector<2x8x8xf32> -> vector<2x8x8xf32>
    %49 = arith.addf %48, %4 : vector<2x8x8xf32>
    %cst_19 = arith.constant dense<0xFF800000> : vector<2x8xf32>
    %50 = vector.multi_reduction <maximumf>, %49, %cst_19 [2] : vector<2x8x8xf32> to vector<2x8xf32>
    %51 = vector.shape_cast %50 : vector<2x8xf32> to vector<2x8x1xf32>
    %52 = vector.broadcast %51 : vector<2x8x1xf32> to vector<2x8x8xf32>
    %53 = arith.subf %49, %52 : vector<2x8x8xf32>
    %54 = math.exp %53 : vector<2x8x8xf32>
    %cst_20 = arith.constant dense<0.000000e+00> : vector<2x8xf32>
    %55 = vector.multi_reduction <add>, %54, %cst_20 [2] : vector<2x8x8xf32> to vector<2x8xf32>
    %56 = vector.shape_cast %55 : vector<2x8xf32> to vector<2x8x1xf32>
    %57 = arith.truncf %54 : vector<2x8x8xf32> to vector<2x8x8xbf16>
    %cst_21 = arith.constant dense<0.000000e+00> : vector<2x8x8xf32>
    %58 = tpu.matmul %57, %47, %cst_21 {dimension_numbers = #tpu.dot_dimension_numbers<[2], [1], [1], [2], [0, 0, 0, 1, 1, 2], [0], [0]>} : vector<2x8x8xbf16>, vector<2x8x8xbf16>, vector<2x8x8xf32> -> vector<2x8x8xf32>
    %59 = tpu.reciprocal %56 {approx = true} : vector<2x8x1xf32> -> vector<2x8x1xf32>
    %60 = vector.broadcast %59 : vector<2x8x1xf32> to vector<2x8x8xf32>
    %61 = arith.mulf %58, %60 : vector<2x8x8xf32>
    %62 = vector.shape_cast %61 : vector<2x8x8xf32> to vector<16x8xf32>
    %63 = vector.extract_strided_slice %38 {offsets = [0, 8], sizes = [16, 8], strides = [1, 1]} : vector<16x96xf32> to vector<16x8xf32>
    %64 = vector.shape_cast %63 : vector<16x8xf32> to vector<2x8x8xf32>
    %65 = arith.truncf %64 : vector<2x8x8xf32> to vector<2x8x8xbf16>
    %66 = vector.extract_strided_slice %38 {offsets = [0, 40], sizes = [16, 8], strides = [1, 1]} : vector<16x96xf32> to vector<16x8xf32>
    %67 = vector.shape_cast %66 : vector<16x8xf32> to vector<2x8x8xf32>
    %68 = arith.truncf %67 : vector<2x8x8xf32> to vector<2x8x8xbf16>
    %69 = vector.extract_strided_slice %38 {offsets = [0, 72], sizes = [16, 8], strides = [1, 1]} : vector<16x96xf32> to vector<16x8xf32>
    %70 = vector.shape_cast %69 : vector<16x8xf32> to vector<2x8x8xf32>
    %71 = arith.truncf %70 : vector<2x8x8xf32> to vector<2x8x8xbf16>
    %cst_22 = arith.constant dense<0.000000e+00> : vector<2x8x8xf32>
    %72 = tpu.matmul %65, %68, %cst_22 {dimension_numbers = #tpu.dot_dimension_numbers<[2], [2], [1], [1], [0, 0, 0, 1, 1, 1], [0], [0]>} : vector<2x8x8xbf16>, vector<2x8x8xbf16>, vector<2x8x8xf32> -> vector<2x8x8xf32>
    %73 = arith.addf %72, %4 : vector<2x8x8xf32>
    %cst_23 = arith.constant dense<0xFF800000> : vector<2x8xf32>
    %74 = vector.multi_reduction <maximumf>, %73, %cst_23 [2] : vector<2x8x8xf32> to vector<2x8xf32>
    %75 = vector.shape_cast %74 : vector<2x8xf32> to vector<2x8x1xf32>
    %76 = vector.broadcast %75 : vector<2x8x1xf32> to vector<2x8x8xf32>
    %77 = arith.subf %73, %76 : vector<2x8x8xf32>
    %78 = math.exp %77 : vector<2x8x8xf32>
    %cst_24 = arith.constant dense<0.000000e+00> : vector<2x8xf32>
    %79 = vector.multi_reduction <add>, %78, %cst_24 [2] : vector<2x8x8xf32> to vector<2x8xf32>
    %80 = vector.shape_cast %79 : vector<2x8xf32> to vector<2x8x1xf32>
    %81 = arith.truncf %78 : vector<2x8x8xf32> to vector<2x8x8xbf16>
    %cst_25 = arith.constant dense<0.000000e+00> : vector<2x8x8xf32>
    %82 = tpu.matmul %81, %71, %cst_25 {dimension_numbers = #tpu.dot_dimension_numbers<[2], [1], [1], [2], [0, 0, 0, 1, 1, 2], [0], [0]>} : vector<2x8x8xbf16>, vector<2x8x8xbf16>, vector<2x8x8xf32> -> vector<2x8x8xf32>
    %83 = tpu.reciprocal %80 {approx = true} : vector<2x8x1xf32> -> vector<2x8x1xf32>
    %84 = vector.broadcast %83 : vector<2x8x1xf32> to vector<2x8x8xf32>
    %85 = arith.mulf %82, %84 : vector<2x8x8xf32>
    %86 = vector.shape_cast %85 : vector<2x8x8xf32> to vector<16x8xf32>
    %87 = vector.extract_strided_slice %38 {offsets = [0, 16], sizes = [16, 8], strides = [1, 1]} : vector<16x96xf32> to vector<16x8xf32>
    %88 = vector.shape_cast %87 : vector<16x8xf32> to vector<2x8x8xf32>
    %89 = arith.truncf %88 : vector<2x8x8xf32> to vector<2x8x8xbf16>
    %90 = vector.extract_strided_slice %38 {offsets = [0, 48], sizes = [16, 8], strides = [1, 1]} : vector<16x96xf32> to vector<16x8xf32>
    %91 = vector.shape_cast %90 : vector<16x8xf32> to vector<2x8x8xf32>
    %92 = arith.truncf %91 : vector<2x8x8xf32> to vector<2x8x8xbf16>
    %93 = vector.extract_strided_slice %38 {offsets = [0, 80], sizes = [16, 8], strides = [1, 1]} : vector<16x96xf32> to vector<16x8xf32>
    %94 = vector.shape_cast %93 : vector<16x8xf32> to vector<2x8x8xf32>
    %95 = arith.truncf %94 : vector<2x8x8xf32> to vector<2x8x8xbf16>
    %cst_26 = arith.constant dense<0.000000e+00> : vector<2x8x8xf32>
    %96 = tpu.matmul %89, %92, %cst_26 {dimension_numbers = #tpu.dot_dimension_numbers<[2], [2], [1], [1], [0, 0, 0, 1, 1, 1], [0], [0]>} : vector<2x8x8xbf16>, vector<2x8x8xbf16>, vector<2x8x8xf32> -> vector<2x8x8xf32>
    %97 = arith.addf %96, %4 : vector<2x8x8xf32>
    %cst_27 = arith.constant dense<0xFF800000> : vector<2x8xf32>
    %98 = vector.multi_reduction <maximumf>, %97, %cst_27 [2] : vector<2x8x8xf32> to vector<2x8xf32>
    %99 = vector.shape_cast %98 : vector<2x8xf32> to vector<2x8x1xf32>
    %100 = vector.broadcast %99 : vector<2x8x1xf32> to vector<2x8x8xf32>
    %101 = arith.subf %97, %100 : vector<2x8x8xf32>
    %102 = math.exp %101 : vector<2x8x8xf32>
    %cst_28 = arith.constant dense<0.000000e+00> : vector<2x8xf32>
    %103 = vector.multi_reduction <add>, %102, %cst_28 [2] : vector<2x8x8xf32> to vector<2x8xf32>
    %104 = vector.shape_cast %103 : vector<2x8xf32> to vector<2x8x1xf32>
    %105 = arith.truncf %102 : vector<2x8x8xf32> to vector<2x8x8xbf16>
    %cst_29 = arith.constant dense<0.000000e+00> : vector<2x8x8xf32>
    %106 = tpu.matmul %105, %95, %cst_29 {dimension_numbers = #tpu.dot_dimension_numbers<[2], [1], [1], [2], [0, 0, 0, 1, 1, 2], [0], [0]>} : vector<2x8x8xbf16>, vector<2x8x8xbf16>, vector<2x8x8xf32> -> vector<2x8x8xf32>
    %107 = tpu.reciprocal %104 {approx = true} : vector<2x8x1xf32> -> vector<2x8x1xf32>
    %108 = vector.broadcast %107 : vector<2x8x1xf32> to vector<2x8x8xf32>
    %109 = arith.mulf %106, %108 : vector<2x8x8xf32>
    %110 = vector.shape_cast %109 : vector<2x8x8xf32> to vector<16x8xf32>
    %111 = vector.extract_strided_slice %38 {offsets = [0, 24], sizes = [16, 8], strides = [1, 1]} : vector<16x96xf32> to vector<16x8xf32>
    %112 = vector.shape_cast %111 : vector<16x8xf32> to vector<2x8x8xf32>
    %113 = arith.truncf %112 : vector<2x8x8xf32> to vector<2x8x8xbf16>
    %114 = vector.extract_strided_slice %38 {offsets = [0, 56], sizes = [16, 8], strides = [1, 1]} : vector<16x96xf32> to vector<16x8xf32>
    %115 = vector.shape_cast %114 : vector<16x8xf32> to vector<2x8x8xf32>
    %116 = arith.truncf %115 : vector<2x8x8xf32> to vector<2x8x8xbf16>
    %117 = vector.extract_strided_slice %38 {offsets = [0, 88], sizes = [16, 8], strides = [1, 1]} : vector<16x96xf32> to vector<16x8xf32>
    %118 = vector.shape_cast %117 : vector<16x8xf32> to vector<2x8x8xf32>
    %119 = arith.truncf %118 : vector<2x8x8xf32> to vector<2x8x8xbf16>
    %cst_30 = arith.constant dense<0.000000e+00> : vector<2x8x8xf32>
    %120 = tpu.matmul %113, %116, %cst_30 {dimension_numbers = #tpu.dot_dimension_numbers<[2], [2], [1], [1], [0, 0, 0, 1, 1, 1], [0], [0]>} : vector<2x8x8xbf16>, vector<2x8x8xbf16>, vector<2x8x8xf32> -> vector<2x8x8xf32>
    %121 = arith.addf %120, %4 : vector<2x8x8xf32>
    %cst_31 = arith.constant dense<0xFF800000> : vector<2x8xf32>
    %122 = vector.multi_reduction <maximumf>, %121, %cst_31 [2] : vector<2x8x8xf32> to vector<2x8xf32>
    %123 = vector.shape_cast %122 : vector<2x8xf32> to vector<2x8x1xf32>
    %124 = vector.broadcast %123 : vector<2x8x1xf32> to vector<2x8x8xf32>
    %125 = arith.subf %121, %124 : vector<2x8x8xf32>
    %126 = math.exp %125 : vector<2x8x8xf32>
    %cst_32 = arith.constant dense<0.000000e+00> : vector<2x8xf32>
    %127 = vector.multi_reduction <add>, %126, %cst_32 [2] : vector<2x8x8xf32> to vector<2x8xf32>
    %128 = vector.shape_cast %127 : vector<2x8xf32> to vector<2x8x1xf32>
    %129 = arith.truncf %126 : vector<2x8x8xf32> to vector<2x8x8xbf16>
    %cst_33 = arith.constant dense<0.000000e+00> : vector<2x8x8xf32>
    %130 = tpu.matmul %129, %119, %cst_33 {dimension_numbers = #tpu.dot_dimension_numbers<[2], [1], [1], [2], [0, 0, 0, 1, 1, 2], [0], [0]>} : vector<2x8x8xbf16>, vector<2x8x8xbf16>, vector<2x8x8xf32> -> vector<2x8x8xf32>
    %131 = tpu.reciprocal %128 {approx = true} : vector<2x8x1xf32> -> vector<2x8x1xf32>
    %132 = vector.broadcast %131 : vector<2x8x1xf32> to vector<2x8x8xf32>
    %133 = arith.mulf %130, %132 : vector<2x8x8xf32>
    %134 = vector.shape_cast %133 : vector<2x8x8xf32> to vector<16x8xf32>
    %135 = tpu.concatenate %62, %86, %110, %134 in 1 : vector<16x8xf32>, vector<16x8xf32>, vector<16x8xf32>, vector<16x8xf32> -> vector<16x32xf32>
    %c0_34 = arith.constant 0 : index
    %c0_35 = arith.constant 0 : index
    %c128_36 = arith.constant 128 : index
    %136 = vector.load %arg3[%c0_34, %c0_35, %c128_36] : memref<2x32x1152xbf16, #tpu.memory_space<vmem>>, vector<1x32x32xbf16>
    %137 = vector.shape_cast %136 : vector<1x32x32xbf16> to vector<32x32xbf16>
    %138 = arith.truncf %135 : vector<16x32xf32> to vector<16x32xbf16>
    %cst_37 = arith.constant dense<0.000000e+00> : vector<16x32xf32>
    %139 = tpu.matmul %138, %137, %cst_37 {dimension_numbers = #tpu.dot_dimension_numbers<[1], [0], [0], [1], [0, 0, 1, 1], [], []>} : vector<16x32xbf16>, vector<32x32xbf16>, vector<16x32xf32> -> vector<16x32xf32>
    %c0_38 = arith.constant 0 : index
    %c0_39 = arith.constant 0 : index
    %c384 = arith.constant 384 : index
    %140 = vector.load %arg5[%c0_38, %c0_39, %c384] : memref<2x1x1280xf32, #tpu.memory_space<vmem>>, vector<1x1x32xf32>
    %141 = vector.shape_cast %140 : vector<1x1x32xf32> to vector<1x32xf32>
    %142 = vector.broadcast %141 : vector<1x32xf32> to vector<16x32xf32>
    %143 = arith.addf %139, %142 : vector<16x32xf32>
    %cst_40 = arith.constant 0.000000e+00 : f32
    %144 = vector.broadcast %cst_40 : f32 to vector<16x32xf32>
    %145 = arith.maximumf %143, %144 : vector<16x32xf32>
    %c0_41 = arith.constant 0 : index
    %c0_42 = arith.constant 0 : index
    %c256_43 = arith.constant 256 : index
    %146 = vector.load %arg3[%c0_41, %c0_42, %c256_43] : memref<2x32x1152xbf16, #tpu.memory_space<vmem>>, vector<1x32x96xbf16>
    %147 = vector.shape_cast %146 : vector<1x32x96xbf16> to vector<32x96xbf16>
    %c0_44 = arith.constant 0 : index
    %c0_45 = arith.constant 0 : index
    %c384_46 = arith.constant 384 : index
    %148 = vector.load %arg3[%c0_44, %c0_45, %c384_46] : memref<2x32x1152xbf16, #tpu.memory_space<vmem>>, vector<1x32x64xbf16>
    %149 = vector.shape_cast %148 : vector<1x32x64xbf16> to vector<32x64xbf16>
    %c0_47 = arith.constant 0 : index
    %c0_48 = arith.constant 0 : index
    %c512 = arith.constant 512 : index
    %150 = vector.load %arg3[%c0_47, %c0_48, %c512] : memref<2x32x1152xbf16, #tpu.memory_space<vmem>>, vector<1x32x32xbf16>
    %151 = vector.shape_cast %150 : vector<1x32x32xbf16> to vector<32x32xbf16>
    %c0_49 = arith.constant 0 : index
    %c0_50 = arith.constant 0 : index
    %c512_51 = arith.constant 512 : index
    %152 = vector.load %arg5[%c0_49, %c0_50, %c512_51] : memref<2x1x1280xf32, #tpu.memory_space<vmem>>, vector<1x1x32xf32>
    %153 = vector.shape_cast %152 : vector<1x1x32xf32> to vector<1x32xf32>
    %154 = arith.truncf %145 : vector<16x32xf32> to vector<16x32xbf16>
    %cst_52 = arith.constant dense<0.000000e+00> : vector<16x96xf32>
    %155 = tpu.matmul %154, %147, %cst_52 {dimension_numbers = #tpu.dot_dimension_numbers<[1], [0], [0], [1], [0, 0, 1, 1], [], []>} : vector<16x32xbf16>, vector<32x96xbf16>, vector<16x96xf32> -> vector<16x96xf32>
    %156 = arith.truncf %0 : vector<16x32xf32> to vector<16x32xbf16>
    %cst_53 = arith.constant dense<0.000000e+00> : vector<16x64xf32>
    %157 = tpu.matmul %156, %149, %cst_53 {dimension_numbers = #tpu.dot_dimension_numbers<[1], [0], [0], [1], [0, 0, 1, 1], [], []>} : vector<16x32xbf16>, vector<32x64xbf16>, vector<16x64xf32> -> vector<16x64xf32>
    %158 = vector.extract_strided_slice %155 {offsets = [0, 0], sizes = [16, 32], strides = [1, 1]} : vector<16x96xf32> to vector<16x32xf32>
    %159 = vector.extract_strided_slice %157 {offsets = [0, 0], sizes = [16, 32], strides = [1, 1]} : vector<16x64xf32> to vector<16x32xf32>
    %160 = arith.addf %158, %159 : vector<16x32xf32>
    %161 = arith.negf %160 : vector<16x32xf32>
    %162 = math.exp %161 : vector<16x32xf32>
    %cst_54 = arith.constant 1.000000e+00 : f32
    %163 = vector.broadcast %cst_54 : f32 to vector<16x32xf32>
    %164 = arith.addf %163, %162 : vector<16x32xf32>
    %165 = arith.divf %163, %164 : vector<16x32xf32>
    %166 = vector.extract_strided_slice %155 {offsets = [0, 32], sizes = [16, 32], strides = [1, 1]} : vector<16x96xf32> to vector<16x32xf32>
    %167 = vector.extract_strided_slice %157 {offsets = [0, 32], sizes = [16, 32], strides = [1, 1]} : vector<16x64xf32> to vector<16x32xf32>
    %168 = arith.addf %166, %167 : vector<16x32xf32>
    %169 = vector.broadcast %153 : vector<1x32xf32> to vector<16x32xf32>
    %170 = arith.addf %168, %169 : vector<16x32xf32>
    %171 = arith.negf %170 : vector<16x32xf32>
    %172 = math.exp %171 : vector<16x32xf32>
    %cst_55 = arith.constant 1.000000e+00 : f32
    %173 = vector.broadcast %cst_55 : f32 to vector<16x32xf32>
    %174 = arith.addf %173, %172 : vector<16x32xf32>
    %175 = arith.divf %173, %174 : vector<16x32xf32>
    %176 = vector.extract_strided_slice %155 {offsets = [0, 64], sizes = [16, 32], strides = [1, 1]} : vector<16x96xf32> to vector<16x32xf32>
    %177 = arith.mulf %165, %0 : vector<16x32xf32>
    %178 = arith.truncf %177 : vector<16x32xf32> to vector<16x32xbf16>
    %cst_56 = arith.constant dense<0.000000e+00> : vector<16x32xf32>
    %179 = tpu.matmul %178, %151, %cst_56 {dimension_numbers = #tpu.dot_dimension_numbers<[1], [0], [0], [1], [0, 0, 1, 1], [], []>} : vector<16x32xbf16>, vector<32x32xbf16>, vector<16x32xf32> -> vector<16x32xf32>
    %180 = arith.addf %176, %179 : vector<16x32xf32>
    %181 = math.tanh %180 : vector<16x32xf32>
    %cst_57 = arith.constant 1.000000e+00 : f32
    %182 = vector.broadcast %cst_57 : f32 to vector<16x32xf32>
    %183 = arith.subf %182, %175 : vector<16x32xf32>
    %184 = arith.mulf %183, %0 : vector<16x32xf32>
    %185 = arith.mulf %175, %181 : vector<16x32xf32>
    %186 = arith.addf %184, %185 : vector<16x32xf32>
    %c0_58 = arith.constant 0 : index
    %c0_59 = arith.constant 0 : index
    %c640 = arith.constant 640 : index
    %187 = vector.load %arg5[%c0_58, %c0_59, %c640] : memref<2x1x1280xf32, #tpu.memory_space<vmem>>, vector<1x1x32xf32>
    %188 = vector.shape_cast %187 : vector<1x1x32xf32> to vector<1x32xf32>
    %c0_60 = arith.constant 0 : index
    %c0_61 = arith.constant 0 : index
    %c768 = arith.constant 768 : index
    %189 = vector.load %arg5[%c0_60, %c0_61, %c768] : memref<2x1x1280xf32, #tpu.memory_space<vmem>>, vector<1x1x32xf32>
    %190 = vector.shape_cast %189 : vector<1x1x32xf32> to vector<1x32xf32>
    %cst_62 = arith.constant dense<0.000000e+00> : vector<16xf32>
    %191 = vector.multi_reduction <add>, %186, %cst_62 [1] : vector<16x32xf32> to vector<16xf32>
    %192 = vector.shape_cast %191 : vector<16xf32> to vector<16x1xf32>
    %cst_63 = arith.constant 3.200000e+01 : f32
    %193 = vector.broadcast %cst_63 : f32 to vector<16x1xf32>
    %194 = arith.divf %192, %193 : vector<16x1xf32>
    %195 = vector.broadcast %194 : vector<16x1xf32> to vector<16x32xf32>
    %196 = arith.subf %186, %195 : vector<16x32xf32>
    %197 = arith.mulf %196, %196 : vector<16x32xf32>
    %cst_64 = arith.constant dense<0.000000e+00> : vector<16xf32>
    %198 = vector.multi_reduction <add>, %197, %cst_64 [1] : vector<16x32xf32> to vector<16xf32>
    %199 = vector.shape_cast %198 : vector<16xf32> to vector<16x1xf32>
    %cst_65 = arith.constant 3.200000e+01 : f32
    %200 = vector.broadcast %cst_65 : f32 to vector<16x1xf32>
    %201 = arith.divf %199, %200 : vector<16x1xf32>
    %202 = vector.broadcast %194 : vector<16x1xf32> to vector<16x32xf32>
    %203 = arith.subf %186, %202 : vector<16x32xf32>
    %cst_66 = arith.constant 9.99999974E-6 : f32
    %204 = vector.broadcast %cst_66 : f32 to vector<16x1xf32>
    %205 = arith.addf %201, %204 : vector<16x1xf32>
    %206 = math.rsqrt %205 : vector<16x1xf32>
    %207 = vector.broadcast %206 : vector<16x1xf32> to vector<16x32xf32>
    %208 = arith.mulf %203, %207 : vector<16x32xf32>
    %209 = vector.broadcast %188 : vector<1x32xf32> to vector<16x32xf32>
    %210 = arith.mulf %208, %209 : vector<16x32xf32>
    %211 = vector.broadcast %190 : vector<1x32xf32> to vector<16x32xf32>
    %212 = arith.addf %210, %211 : vector<16x32xf32>
    %c0_67 = arith.constant 0 : index
    %c0_68 = arith.constant 0 : index
    %c640_69 = arith.constant 640 : index
    %213 = vector.load %arg3[%c0_67, %c0_68, %c640_69] : memref<2x32x1152xbf16, #tpu.memory_space<vmem>>, vector<1x32x64xbf16>
    %214 = vector.shape_cast %213 : vector<1x32x64xbf16> to vector<32x64xbf16>
    %215 = arith.truncf %212 : vector<16x32xf32> to vector<16x32xbf16>
    %cst_70 = arith.constant dense<0.000000e+00> : vector<16x64xf32>
    %216 = tpu.matmul %215, %214, %cst_70 {dimension_numbers = #tpu.dot_dimension_numbers<[1], [0], [0], [1], [0, 0, 1, 1], [], []>} : vector<16x32xbf16>, vector<32x64xbf16>, vector<16x64xf32> -> vector<16x64xf32>
    %c0_71 = arith.constant 0 : index
    %c0_72 = arith.constant 0 : index
    %c896 = arith.constant 896 : index
    %217 = vector.load %arg5[%c0_71, %c0_72, %c896] : memref<2x1x1280xf32, #tpu.memory_space<vmem>>, vector<1x1x64xf32>
    %218 = vector.shape_cast %217 : vector<1x1x64xf32> to vector<1x64xf32>
    %219 = vector.broadcast %218 : vector<1x64xf32> to vector<16x64xf32>
    %220 = arith.addf %216, %219 : vector<16x64xf32>
    %cst_73 = arith.constant 0.000000e+00 : f32
    %221 = vector.broadcast %cst_73 : f32 to vector<16x64xf32>
    %222 = arith.maximumf %220, %221 : vector<16x64xf32>
    %c0_74 = arith.constant 0 : index
    %c0_75 = arith.constant 0 : index
    %c0_76 = arith.constant 0 : index
    %223 = vector.load %arg4[%c0_74, %c0_75, %c0_76] : memref<2x64x32xbf16, #tpu.memory_space<vmem>>, vector<1x64x32xbf16>
    %224 = vector.shape_cast %223 : vector<1x64x32xbf16> to vector<64x32xbf16>
    %225 = arith.truncf %222 : vector<16x64xf32> to vector<16x64xbf16>
    %cst_77 = arith.constant dense<0.000000e+00> : vector<16x32xf32>
    %226 = tpu.matmul %225, %224, %cst_77 {dimension_numbers = #tpu.dot_dimension_numbers<[1], [0], [0], [1], [0, 0, 1, 1], [], []>} : vector<16x64xbf16>, vector<64x32xbf16>, vector<16x32xf32> -> vector<16x32xf32>
    %c0_78 = arith.constant 0 : index
    %c0_79 = arith.constant 0 : index
    %c1024 = arith.constant 1024 : index
    %227 = vector.load %arg5[%c0_78, %c0_79, %c1024] : memref<2x1x1280xf32, #tpu.memory_space<vmem>>, vector<1x1x32xf32>
    %228 = vector.shape_cast %227 : vector<1x1x32xf32> to vector<1x32xf32>
    %229 = vector.broadcast %228 : vector<1x32xf32> to vector<16x32xf32>
    %230 = arith.addf %226, %229 : vector<16x32xf32>
    %cst_80 = arith.constant 0.000000e+00 : f32
    %231 = vector.broadcast %cst_80 : f32 to vector<16x32xf32>
    %232 = arith.maximumf %230, %231 : vector<16x32xf32>
    %c0_81 = arith.constant 0 : index
    %c0_82 = arith.constant 0 : index
    %c768_83 = arith.constant 768 : index
    %233 = vector.load %arg3[%c0_81, %c0_82, %c768_83] : memref<2x32x1152xbf16, #tpu.memory_space<vmem>>, vector<1x32x96xbf16>
    %234 = vector.shape_cast %233 : vector<1x32x96xbf16> to vector<32x96xbf16>
    %c0_84 = arith.constant 0 : index
    %c0_85 = arith.constant 0 : index
    %c896_86 = arith.constant 896 : index
    %235 = vector.load %arg3[%c0_84, %c0_85, %c896_86] : memref<2x32x1152xbf16, #tpu.memory_space<vmem>>, vector<1x32x64xbf16>
    %236 = vector.shape_cast %235 : vector<1x32x64xbf16> to vector<32x64xbf16>
    %c0_87 = arith.constant 0 : index
    %c0_88 = arith.constant 0 : index
    %c1024_89 = arith.constant 1024 : index
    %237 = vector.load %arg3[%c0_87, %c0_88, %c1024_89] : memref<2x32x1152xbf16, #tpu.memory_space<vmem>>, vector<1x32x32xbf16>
    %238 = vector.shape_cast %237 : vector<1x32x32xbf16> to vector<32x32xbf16>
    %c0_90 = arith.constant 0 : index
    %c0_91 = arith.constant 0 : index
    %c1152 = arith.constant 1152 : index
    %239 = vector.load %arg5[%c0_90, %c0_91, %c1152] : memref<2x1x1280xf32, #tpu.memory_space<vmem>>, vector<1x1x32xf32>
    %240 = vector.shape_cast %239 : vector<1x1x32xf32> to vector<1x32xf32>
    %241 = arith.truncf %232 : vector<16x32xf32> to vector<16x32xbf16>
    %cst_92 = arith.constant dense<0.000000e+00> : vector<16x96xf32>
    %242 = tpu.matmul %241, %234, %cst_92 {dimension_numbers = #tpu.dot_dimension_numbers<[1], [0], [0], [1], [0, 0, 1, 1], [], []>} : vector<16x32xbf16>, vector<32x96xbf16>, vector<16x96xf32> -> vector<16x96xf32>
    %243 = arith.truncf %186 : vector<16x32xf32> to vector<16x32xbf16>
    %cst_93 = arith.constant dense<0.000000e+00> : vector<16x64xf32>
    %244 = tpu.matmul %243, %236, %cst_93 {dimension_numbers = #tpu.dot_dimension_numbers<[1], [0], [0], [1], [0, 0, 1, 1], [], []>} : vector<16x32xbf16>, vector<32x64xbf16>, vector<16x64xf32> -> vector<16x64xf32>
    %245 = vector.extract_strided_slice %242 {offsets = [0, 0], sizes = [16, 32], strides = [1, 1]} : vector<16x96xf32> to vector<16x32xf32>
    %246 = vector.extract_strided_slice %244 {offsets = [0, 0], sizes = [16, 32], strides = [1, 1]} : vector<16x64xf32> to vector<16x32xf32>
    %247 = arith.addf %245, %246 : vector<16x32xf32>
    %248 = arith.negf %247 : vector<16x32xf32>
    %249 = math.exp %248 : vector<16x32xf32>
    %cst_94 = arith.constant 1.000000e+00 : f32
    %250 = vector.broadcast %cst_94 : f32 to vector<16x32xf32>
    %251 = arith.addf %250, %249 : vector<16x32xf32>
    %252 = arith.divf %250, %251 : vector<16x32xf32>
    %253 = vector.extract_strided_slice %242 {offsets = [0, 32], sizes = [16, 32], strides = [1, 1]} : vector<16x96xf32> to vector<16x32xf32>
    %254 = vector.extract_strided_slice %244 {offsets = [0, 32], sizes = [16, 32], strides = [1, 1]} : vector<16x64xf32> to vector<16x32xf32>
    %255 = arith.addf %253, %254 : vector<16x32xf32>
    %256 = vector.broadcast %240 : vector<1x32xf32> to vector<16x32xf32>
    %257 = arith.addf %255, %256 : vector<16x32xf32>
    %258 = arith.negf %257 : vector<16x32xf32>
    %259 = math.exp %258 : vector<16x32xf32>
    %cst_95 = arith.constant 1.000000e+00 : f32
    %260 = vector.broadcast %cst_95 : f32 to vector<16x32xf32>
    %261 = arith.addf %260, %259 : vector<16x32xf32>
    %262 = arith.divf %260, %261 : vector<16x32xf32>
    %263 = vector.extract_strided_slice %242 {offsets = [0, 64], sizes = [16, 32], strides = [1, 1]} : vector<16x96xf32> to vector<16x32xf32>
    %264 = arith.mulf %252, %186 : vector<16x32xf32>
    %265 = arith.truncf %264 : vector<16x32xf32> to vector<16x32xbf16>
    %cst_96 = arith.constant dense<0.000000e+00> : vector<16x32xf32>
    %266 = tpu.matmul %265, %238, %cst_96 {dimension_numbers = #tpu.dot_dimension_numbers<[1], [0], [0], [1], [0, 0, 1, 1], [], []>} : vector<16x32xbf16>, vector<32x32xbf16>, vector<16x32xf32> -> vector<16x32xf32>
    %267 = arith.addf %263, %266 : vector<16x32xf32>
    %268 = math.tanh %267 : vector<16x32xf32>
    %cst_97 = arith.constant 1.000000e+00 : f32
    %269 = vector.broadcast %cst_97 : f32 to vector<16x32xf32>
    %270 = arith.subf %269, %262 : vector<16x32xf32>
    %271 = arith.mulf %270, %186 : vector<16x32xf32>
    %272 = arith.mulf %262, %268 : vector<16x32xf32>
    %273 = arith.addf %271, %272 : vector<16x32xf32>
    %c1 = arith.constant 1 : index
    %c0_98 = arith.constant 0 : index
    %c0_99 = arith.constant 0 : index
    %274 = vector.load %arg5[%c1, %c0_98, %c0_99] : memref<2x1x1280xf32, #tpu.memory_space<vmem>>, vector<1x1x32xf32>
    %275 = vector.shape_cast %274 : vector<1x1x32xf32> to vector<1x32xf32>
    %c1_100 = arith.constant 1 : index
    %c0_101 = arith.constant 0 : index
    %c128_102 = arith.constant 128 : index
    %276 = vector.load %arg5[%c1_100, %c0_101, %c128_102] : memref<2x1x1280xf32, #tpu.memory_space<vmem>>, vector<1x1x32xf32>
    %277 = vector.shape_cast %276 : vector<1x1x32xf32> to vector<1x32xf32>
    %cst_103 = arith.constant dense<0.000000e+00> : vector<16xf32>
    %278 = vector.multi_reduction <add>, %273, %cst_103 [1] : vector<16x32xf32> to vector<16xf32>
    %279 = vector.shape_cast %278 : vector<16xf32> to vector<16x1xf32>
    %cst_104 = arith.constant 3.200000e+01 : f32
    %280 = vector.broadcast %cst_104 : f32 to vector<16x1xf32>
    %281 = arith.divf %279, %280 : vector<16x1xf32>
    %282 = vector.broadcast %281 : vector<16x1xf32> to vector<16x32xf32>
    %283 = arith.subf %273, %282 : vector<16x32xf32>
    %284 = arith.mulf %283, %283 : vector<16x32xf32>
    %cst_105 = arith.constant dense<0.000000e+00> : vector<16xf32>
    %285 = vector.multi_reduction <add>, %284, %cst_105 [1] : vector<16x32xf32> to vector<16xf32>
    %286 = vector.shape_cast %285 : vector<16xf32> to vector<16x1xf32>
    %cst_106 = arith.constant 3.200000e+01 : f32
    %287 = vector.broadcast %cst_106 : f32 to vector<16x1xf32>
    %288 = arith.divf %286, %287 : vector<16x1xf32>
    %289 = vector.broadcast %281 : vector<16x1xf32> to vector<16x32xf32>
    %290 = arith.subf %273, %289 : vector<16x32xf32>
    %cst_107 = arith.constant 9.99999974E-6 : f32
    %291 = vector.broadcast %cst_107 : f32 to vector<16x1xf32>
    %292 = arith.addf %288, %291 : vector<16x1xf32>
    %293 = math.rsqrt %292 : vector<16x1xf32>
    %294 = vector.broadcast %293 : vector<16x1xf32> to vector<16x32xf32>
    %295 = arith.mulf %290, %294 : vector<16x32xf32>
    %296 = vector.broadcast %275 : vector<1x32xf32> to vector<16x32xf32>
    %297 = arith.mulf %295, %296 : vector<16x32xf32>
    %298 = vector.broadcast %277 : vector<1x32xf32> to vector<16x32xf32>
    %299 = arith.addf %297, %298 : vector<16x32xf32>
    %c1_108 = arith.constant 1 : index
    %c0_109 = arith.constant 0 : index
    %c0_110 = arith.constant 0 : index
    %300 = vector.load %arg3[%c1_108, %c0_109, %c0_110] : memref<2x32x1152xbf16, #tpu.memory_space<vmem>>, vector<1x32x96xbf16>
    %301 = vector.shape_cast %300 : vector<1x32x96xbf16> to vector<32x96xbf16>
    %302 = arith.truncf %299 : vector<16x32xf32> to vector<16x32xbf16>
    %cst_111 = arith.constant dense<0.000000e+00> : vector<16x96xf32>
    %303 = tpu.matmul %302, %301, %cst_111 {dimension_numbers = #tpu.dot_dimension_numbers<[1], [0], [0], [1], [0, 0, 1, 1], [], []>} : vector<16x32xbf16>, vector<32x96xbf16>, vector<16x96xf32> -> vector<16x96xf32>
    %c1_112 = arith.constant 1 : index
    %c0_113 = arith.constant 0 : index
    %c256_114 = arith.constant 256 : index
    %304 = vector.load %arg5[%c1_112, %c0_113, %c256_114] : memref<2x1x1280xf32, #tpu.memory_space<vmem>>, vector<1x1x96xf32>
    %305 = vector.shape_cast %304 : vector<1x1x96xf32> to vector<1x96xf32>
    %306 = vector.broadcast %305 : vector<1x96xf32> to vector<16x96xf32>
    %307 = arith.addf %303, %306 : vector<16x96xf32>
    %308 = vector.extract_strided_slice %307 {offsets = [0, 0], sizes = [16, 8], strides = [1, 1]} : vector<16x96xf32> to vector<16x8xf32>
    %309 = vector.shape_cast %308 : vector<16x8xf32> to vector<2x8x8xf32>
    %310 = arith.truncf %309 : vector<2x8x8xf32> to vector<2x8x8xbf16>
    %311 = vector.extract_strided_slice %307 {offsets = [0, 32], sizes = [16, 8], strides = [1, 1]} : vector<16x96xf32> to vector<16x8xf32>
    %312 = vector.shape_cast %311 : vector<16x8xf32> to vector<2x8x8xf32>
    %313 = arith.truncf %312 : vector<2x8x8xf32> to vector<2x8x8xbf16>
    %314 = vector.extract_strided_slice %307 {offsets = [0, 64], sizes = [16, 8], strides = [1, 1]} : vector<16x96xf32> to vector<16x8xf32>
    %315 = vector.shape_cast %314 : vector<16x8xf32> to vector<2x8x8xf32>
    %316 = arith.truncf %315 : vector<2x8x8xf32> to vector<2x8x8xbf16>
    %cst_115 = arith.constant dense<0.000000e+00> : vector<2x8x8xf32>
    %317 = tpu.matmul %310, %313, %cst_115 {dimension_numbers = #tpu.dot_dimension_numbers<[2], [2], [1], [1], [0, 0, 0, 1, 1, 1], [0], [0]>} : vector<2x8x8xbf16>, vector<2x8x8xbf16>, vector<2x8x8xf32> -> vector<2x8x8xf32>
    %318 = arith.addf %317, %4 : vector<2x8x8xf32>
    %cst_116 = arith.constant dense<0xFF800000> : vector<2x8xf32>
    %319 = vector.multi_reduction <maximumf>, %318, %cst_116 [2] : vector<2x8x8xf32> to vector<2x8xf32>
    %320 = vector.shape_cast %319 : vector<2x8xf32> to vector<2x8x1xf32>
    %321 = vector.broadcast %320 : vector<2x8x1xf32> to vector<2x8x8xf32>
    %322 = arith.subf %318, %321 : vector<2x8x8xf32>
    %323 = math.exp %322 : vector<2x8x8xf32>
    %cst_117 = arith.constant dense<0.000000e+00> : vector<2x8xf32>
    %324 = vector.multi_reduction <add>, %323, %cst_117 [2] : vector<2x8x8xf32> to vector<2x8xf32>
    %325 = vector.shape_cast %324 : vector<2x8xf32> to vector<2x8x1xf32>
    %326 = arith.truncf %323 : vector<2x8x8xf32> to vector<2x8x8xbf16>
    %cst_118 = arith.constant dense<0.000000e+00> : vector<2x8x8xf32>
    %327 = tpu.matmul %326, %316, %cst_118 {dimension_numbers = #tpu.dot_dimension_numbers<[2], [1], [1], [2], [0, 0, 0, 1, 1, 2], [0], [0]>} : vector<2x8x8xbf16>, vector<2x8x8xbf16>, vector<2x8x8xf32> -> vector<2x8x8xf32>
    %328 = tpu.reciprocal %325 {approx = true} : vector<2x8x1xf32> -> vector<2x8x1xf32>
    %329 = vector.broadcast %328 : vector<2x8x1xf32> to vector<2x8x8xf32>
    %330 = arith.mulf %327, %329 : vector<2x8x8xf32>
    %331 = vector.shape_cast %330 : vector<2x8x8xf32> to vector<16x8xf32>
    %332 = vector.extract_strided_slice %307 {offsets = [0, 8], sizes = [16, 8], strides = [1, 1]} : vector<16x96xf32> to vector<16x8xf32>
    %333 = vector.shape_cast %332 : vector<16x8xf32> to vector<2x8x8xf32>
    %334 = arith.truncf %333 : vector<2x8x8xf32> to vector<2x8x8xbf16>
    %335 = vector.extract_strided_slice %307 {offsets = [0, 40], sizes = [16, 8], strides = [1, 1]} : vector<16x96xf32> to vector<16x8xf32>
    %336 = vector.shape_cast %335 : vector<16x8xf32> to vector<2x8x8xf32>
    %337 = arith.truncf %336 : vector<2x8x8xf32> to vector<2x8x8xbf16>
    %338 = vector.extract_strided_slice %307 {offsets = [0, 72], sizes = [16, 8], strides = [1, 1]} : vector<16x96xf32> to vector<16x8xf32>
    %339 = vector.shape_cast %338 : vector<16x8xf32> to vector<2x8x8xf32>
    %340 = arith.truncf %339 : vector<2x8x8xf32> to vector<2x8x8xbf16>
    %cst_119 = arith.constant dense<0.000000e+00> : vector<2x8x8xf32>
    %341 = tpu.matmul %334, %337, %cst_119 {dimension_numbers = #tpu.dot_dimension_numbers<[2], [2], [1], [1], [0, 0, 0, 1, 1, 1], [0], [0]>} : vector<2x8x8xbf16>, vector<2x8x8xbf16>, vector<2x8x8xf32> -> vector<2x8x8xf32>
    %342 = arith.addf %341, %4 : vector<2x8x8xf32>
    %cst_120 = arith.constant dense<0xFF800000> : vector<2x8xf32>
    %343 = vector.multi_reduction <maximumf>, %342, %cst_120 [2] : vector<2x8x8xf32> to vector<2x8xf32>
    %344 = vector.shape_cast %343 : vector<2x8xf32> to vector<2x8x1xf32>
    %345 = vector.broadcast %344 : vector<2x8x1xf32> to vector<2x8x8xf32>
    %346 = arith.subf %342, %345 : vector<2x8x8xf32>
    %347 = math.exp %346 : vector<2x8x8xf32>
    %cst_121 = arith.constant dense<0.000000e+00> : vector<2x8xf32>
    %348 = vector.multi_reduction <add>, %347, %cst_121 [2] : vector<2x8x8xf32> to vector<2x8xf32>
    %349 = vector.shape_cast %348 : vector<2x8xf32> to vector<2x8x1xf32>
    %350 = arith.truncf %347 : vector<2x8x8xf32> to vector<2x8x8xbf16>
    %cst_122 = arith.constant dense<0.000000e+00> : vector<2x8x8xf32>
    %351 = tpu.matmul %350, %340, %cst_122 {dimension_numbers = #tpu.dot_dimension_numbers<[2], [1], [1], [2], [0, 0, 0, 1, 1, 2], [0], [0]>} : vector<2x8x8xbf16>, vector<2x8x8xbf16>, vector<2x8x8xf32> -> vector<2x8x8xf32>
    %352 = tpu.reciprocal %349 {approx = true} : vector<2x8x1xf32> -> vector<2x8x1xf32>
    %353 = vector.broadcast %352 : vector<2x8x1xf32> to vector<2x8x8xf32>
    %354 = arith.mulf %351, %353 : vector<2x8x8xf32>
    %355 = vector.shape_cast %354 : vector<2x8x8xf32> to vector<16x8xf32>
    %356 = vector.extract_strided_slice %307 {offsets = [0, 16], sizes = [16, 8], strides = [1, 1]} : vector<16x96xf32> to vector<16x8xf32>
    %357 = vector.shape_cast %356 : vector<16x8xf32> to vector<2x8x8xf32>
    %358 = arith.truncf %357 : vector<2x8x8xf32> to vector<2x8x8xbf16>
    %359 = vector.extract_strided_slice %307 {offsets = [0, 48], sizes = [16, 8], strides = [1, 1]} : vector<16x96xf32> to vector<16x8xf32>
    %360 = vector.shape_cast %359 : vector<16x8xf32> to vector<2x8x8xf32>
    %361 = arith.truncf %360 : vector<2x8x8xf32> to vector<2x8x8xbf16>
    %362 = vector.extract_strided_slice %307 {offsets = [0, 80], sizes = [16, 8], strides = [1, 1]} : vector<16x96xf32> to vector<16x8xf32>
    %363 = vector.shape_cast %362 : vector<16x8xf32> to vector<2x8x8xf32>
    %364 = arith.truncf %363 : vector<2x8x8xf32> to vector<2x8x8xbf16>
    %cst_123 = arith.constant dense<0.000000e+00> : vector<2x8x8xf32>
    %365 = tpu.matmul %358, %361, %cst_123 {dimension_numbers = #tpu.dot_dimension_numbers<[2], [2], [1], [1], [0, 0, 0, 1, 1, 1], [0], [0]>} : vector<2x8x8xbf16>, vector<2x8x8xbf16>, vector<2x8x8xf32> -> vector<2x8x8xf32>
    %366 = arith.addf %365, %4 : vector<2x8x8xf32>
    %cst_124 = arith.constant dense<0xFF800000> : vector<2x8xf32>
    %367 = vector.multi_reduction <maximumf>, %366, %cst_124 [2] : vector<2x8x8xf32> to vector<2x8xf32>
    %368 = vector.shape_cast %367 : vector<2x8xf32> to vector<2x8x1xf32>
    %369 = vector.broadcast %368 : vector<2x8x1xf32> to vector<2x8x8xf32>
    %370 = arith.subf %366, %369 : vector<2x8x8xf32>
    %371 = math.exp %370 : vector<2x8x8xf32>
    %cst_125 = arith.constant dense<0.000000e+00> : vector<2x8xf32>
    %372 = vector.multi_reduction <add>, %371, %cst_125 [2] : vector<2x8x8xf32> to vector<2x8xf32>
    %373 = vector.shape_cast %372 : vector<2x8xf32> to vector<2x8x1xf32>
    %374 = arith.truncf %371 : vector<2x8x8xf32> to vector<2x8x8xbf16>
    %cst_126 = arith.constant dense<0.000000e+00> : vector<2x8x8xf32>
    %375 = tpu.matmul %374, %364, %cst_126 {dimension_numbers = #tpu.dot_dimension_numbers<[2], [1], [1], [2], [0, 0, 0, 1, 1, 2], [0], [0]>} : vector<2x8x8xbf16>, vector<2x8x8xbf16>, vector<2x8x8xf32> -> vector<2x8x8xf32>
    %376 = tpu.reciprocal %373 {approx = true} : vector<2x8x1xf32> -> vector<2x8x1xf32>
    %377 = vector.broadcast %376 : vector<2x8x1xf32> to vector<2x8x8xf32>
    %378 = arith.mulf %375, %377 : vector<2x8x8xf32>
    %379 = vector.shape_cast %378 : vector<2x8x8xf32> to vector<16x8xf32>
    %380 = vector.extract_strided_slice %307 {offsets = [0, 24], sizes = [16, 8], strides = [1, 1]} : vector<16x96xf32> to vector<16x8xf32>
    %381 = vector.shape_cast %380 : vector<16x8xf32> to vector<2x8x8xf32>
    %382 = arith.truncf %381 : vector<2x8x8xf32> to vector<2x8x8xbf16>
    %383 = vector.extract_strided_slice %307 {offsets = [0, 56], sizes = [16, 8], strides = [1, 1]} : vector<16x96xf32> to vector<16x8xf32>
    %384 = vector.shape_cast %383 : vector<16x8xf32> to vector<2x8x8xf32>
    %385 = arith.truncf %384 : vector<2x8x8xf32> to vector<2x8x8xbf16>
    %386 = vector.extract_strided_slice %307 {offsets = [0, 88], sizes = [16, 8], strides = [1, 1]} : vector<16x96xf32> to vector<16x8xf32>
    %387 = vector.shape_cast %386 : vector<16x8xf32> to vector<2x8x8xf32>
    %388 = arith.truncf %387 : vector<2x8x8xf32> to vector<2x8x8xbf16>
    %cst_127 = arith.constant dense<0.000000e+00> : vector<2x8x8xf32>
    %389 = tpu.matmul %382, %385, %cst_127 {dimension_numbers = #tpu.dot_dimension_numbers<[2], [2], [1], [1], [0, 0, 0, 1, 1, 1], [0], [0]>} : vector<2x8x8xbf16>, vector<2x8x8xbf16>, vector<2x8x8xf32> -> vector<2x8x8xf32>
    %390 = arith.addf %389, %4 : vector<2x8x8xf32>
    %cst_128 = arith.constant dense<0xFF800000> : vector<2x8xf32>
    %391 = vector.multi_reduction <maximumf>, %390, %cst_128 [2] : vector<2x8x8xf32> to vector<2x8xf32>
    %392 = vector.shape_cast %391 : vector<2x8xf32> to vector<2x8x1xf32>
    %393 = vector.broadcast %392 : vector<2x8x1xf32> to vector<2x8x8xf32>
    %394 = arith.subf %390, %393 : vector<2x8x8xf32>
    %395 = math.exp %394 : vector<2x8x8xf32>
    %cst_129 = arith.constant dense<0.000000e+00> : vector<2x8xf32>
    %396 = vector.multi_reduction <add>, %395, %cst_129 [2] : vector<2x8x8xf32> to vector<2x8xf32>
    %397 = vector.shape_cast %396 : vector<2x8xf32> to vector<2x8x1xf32>
    %398 = arith.truncf %395 : vector<2x8x8xf32> to vector<2x8x8xbf16>
    %cst_130 = arith.constant dense<0.000000e+00> : vector<2x8x8xf32>
    %399 = tpu.matmul %398, %388, %cst_130 {dimension_numbers = #tpu.dot_dimension_numbers<[2], [1], [1], [2], [0, 0, 0, 1, 1, 2], [0], [0]>} : vector<2x8x8xbf16>, vector<2x8x8xbf16>, vector<2x8x8xf32> -> vector<2x8x8xf32>
    %400 = tpu.reciprocal %397 {approx = true} : vector<2x8x1xf32> -> vector<2x8x1xf32>
    %401 = vector.broadcast %400 : vector<2x8x1xf32> to vector<2x8x8xf32>
    %402 = arith.mulf %399, %401 : vector<2x8x8xf32>
    %403 = vector.shape_cast %402 : vector<2x8x8xf32> to vector<16x8xf32>
    %404 = tpu.concatenate %331, %355, %379, %403 in 1 : vector<16x8xf32>, vector<16x8xf32>, vector<16x8xf32>, vector<16x8xf32> -> vector<16x32xf32>
    %c1_131 = arith.constant 1 : index
    %c0_132 = arith.constant 0 : index
    %c128_133 = arith.constant 128 : index
    %405 = vector.load %arg3[%c1_131, %c0_132, %c128_133] : memref<2x32x1152xbf16, #tpu.memory_space<vmem>>, vector<1x32x32xbf16>
    %406 = vector.shape_cast %405 : vector<1x32x32xbf16> to vector<32x32xbf16>
    %407 = arith.truncf %404 : vector<16x32xf32> to vector<16x32xbf16>
    %cst_134 = arith.constant dense<0.000000e+00> : vector<16x32xf32>
    %408 = tpu.matmul %407, %406, %cst_134 {dimension_numbers = #tpu.dot_dimension_numbers<[1], [0], [0], [1], [0, 0, 1, 1], [], []>} : vector<16x32xbf16>, vector<32x32xbf16>, vector<16x32xf32> -> vector<16x32xf32>
    %c1_135 = arith.constant 1 : index
    %c0_136 = arith.constant 0 : index
    %c384_137 = arith.constant 384 : index
    %409 = vector.load %arg5[%c1_135, %c0_136, %c384_137] : memref<2x1x1280xf32, #tpu.memory_space<vmem>>, vector<1x1x32xf32>
    %410 = vector.shape_cast %409 : vector<1x1x32xf32> to vector<1x32xf32>
    %411 = vector.broadcast %410 : vector<1x32xf32> to vector<16x32xf32>
    %412 = arith.addf %408, %411 : vector<16x32xf32>
    %cst_138 = arith.constant 0.000000e+00 : f32
    %413 = vector.broadcast %cst_138 : f32 to vector<16x32xf32>
    %414 = arith.maximumf %412, %413 : vector<16x32xf32>
    %c1_139 = arith.constant 1 : index
    %c0_140 = arith.constant 0 : index
    %c256_141 = arith.constant 256 : index
    %415 = vector.load %arg3[%c1_139, %c0_140, %c256_141] : memref<2x32x1152xbf16, #tpu.memory_space<vmem>>, vector<1x32x96xbf16>
    %416 = vector.shape_cast %415 : vector<1x32x96xbf16> to vector<32x96xbf16>
    %c1_142 = arith.constant 1 : index
    %c0_143 = arith.constant 0 : index
    %c384_144 = arith.constant 384 : index
    %417 = vector.load %arg3[%c1_142, %c0_143, %c384_144] : memref<2x32x1152xbf16, #tpu.memory_space<vmem>>, vector<1x32x64xbf16>
    %418 = vector.shape_cast %417 : vector<1x32x64xbf16> to vector<32x64xbf16>
    %c1_145 = arith.constant 1 : index
    %c0_146 = arith.constant 0 : index
    %c512_147 = arith.constant 512 : index
    %419 = vector.load %arg3[%c1_145, %c0_146, %c512_147] : memref<2x32x1152xbf16, #tpu.memory_space<vmem>>, vector<1x32x32xbf16>
    %420 = vector.shape_cast %419 : vector<1x32x32xbf16> to vector<32x32xbf16>
    %c1_148 = arith.constant 1 : index
    %c0_149 = arith.constant 0 : index
    %c512_150 = arith.constant 512 : index
    %421 = vector.load %arg5[%c1_148, %c0_149, %c512_150] : memref<2x1x1280xf32, #tpu.memory_space<vmem>>, vector<1x1x32xf32>
    %422 = vector.shape_cast %421 : vector<1x1x32xf32> to vector<1x32xf32>
    %423 = arith.truncf %414 : vector<16x32xf32> to vector<16x32xbf16>
    %cst_151 = arith.constant dense<0.000000e+00> : vector<16x96xf32>
    %424 = tpu.matmul %423, %416, %cst_151 {dimension_numbers = #tpu.dot_dimension_numbers<[1], [0], [0], [1], [0, 0, 1, 1], [], []>} : vector<16x32xbf16>, vector<32x96xbf16>, vector<16x96xf32> -> vector<16x96xf32>
    %425 = arith.truncf %273 : vector<16x32xf32> to vector<16x32xbf16>
    %cst_152 = arith.constant dense<0.000000e+00> : vector<16x64xf32>
    %426 = tpu.matmul %425, %418, %cst_152 {dimension_numbers = #tpu.dot_dimension_numbers<[1], [0], [0], [1], [0, 0, 1, 1], [], []>} : vector<16x32xbf16>, vector<32x64xbf16>, vector<16x64xf32> -> vector<16x64xf32>
    %427 = vector.extract_strided_slice %424 {offsets = [0, 0], sizes = [16, 32], strides = [1, 1]} : vector<16x96xf32> to vector<16x32xf32>
    %428 = vector.extract_strided_slice %426 {offsets = [0, 0], sizes = [16, 32], strides = [1, 1]} : vector<16x64xf32> to vector<16x32xf32>
    %429 = arith.addf %427, %428 : vector<16x32xf32>
    %430 = arith.negf %429 : vector<16x32xf32>
    %431 = math.exp %430 : vector<16x32xf32>
    %cst_153 = arith.constant 1.000000e+00 : f32
    %432 = vector.broadcast %cst_153 : f32 to vector<16x32xf32>
    %433 = arith.addf %432, %431 : vector<16x32xf32>
    %434 = arith.divf %432, %433 : vector<16x32xf32>
    %435 = vector.extract_strided_slice %424 {offsets = [0, 32], sizes = [16, 32], strides = [1, 1]} : vector<16x96xf32> to vector<16x32xf32>
    %436 = vector.extract_strided_slice %426 {offsets = [0, 32], sizes = [16, 32], strides = [1, 1]} : vector<16x64xf32> to vector<16x32xf32>
    %437 = arith.addf %435, %436 : vector<16x32xf32>
    %438 = vector.broadcast %422 : vector<1x32xf32> to vector<16x32xf32>
    %439 = arith.addf %437, %438 : vector<16x32xf32>
    %440 = arith.negf %439 : vector<16x32xf32>
    %441 = math.exp %440 : vector<16x32xf32>
    %cst_154 = arith.constant 1.000000e+00 : f32
    %442 = vector.broadcast %cst_154 : f32 to vector<16x32xf32>
    %443 = arith.addf %442, %441 : vector<16x32xf32>
    %444 = arith.divf %442, %443 : vector<16x32xf32>
    %445 = vector.extract_strided_slice %424 {offsets = [0, 64], sizes = [16, 32], strides = [1, 1]} : vector<16x96xf32> to vector<16x32xf32>
    %446 = arith.mulf %434, %273 : vector<16x32xf32>
    %447 = arith.truncf %446 : vector<16x32xf32> to vector<16x32xbf16>
    %cst_155 = arith.constant dense<0.000000e+00> : vector<16x32xf32>
    %448 = tpu.matmul %447, %420, %cst_155 {dimension_numbers = #tpu.dot_dimension_numbers<[1], [0], [0], [1], [0, 0, 1, 1], [], []>} : vector<16x32xbf16>, vector<32x32xbf16>, vector<16x32xf32> -> vector<16x32xf32>
    %449 = arith.addf %445, %448 : vector<16x32xf32>
    %450 = math.tanh %449 : vector<16x32xf32>
    %cst_156 = arith.constant 1.000000e+00 : f32
    %451 = vector.broadcast %cst_156 : f32 to vector<16x32xf32>
    %452 = arith.subf %451, %444 : vector<16x32xf32>
    %453 = arith.mulf %452, %273 : vector<16x32xf32>
    %454 = arith.mulf %444, %450 : vector<16x32xf32>
    %455 = arith.addf %453, %454 : vector<16x32xf32>
    %c1_157 = arith.constant 1 : index
    %c0_158 = arith.constant 0 : index
    %c640_159 = arith.constant 640 : index
    %456 = vector.load %arg5[%c1_157, %c0_158, %c640_159] : memref<2x1x1280xf32, #tpu.memory_space<vmem>>, vector<1x1x32xf32>
    %457 = vector.shape_cast %456 : vector<1x1x32xf32> to vector<1x32xf32>
    %c1_160 = arith.constant 1 : index
    %c0_161 = arith.constant 0 : index
    %c768_162 = arith.constant 768 : index
    %458 = vector.load %arg5[%c1_160, %c0_161, %c768_162] : memref<2x1x1280xf32, #tpu.memory_space<vmem>>, vector<1x1x32xf32>
    %459 = vector.shape_cast %458 : vector<1x1x32xf32> to vector<1x32xf32>
    %cst_163 = arith.constant dense<0.000000e+00> : vector<16xf32>
    %460 = vector.multi_reduction <add>, %455, %cst_163 [1] : vector<16x32xf32> to vector<16xf32>
    %461 = vector.shape_cast %460 : vector<16xf32> to vector<16x1xf32>
    %cst_164 = arith.constant 3.200000e+01 : f32
    %462 = vector.broadcast %cst_164 : f32 to vector<16x1xf32>
    %463 = arith.divf %461, %462 : vector<16x1xf32>
    %464 = vector.broadcast %463 : vector<16x1xf32> to vector<16x32xf32>
    %465 = arith.subf %455, %464 : vector<16x32xf32>
    %466 = arith.mulf %465, %465 : vector<16x32xf32>
    %cst_165 = arith.constant dense<0.000000e+00> : vector<16xf32>
    %467 = vector.multi_reduction <add>, %466, %cst_165 [1] : vector<16x32xf32> to vector<16xf32>
    %468 = vector.shape_cast %467 : vector<16xf32> to vector<16x1xf32>
    %cst_166 = arith.constant 3.200000e+01 : f32
    %469 = vector.broadcast %cst_166 : f32 to vector<16x1xf32>
    %470 = arith.divf %468, %469 : vector<16x1xf32>
    %471 = vector.broadcast %463 : vector<16x1xf32> to vector<16x32xf32>
    %472 = arith.subf %455, %471 : vector<16x32xf32>
    %cst_167 = arith.constant 9.99999974E-6 : f32
    %473 = vector.broadcast %cst_167 : f32 to vector<16x1xf32>
    %474 = arith.addf %470, %473 : vector<16x1xf32>
    %475 = math.rsqrt %474 : vector<16x1xf32>
    %476 = vector.broadcast %475 : vector<16x1xf32> to vector<16x32xf32>
    %477 = arith.mulf %472, %476 : vector<16x32xf32>
    %478 = vector.broadcast %457 : vector<1x32xf32> to vector<16x32xf32>
    %479 = arith.mulf %477, %478 : vector<16x32xf32>
    %480 = vector.broadcast %459 : vector<1x32xf32> to vector<16x32xf32>
    %481 = arith.addf %479, %480 : vector<16x32xf32>
    %c1_168 = arith.constant 1 : index
    %c0_169 = arith.constant 0 : index
    %c640_170 = arith.constant 640 : index
    %482 = vector.load %arg3[%c1_168, %c0_169, %c640_170] : memref<2x32x1152xbf16, #tpu.memory_space<vmem>>, vector<1x32x64xbf16>
    %483 = vector.shape_cast %482 : vector<1x32x64xbf16> to vector<32x64xbf16>
    %484 = arith.truncf %481 : vector<16x32xf32> to vector<16x32xbf16>
    %cst_171 = arith.constant dense<0.000000e+00> : vector<16x64xf32>
    %485 = tpu.matmul %484, %483, %cst_171 {dimension_numbers = #tpu.dot_dimension_numbers<[1], [0], [0], [1], [0, 0, 1, 1], [], []>} : vector<16x32xbf16>, vector<32x64xbf16>, vector<16x64xf32> -> vector<16x64xf32>
    %c1_172 = arith.constant 1 : index
    %c0_173 = arith.constant 0 : index
    %c896_174 = arith.constant 896 : index
    %486 = vector.load %arg5[%c1_172, %c0_173, %c896_174] : memref<2x1x1280xf32, #tpu.memory_space<vmem>>, vector<1x1x64xf32>
    %487 = vector.shape_cast %486 : vector<1x1x64xf32> to vector<1x64xf32>
    %488 = vector.broadcast %487 : vector<1x64xf32> to vector<16x64xf32>
    %489 = arith.addf %485, %488 : vector<16x64xf32>
    %cst_175 = arith.constant 0.000000e+00 : f32
    %490 = vector.broadcast %cst_175 : f32 to vector<16x64xf32>
    %491 = arith.maximumf %489, %490 : vector<16x64xf32>
    %c1_176 = arith.constant 1 : index
    %c0_177 = arith.constant 0 : index
    %c0_178 = arith.constant 0 : index
    %492 = vector.load %arg4[%c1_176, %c0_177, %c0_178] : memref<2x64x32xbf16, #tpu.memory_space<vmem>>, vector<1x64x32xbf16>
    %493 = vector.shape_cast %492 : vector<1x64x32xbf16> to vector<64x32xbf16>
    %494 = arith.truncf %491 : vector<16x64xf32> to vector<16x64xbf16>
    %cst_179 = arith.constant dense<0.000000e+00> : vector<16x32xf32>
    %495 = tpu.matmul %494, %493, %cst_179 {dimension_numbers = #tpu.dot_dimension_numbers<[1], [0], [0], [1], [0, 0, 1, 1], [], []>} : vector<16x64xbf16>, vector<64x32xbf16>, vector<16x32xf32> -> vector<16x32xf32>
    %c1_180 = arith.constant 1 : index
    %c0_181 = arith.constant 0 : index
    %c1024_182 = arith.constant 1024 : index
    %496 = vector.load %arg5[%c1_180, %c0_181, %c1024_182] : memref<2x1x1280xf32, #tpu.memory_space<vmem>>, vector<1x1x32xf32>
    %497 = vector.shape_cast %496 : vector<1x1x32xf32> to vector<1x32xf32>
    %498 = vector.broadcast %497 : vector<1x32xf32> to vector<16x32xf32>
    %499 = arith.addf %495, %498 : vector<16x32xf32>
    %cst_183 = arith.constant 0.000000e+00 : f32
    %500 = vector.broadcast %cst_183 : f32 to vector<16x32xf32>
    %501 = arith.maximumf %499, %500 : vector<16x32xf32>
    %c1_184 = arith.constant 1 : index
    %c0_185 = arith.constant 0 : index
    %c768_186 = arith.constant 768 : index
    %502 = vector.load %arg3[%c1_184, %c0_185, %c768_186] : memref<2x32x1152xbf16, #tpu.memory_space<vmem>>, vector<1x32x96xbf16>
    %503 = vector.shape_cast %502 : vector<1x32x96xbf16> to vector<32x96xbf16>
    %c1_187 = arith.constant 1 : index
    %c0_188 = arith.constant 0 : index
    %c896_189 = arith.constant 896 : index
    %504 = vector.load %arg3[%c1_187, %c0_188, %c896_189] : memref<2x32x1152xbf16, #tpu.memory_space<vmem>>, vector<1x32x64xbf16>
    %505 = vector.shape_cast %504 : vector<1x32x64xbf16> to vector<32x64xbf16>
    %c1_190 = arith.constant 1 : index
    %c0_191 = arith.constant 0 : index
    %c1024_192 = arith.constant 1024 : index
    %506 = vector.load %arg3[%c1_190, %c0_191, %c1024_192] : memref<2x32x1152xbf16, #tpu.memory_space<vmem>>, vector<1x32x32xbf16>
    %507 = vector.shape_cast %506 : vector<1x32x32xbf16> to vector<32x32xbf16>
    %c1_193 = arith.constant 1 : index
    %c0_194 = arith.constant 0 : index
    %c1152_195 = arith.constant 1152 : index
    %508 = vector.load %arg5[%c1_193, %c0_194, %c1152_195] : memref<2x1x1280xf32, #tpu.memory_space<vmem>>, vector<1x1x32xf32>
    %509 = vector.shape_cast %508 : vector<1x1x32xf32> to vector<1x32xf32>
    %510 = arith.truncf %501 : vector<16x32xf32> to vector<16x32xbf16>
    %cst_196 = arith.constant dense<0.000000e+00> : vector<16x96xf32>
    %511 = tpu.matmul %510, %503, %cst_196 {dimension_numbers = #tpu.dot_dimension_numbers<[1], [0], [0], [1], [0, 0, 1, 1], [], []>} : vector<16x32xbf16>, vector<32x96xbf16>, vector<16x96xf32> -> vector<16x96xf32>
    %512 = arith.truncf %455 : vector<16x32xf32> to vector<16x32xbf16>
    %cst_197 = arith.constant dense<0.000000e+00> : vector<16x64xf32>
    %513 = tpu.matmul %512, %505, %cst_197 {dimension_numbers = #tpu.dot_dimension_numbers<[1], [0], [0], [1], [0, 0, 1, 1], [], []>} : vector<16x32xbf16>, vector<32x64xbf16>, vector<16x64xf32> -> vector<16x64xf32>
    %514 = vector.extract_strided_slice %511 {offsets = [0, 0], sizes = [16, 32], strides = [1, 1]} : vector<16x96xf32> to vector<16x32xf32>
    %515 = vector.extract_strided_slice %513 {offsets = [0, 0], sizes = [16, 32], strides = [1, 1]} : vector<16x64xf32> to vector<16x32xf32>
    %516 = arith.addf %514, %515 : vector<16x32xf32>
    %517 = arith.negf %516 : vector<16x32xf32>
    %518 = math.exp %517 : vector<16x32xf32>
    %cst_198 = arith.constant 1.000000e+00 : f32
    %519 = vector.broadcast %cst_198 : f32 to vector<16x32xf32>
    %520 = arith.addf %519, %518 : vector<16x32xf32>
    %521 = arith.divf %519, %520 : vector<16x32xf32>
    %522 = vector.extract_strided_slice %511 {offsets = [0, 32], sizes = [16, 32], strides = [1, 1]} : vector<16x96xf32> to vector<16x32xf32>
    %523 = vector.extract_strided_slice %513 {offsets = [0, 32], sizes = [16, 32], strides = [1, 1]} : vector<16x64xf32> to vector<16x32xf32>
    %524 = arith.addf %522, %523 : vector<16x32xf32>
    %525 = vector.broadcast %509 : vector<1x32xf32> to vector<16x32xf32>
    %526 = arith.addf %524, %525 : vector<16x32xf32>
    %527 = arith.negf %526 : vector<16x32xf32>
    %528 = math.exp %527 : vector<16x32xf32>
    %cst_199 = arith.constant 1.000000e+00 : f32
    %529 = vector.broadcast %cst_199 : f32 to vector<16x32xf32>
    %530 = arith.addf %529, %528 : vector<16x32xf32>
    %531 = arith.divf %529, %530 : vector<16x32xf32>
    %532 = vector.extract_strided_slice %511 {offsets = [0, 64], sizes = [16, 32], strides = [1, 1]} : vector<16x96xf32> to vector<16x32xf32>
    %533 = arith.mulf %521, %455 : vector<16x32xf32>
    %534 = arith.truncf %533 : vector<16x32xf32> to vector<16x32xbf16>
    %cst_200 = arith.constant dense<0.000000e+00> : vector<16x32xf32>
    %535 = tpu.matmul %534, %507, %cst_200 {dimension_numbers = #tpu.dot_dimension_numbers<[1], [0], [0], [1], [0, 0, 1, 1], [], []>} : vector<16x32xbf16>, vector<32x32xbf16>, vector<16x32xf32> -> vector<16x32xf32>
    %536 = arith.addf %532, %535 : vector<16x32xf32>
    %537 = math.tanh %536 : vector<16x32xf32>
    %cst_201 = arith.constant 1.000000e+00 : f32
    %538 = vector.broadcast %cst_201 : f32 to vector<16x32xf32>
    %539 = arith.subf %538, %531 : vector<16x32xf32>
    %540 = arith.mulf %539, %455 : vector<16x32xf32>
    %541 = arith.mulf %531, %537 : vector<16x32xf32>
    %542 = arith.addf %540, %541 : vector<16x32xf32>
    %c0_202 = arith.constant 0 : index
    %c0_203 = arith.constant 0 : index
    %543 = vector.load %arg6[%c0_202, %c0_203] : memref<16x32xf32, #tpu.memory_space<vmem>>, vector<16x32xf32>
    tpu.vector_store %arg6[%c0_202, %c0_203], %542 {strides = array<i32>} : memref<16x32xf32, #tpu.memory_space<vmem>>, vector<16x32xf32>,
    return
  }
  func.func @transform_0(%arg0: i32) -> (i32, i32) {
    %c0_i32 = arith.constant 0 : i32
    %c0_i32_0 = arith.constant 0 : i32
    return %arg0, %c0_i32 : i32, i32
  }
  func.func @transform_1(%arg0: i32) -> (i32, i32) {
    %c0_i32 = arith.constant 0 : i32
    %c0_i32_0 = arith.constant 0 : i32
    %c0_i32_1 = arith.constant 0 : i32
    return %c0_i32, %c0_i32_0 : i32, i32
  }
  func.func @transform_2(%arg0: i32) -> (i32, i32, i32) {
    %c0_i32 = arith.constant 0 : i32
    %c0_i32_0 = arith.constant 0 : i32
    %c0_i32_1 = arith.constant 0 : i32
    %c0_i32_2 = arith.constant 0 : i32
    return %c0_i32, %c0_i32_0, %c0_i32_1 : i32, i32, i32
  }
  func.func @transform_3(%arg0: i32) -> (i32, i32, i32) {
    %c0_i32 = arith.constant 0 : i32
    %c0_i32_0 = arith.constant 0 : i32
    %c0_i32_1 = arith.constant 0 : i32
    %c0_i32_2 = arith.constant 0 : i32
    return %c0_i32, %c0_i32_0, %c0_i32_1 : i32, i32, i32
  }
  func.func @transform_4(%arg0: i32) -> (i32, i32, i32) {
    %c0_i32 = arith.constant 0 : i32
    %c0_i32_0 = arith.constant 0 : i32
    %c0_i32_1 = arith.constant 0 : i32
    %c0_i32_2 = arith.constant 0 : i32
    return %c0_i32, %c0_i32_0, %c0_i32_1 : i32, i32, i32
  }
  func.func @transform_5(%arg0: i32) -> (i32, i32) {
    %c0_i32 = arith.constant 0 : i32
    %c0_i32_0 = arith.constant 0 : i32
    return %arg0, %c0_i32 : i32, i32
  }
}

</mosaic_0001>

<bundles_post_ra>
// kernel: tpu_custom_call.1
= control target key start
LH: loop header
LB: loop body
LE: loop exit
PB: predicated region body
PF: predicated region fallthrough
CT: control target
= control target key end

     0   :  { %10 = vsyncpa [#allocation3], 0  ;;  %s5506_s0 = inlined_call_operand.vmem [shape: f32[16,32], index: 0, kind: input, shape index: {}]   ;;  %s5507_s1 = inlined_call_operand.vmem [shape: f32[8,8], index: 1, kind: input, shape index: {}]   ;;  %s5508_s2 = inlined_call_operand.hbm [shape: bf16[2,32,1152], index: 2, kind: input, shape index: {}]   ;;  %s5509_s3 = inlined_call_operand.vmem [shape: bf16[2,64,32], index: 3, kind: input, shape index: {}]   ;;  %s5510_s4 = inlined_call_operand.vmem [shape: f32[2,1,1280], index: 4, kind: input, shape index: {}]   ;;  %s5511_s5 = inlined_call_operand.hbm [shape: f32[16,32], index: 5, kind: output, shape index: {}]  }
   0x1   :  { %11 = vsyncpa [#allocation4], 0  ;;  %s4691_s18 = smov [#allocation2]   ;;  %s4643_s22 = scalar_lea.hbm %s5508_s2, 4608 }
   0x2   :  { %s21_s19 = sshll.u32 %s4691_s18, 4  ;;  %p4644_p0 = scmp.ne.s32.totalorder %s5508_s2, %s4643_s22  ;;  %s22_s19 = int_to_ptr.vmem [resolvable:$true] %s21_s19 }
   0x3   :  { %p4647_p1 = scmp.lt.u32.totalorder %s4643_s22, %s5508_s2 }
   0x5   :  { %p4649_p2 = pnand %p4647_p1, %p4644_p0 }
   0x7   :  { %4652 = shalt.err (!%p4649_p2)
}
   0x8   :  { %s4653_s27 = scalar_lea.vmem %s22_s19, 4608  ;;  %p4658_p4 = scmp.lt.s32.totalorder %s22_s19, %s22_s19 }
   0x9   :  { %p4654_p3 = scmp.ne.s32.totalorder %s22_s19, %s4653_s27  ;;  %p4659_p5 = scmp.lt.s32.totalorder %s4653_s27, %s4653_s27 }
   0xb   :  { %p4660_p6 = por %p4659_p5, %p4658_p4 }
   0xd   :  { %p4661_p7 = pnand %p4660_p6, %p4654_p3 }
   0xf   :  { %4664 = shalt.err (!%p4661_p7)
}
  0x10   :  { %s4692_s28 = smov 576   ;;  %s4693_s29 = smov 36  }
  0x11   :  { %27 = dma.hbm_to_vmem [thread:$0]  %s5508_s2, 4608, %s22_s19, [#allocation3], %s4692_s28, %s4692_s28, %s4693_s29  }
  0x12   :  { %4687 = dma.done.wait [#allocation3], 4608  }
  0x13   :  { %4688 = vsyncadd [#allocation3], 4294962688  ;;  %vm41_vm0 = vcmask 261120   ;;  %v36_v0 = vld [vmem:[%s5506_s0] sm:$0xff]  ;;  %v37_v1 = vld [vmem:[%s5506_s0 + $0x8] sm:$0xff]  ;;  %v4694_v15 = vmov 0.0  }
  0x14   :  { %v42_v2 = vsel %vm41_vm0, %v36_v0, 0.0  ;;  %v45_v3 = vsel %vm41_vm0, %v37_v1, 0.0  ;;  %v4436_v14 = vld [vmem:[#allocation2] ss:$36 sps:$4 sm:$0xff]   ;;  %4024 = vmatprep.subr.bf16.mxu0 %v4694_v15  ;;  %vm4695_vm1 = vmmov 0   ;;  %4032 = vmatprep.subr.bf16.mxu1 %v4694_v15  ;;  %s4696_s16 = smov 96  }
  0x15   :  { %43 = vadd.xlane.f32.xlu0 %v42_v2  ;;  %4028 = vmatprep.mubr.msk.bf16.mxu0 %vm4695_vm1, %v4694_v15  ;;  %v4437_v16 = vld [vmem:[#allocation2 + $0x48] ss:$36 sps:$4 sm:$0xff]   ;;  %v3746_v25 = vld [vmem:[%s5510_s4] ss:$0 sm:$0xff]  ;;  %v3747_v29 = vld [vmem:[%s5510_s4 + $0x1] ss:$0 sm:$0xff] }
  0x16   :  { %4025 = vmatpush3.bf16.msra.mxu0 %v4436_v14  ;;  %4034 = vmatprep.mubr.msk.bf16.mxu1 %vm4695_vm1, %v4694_v15  ;;  %v3748_v34 = vld [vmem:[%s5510_s4 + $0x2] ss:$0 sm:$0xff]  ;;  %vm158_vm2 = vcmask 64512   ;;  %s4697_s19 = smov 64   ;;  %s4698_s20 = smov 88   ;;  %vm279_vm3 = vcmask 1043456  }
  0x17   :  { %4026 = vmatprep.subr.bf16.mxu0 %v4694_v15  ;;  %v4808_v47 = vld [vmem:[%s5507_s1] sm:$0xff]  ;;  %s4699_s21 = smov 120   ;;  %s4700_s22 = smov 56   ;;  %vm1061_vm4 = vcmask 130048   ;;  %vm1064_vm5 = vcmask 195584   ;;  %vm1572_vm6 = vcmask 523264  }
  0x18   :  { %s4701_s23 = smov 80   ;;  %s4702_s24 = smov 112  }
  0x19   :  { %46 = vadd.xlane.f32.xlu0 %v45_v3  ;;  %s4703_s25 = smov 48   ;;  %s4704_s26 = smov 72  }
  0x1a   :  { %4027 = vmatpush3.bf16.msra.mxu0 %v4437_v16  ;;  %s4705_s27 = smov 104   ;;  %s4706_s28 = smov 40  }
  0x1b   :  { %4038 = vmatprep.subr.bf16.mxu0 %v4694_v15  ;;  %s4707_s29 = smov 8   ;;  %s4708_s30 = smov 16  }
  0x1c   :  { %s4709_s6 = smov 24   ;;  %s4710_s13 = smov 32  }
  0xa2   :  { %v44_v4 = vpop.xlane.xlu0 %43 }
  0xa3   :  { %v49_v5 = vmul.f32 0.03125, %v44_v4 }
  0xa5   :  { %v51_v6 = vsub.f32 %v36_v0, %v49_v5 }
  0xa6   :  { %v47_v7 = vpop.xlane.xlu0 %46 }
  0xa7   :  { %v50_v8 = vmul.f32 0.03125, %v47_v7  ;;  %v53_v9 = vmul.f32 %v51_v6, %v51_v6 }
  0xa9   :  { %v52_v10 = vsub.f32 %v37_v1, %v50_v8  ;;  %v55_v11 = vsel %vm41_vm0, %v53_v9, 0.0 }
  0xaa   :  { %56 = vadd.xlane.f32.xlu1 %v55_v11 }
  0xab   :  { %v54_v12 = vmul.f32 %v52_v10, %v52_v10 }
  0xad   :  { %v58_v13 = vsel %vm41_vm0, %v54_v12, 0.0 }
  0xae   :  { %59 = vadd.xlane.f32.xlu1 %v58_v13 }
 0x137   :  { %v57_v17 = vpop.xlane.xlu1 %56 }
 0x138   :  { %v61_v18 = vmul.f32 0.03125, %v57_v17 }
 0x13a   :  { %v63_v19 = vadd.f32 1e-05, %v61_v18 }
 0x13b   :  { %v60_v20 = vpop.xlane.xlu1 %59 }
 0x13c   :  { %4480 = vrsqrt.f32 %v63_v19  ;;  %v62_v21 = vmul.f32 0.03125, %v60_v20 }
 0x13e   :  { %v64_v22 = vadd.f32 1e-05, %v62_v21 }
 0x140   :  { %4482 = vrsqrt.f32 %v64_v22 }
 0x146   :  { %v4481_v23 = vpop.eup %4480 }
 0x147   :  { %v67_v24 = vmul.f32 %v4481_v23, %v51_v6 }
 0x149   :  { %v75_v28 = vmul.f32 %v3746_v25, %v67_v24 }
 0x14a   :  { %v4483_v26 = vpop.eup %4482 }
 0x14b   :  { %v68_v27 = vmul.f32 %v4483_v26, %v52_v10  ;;  %v83_v31 = vadd.f32 %v3747_v29, %v75_v28 }
 0x14d   :  { %v76_v30 = vmul.f32 %v3746_v25, %v68_v27 }
 0x14f   :  { %v84_v32 = vadd.f32 %v3747_v29, %v76_v30 }
 0x151   :  { %v89_v33 = vpack.c.bf16 %v84_v32, %v83_v31 }
 0x153   :  { %4029 = vmatmul.mubr.msk.bf16.vlgmr.msra.gmra.mrb[0].mxu0 %vm41_vm0, %v89_v33 }
 0x154   :  { %4040 = vmatprep.mubr.msk.bf16.mxu0 %vm4695_vm1, %v4694_v15 }
 0x226   :  { %v146_v35 = vpop.f32.mrb[0].mxu0 }
 0x227   :  { %v147_v36 = vadd.f32 %v3748_v34, %v146_v35  ;;  %v4030_v37 = vpop.f32.mrb[1].mxu0 }
 0x228   :  { %v149_v38 = vpop.f32.mrb[2].mxu0 }
 0x229   :  { %v4785_v39 = vpack.c.bf16 %v147_v36, %v147_v36  ;;  %v150_v40 = vadd.f32 %v3748_v34, %v149_v38  ;;  %v4031_v41 = vpop.f32.mrb[3].mxu0 }
 0x22b   :  { %v4787_v42 = vpack.c.bf16 %v150_v40, %v150_v40  ;;  %156 = vrot.lane.b32.xlu0 %v4785_v39, %s4696_s16 }
 0x22d   :  { %206 = vrot.lane.b32.xlu1 %v4787_v42, %s4696_s16 }
 0x29d   :  { %v157_v43 = vpop.permute.xlu0 %156 }
 0x29e   :  { %v163_v44 = vsel %vm158_vm2, %v157_v43, 0 }
 0x29f   :  { %4033 = vmatpush3.bf16.xpose.msra.mxu1 %v163_v44  ;;  %v207_v45 = vpop.permute.xlu1 %206 }
 0x2a0   :  { %v212_v46 = vsel %vm158_vm2, %v207_v45, 0  ;;  %4044 = vmatprep.subr.bf16.mxu1 %v4694_v15 }
 0x2a1   :  { %4039 = vmatpush3.bf16.xpose.msra.mxu0 %v212_v46 }
 0x2a2   :  { %4050 = vmatprep.subr.bf16.mxu0 %v4694_v15 }
 0x2a6   :  { %4035 = vmatmul.mubr.msk.bf16.vlgmr.msra.gmra.mrb[0].mxu1 %vm158_vm2, %v4785_v39 }
 0x2a7   :  { %4046 = vmatprep.mubr.msk.bf16.mxu1 %vm4695_vm1, %v4694_v15 }
 0x2a8   :  { %4041 = vmatmul.mubr.msk.bf16.vlgmr.msra.gmra.mrb[4].mxu0 %vm158_vm2, %v4787_v42 }
 0x2a9   :  { %4052 = vmatprep.mubr.msk.bf16.mxu0 %vm4695_vm1, %v4694_v15 }
 0x379   :  { %v199_v48 = vpop.f32.mrb[0].mxu1 }
 0x37a   :  { %v200_v49 = vadd.f32 %v199_v48, %v4808_v47  ;;  %v4036_v50 = vpop.f32.mrb[1].mxu1 }
 0x37b   :  { %v202_v51 = vpop.f32.mrb[2].mxu1  ;;  %v248_v52 = vpop.f32.mrb[4].mxu0 }
 0x37c   :  { %v249_v53 = vadd.f32 %v248_v52, %v4808_v47  ;;  %v4037_v54 = vpop.f32.mrb[3].mxu1  ;;  %v4042_v55 = vpop.f32.mrb[5].mxu0  ;;  %v254_v56 = vsel %vm158_vm2, %v200_v49, -inf }
 0x37d   :  { %255 = vmax.xlane.f32.xlu1 %v254_v56  ;;  %v251_v57 = vpop.f32.mrb[6].mxu0 }
 0x37e   :  { %v4043_v58 = vpop.f32.mrb[7].mxu0  ;;  %v257_v59 = vsel %vm158_vm2, %v249_v53, -inf }
 0x37f   :  { %258 = vmax.xlane.f32.xlu0 %v257_v59 }
 0x38e   :  { %323 = vrot.lane.b32.xlu1 %v4787_v42, %s4697_s19 }
 0x392   :  { %377 = vrot.lane.b32.xlu1 %v4785_v39, %s4698_s20 }
 0x395   :  { %274 = vrot.lane.b32.xlu0 %v4785_v39, %s4697_s19 }
 0x396   :  { %427 = vrot.lane.b32.xlu1 %v4787_v42, %s4698_s20 }
 0x399   :  { %375 = vrot.lane.b32.xlu0 %v4785_v39, %s4699_s21 }
 0x39a   :  { %425 = vrot.lane.b32.xlu1 %v4787_v42, %s4699_s21 }
 0x39d   :  { %495 = vrot.lane.b32.xlu0 %v4785_v39, %s4700_s22 }
 0x39e   :  { %543 = vrot.lane.b32.xlu1 %v4787_v42, %s4700_s22 }
 0x40a   :  { %v256_v60 = vpop.xlane.xlu1 %255 }
 0x40b   :  { %v260_v61 = vsub.f32 %v200_v49, %v256_v60 }
 0x40c   :  { %v259_v62 = vpop.xlane.xlu0 %258 }
 0x40d   :  { %v262_v63 = vmul.f32 1.442695, %v260_v61  ;;  %v261_v0 = vsub.f32 %v249_v53, %v259_v62 }
 0x40e   :  { %v324_v1 = vpop.permute.xlu1 %323 }
 0x40f   :  { %4484 = vpow2.f32 %v262_v63  ;;  %v264_v2 = vmul.f32 1.442695, %v261_v0  ;;  %v329_v3 = vsel %vm279_vm3, %v324_v1, 0 }
 0x410   :  { %4051 = vmatpush3.bf16.msra.mxu0 %v329_v3  ;;  %v275_v4 = vpop.permute.xlu0 %274 }
 0x411   :  { %4486 = vpow2.f32 %v264_v2  ;;  %v281_v5 = vsel %vm279_vm3, %v275_v4, 0  ;;  %4062 = vmatprep.subr.bf16.mxu0 %v4694_v15 }
 0x412   :  { %v378_v6 = vpop.permute.xlu1 %377  ;;  %4045 = vmatpush3.bf16.msra.mxu1 %v281_v5 }
 0x413   :  { %4056 = vmatprep.subr.bf16.mxu1 %v4694_v15  ;;  %v383_v12 = vsel %vm158_vm2, %v378_v6, 0 }
 0x414   :  { %v376_v11 = vpop.permute.xlu0 %375 }
 0x416   :  { %v428_v7 = vpop.permute.xlu1 %427 }
 0x417   :  { %v433_v16 = vsel %vm158_vm2, %v428_v7, 0 }
 0x418   :  { %v496_v17 = vpop.permute.xlu0 %495 }
 0x419   :  { %v4834_v8 = vpop.eup %4484  ;;  %v501_v19 = vsel %vm279_vm3, %v496_v17, 0 }
 0x41a   :  { %v272_v9 = vpack.c.bf16 %v4834_v8, %v4834_v8  ;;  %v426_v14 = vpop.permute.xlu1 %425 }
 0x41b   :  { %v4838_v10 = vpop.eup %4486 }
 0x41c   :  { %4047 = vmatmul.mubr.msk.bf16.vlgmr.msra.gmra.mrb[4].mxu1 %vm158_vm2, %v272_v9  ;;  %v273_v13 = vpack.c.bf16 %v4838_v10, %v4838_v10 }
 0x41d   :  { %4057 = vmatpush3.bf16.xpose.msra.mxu1 %v383_v12  ;;  %4058 = vmatprep.mubr.msk.bf16.mxu1 %vm4695_vm1, %v4694_v15 }
 0x41e   :  { %4053 = vmatmul.mubr.msk.bf16.vlgmr.msra.gmra.mrb[8].mxu0 %vm158_vm2, %v273_v13  ;;  %4068 = vmatprep.subr.bf16.mxu1 %v4694_v15  ;;  %v544_v18 = vpop.permute.xlu1 %543 }
 0x41f   :  { %4063 = vmatpush3.bf16.xpose.msra.mxu0 %v433_v16  ;;  %4064 = vmatprep.mubr.msk.bf16.mxu0 %vm4695_vm1, %v4694_v15  ;;  %v549_v20 = vsel %vm279_vm3, %v544_v18, 0 }
 0x420   :  { %4074 = vmatprep.subr.bf16.mxu0 %v4694_v15 }
 0x424   :  { %4059 = vmatmul.mubr.msk.bf16.vlgmr.msra.gmra.mrb[8].mxu1 %vm158_vm2, %v376_v11 }
 0x425   :  { %4069 = vmatpush3.bf16.msra.mxu1 %v501_v19  ;;  %4070 = vmatprep.mubr.msk.bf16.mxu1 %vm4695_vm1, %v4694_v15 }
 0x426   :  { %4065 = vmatmul.mubr.msk.bf16.vlgmr.msra.gmra.mrb[12].mxu0 %vm158_vm2, %v426_v14  ;;  %4080 = vmatprep.subr.bf16.mxu1 %v4694_v15 }
 0x427   :  { %4075 = vmatpush3.bf16.msra.mxu0 %v549_v20  ;;  %4076 = vmatprep.mubr.msk.bf16.mxu0 %vm4695_vm1, %v4694_v15 }
 0x428   :  { %4086 = vmatprep.subr.bf16.mxu0 %v4694_v15 }
 0x4ef   :  { %v4862_v21 = vpop.f32.mrb[4].mxu1 }
 0x4f0   :  { %v4048_v22 = vpop.f32.mrb[5].mxu1 }
 0x4f1   :  { %v320_v23 = vpop.f32.mrb[6].mxu1  ;;  %v4864_v24 = vpop.f32.mrb[8].mxu0 }
 0x4f2   :  { %v4049_v25 = vpop.f32.mrb[7].mxu1  ;;  %v4054_v26 = vpop.f32.mrb[9].mxu0 }
 0x4f3   :  { %v368_v27 = vpop.f32.mrb[10].mxu0 }
 0x4f4   :  { %v4055_v28 = vpop.f32.mrb[11].mxu0 }
 0x4f7   :  { %v419_v29 = vpop.f32.mrb[8].mxu1 }
 0x4f8   :  { %v420_v30 = vadd.f32 %v419_v29, %v4808_v47  ;;  %v4060_v31 = vpop.f32.mrb[9].mxu1 }
 0x4f9   :  { %v422_v32 = vpop.f32.mrb[10].mxu1  ;;  %v469_v33 = vpop.f32.mrb[12].mxu0 }
 0x4fa   :  { %v470_v34 = vadd.f32 %v469_v33, %v4808_v47  ;;  %v4061_v35 = vpop.f32.mrb[11].mxu1  ;;  %v4066_v36 = vpop.f32.mrb[13].mxu0  ;;  %v475_v37 = vsel %vm158_vm2, %v420_v30, -inf }
 0x4fb   :  { %476 = vmax.xlane.f32.xlu0 %v475_v37  ;;  %v472_v38 = vpop.f32.mrb[14].mxu0 }
 0x4fc   :  { %v4067_v40 = vpop.f32.mrb[15].mxu0  ;;  %v478_v41 = vsel %vm158_vm2, %v470_v34, -inf }
 0x4fd   :  { %479 = vmax.xlane.f32.xlu1 %v478_v41 }
 0x50e   :  { %647 = vrot.lane.b32.xlu1 %v4787_v42, %s4701_s23 }
 0x511   :  { %597 = vrot.lane.b32.xlu0 %v4785_v39, %s4701_s23 }
 0x512   :  { %645 = vrot.lane.b32.xlu1 %v4787_v42, %s4702_s24 }
 0x515   :  { %595 = vrot.lane.b32.xlu0 %v4785_v39, %s4702_s24 }
 0x516   :  { %763 = vrot.lane.b32.xlu1 %v4787_v42, %s4703_s25 }
 0x519   :  { %715 = vrot.lane.b32.xlu0 %v4785_v39, %s4703_s25 }
 0x588   :  { %v477_v43 = vpop.xlane.xlu0 %476 }
 0x589   :  { %v481_v44 = vsub.f32 %v420_v30, %v477_v43 }
 0x58a   :  { %v480_v45 = vpop.xlane.xlu1 %479 }
 0x58b   :  { %v483_v46 = vmul.f32 1.442695, %v481_v44  ;;  %v482_v48 = vsub.f32 %v470_v34, %v480_v45 }
 0x58c   :  { %v598_v50 = vpop.permute.xlu0 %597 }
 0x58d   :  { %4488 = vpow2.f32 %v483_v46  ;;  %v485_v49 = vmul.f32 1.442695, %v482_v48  ;;  %v603_v56 = vsel %vm158_vm2, %v598_v50, 0 }
 0x58e   :  { %v648_v51 = vpop.permute.xlu1 %647 }
 0x58f   :  { %4490 = vpow2.f32 %v485_v49  ;;  %v653_v59 = vsel %vm158_vm2, %v648_v51, 0 }
 0x590   :  { %v596_v55 = vpop.permute.xlu0 %595 }
 0x592   :  { %v646_v58 = vpop.permute.xlu1 %645 }
 0x594   :  { %v716_v60 = vpop.permute.xlu0 %715 }
 0x595   :  { %v721_v62 = vsel %vm279_vm3, %v716_v60, 0 }
 0x596   :  { %v764_v61 = vpop.permute.xlu1 %763 }
 0x597   :  { %v4882_v52 = vpop.eup %4488  ;;  %v769_v63 = vsel %vm279_vm3, %v764_v61, 0 }
 0x598   :  { %v493_v53 = vpack.c.bf16 %v4882_v52, %v4882_v52 }
 0x599   :  { %v4886_v54 = vpop.eup %4490 }
 0x59a   :  { %4071 = vmatmul.mubr.msk.bf16.vlgmr.msra.gmra.mrb[12].mxu1 %vm158_vm2, %v493_v53  ;;  %v494_v57 = vpack.c.bf16 %v4886_v54, %v4886_v54 }
 0x59b   :  { %4081 = vmatpush3.bf16.xpose.msra.mxu1 %v603_v56  ;;  %4082 = vmatprep.mubr.msk.bf16.mxu1 %vm4695_vm1, %v4694_v15 }
 0x59c   :  { %4077 = vmatmul.mubr.msk.bf16.vlgmr.msra.gmra.mrb[16].mxu0 %vm158_vm2, %v494_v57  ;;  %4092 = vmatprep.subr.bf16.mxu1 %v4694_v15 }
 0x59d   :  { %4087 = vmatpush3.bf16.xpose.msra.mxu0 %v653_v59  ;;  %4088 = vmatprep.mubr.msk.bf16.mxu0 %vm4695_vm1, %v4694_v15 }
 0x59e   :  { %4098 = vmatprep.subr.bf16.mxu0 %v4694_v15 }
 0x5a2   :  { %4083 = vmatmul.mubr.msk.bf16.vlgmr.msra.gmra.mrb[16].mxu1 %vm158_vm2, %v596_v55 }
 0x5a3   :  { %4093 = vmatpush3.bf16.msra.mxu1 %v721_v62  ;;  %4094 = vmatprep.mubr.msk.bf16.mxu1 %vm4695_vm1, %v4694_v15 }
 0x5a4   :  { %4089 = vmatmul.mubr.msk.bf16.vlgmr.msra.gmra.mrb[20].mxu0 %vm158_vm2, %v646_v58  ;;  %4104 = vmatprep.subr.bf16.mxu1 %v4694_v15 }
 0x5a5   :  { %4099 = vmatpush3.bf16.msra.mxu0 %v769_v63  ;;  %4100 = vmatprep.mubr.msk.bf16.mxu0 %vm4695_vm1, %v4694_v15 }
 0x5a6   :  { %4110 = vmatprep.subr.bf16.mxu0 %v4694_v15 }
 0x66d   :  { %v4910_v0 = vpop.f32.mrb[12].mxu1 }
 0x66e   :  { %v4072_v1 = vpop.f32.mrb[13].mxu1 }
 0x66f   :  { %v540_v2 = vpop.f32.mrb[14].mxu1  ;;  %v4912_v3 = vpop.f32.mrb[16].mxu0 }
 0x670   :  { %v4073_v4 = vpop.f32.mrb[15].mxu1  ;;  %v4078_v5 = vpop.f32.mrb[17].mxu0 }
 0x671   :  { %v588_v6 = vpop.f32.mrb[18].mxu0  ;;  %v490_v4 = vsel %vm158_vm2, %v4886_v54, 0.0 }
 0x672   :  { %v4079_v7 = vpop.f32.mrb[19].mxu0 }
 0x675   :  { %v639_v9 = vpop.f32.mrb[16].mxu1 }
 0x676   :  { %v640_v11 = vadd.f32 %v639_v9, %v4808_v47  ;;  %v4084_v12 = vpop.f32.mrb[17].mxu1 }
 0x677   :  { %v642_v13 = vpop.f32.mrb[18].mxu1  ;;  %v689_v14 = vpop.f32.mrb[20].mxu0 }
 0x678   :  { %v690_v16 = vadd.f32 %v689_v14, %v4808_v47  ;;  %v4085_v17 = vpop.f32.mrb[19].mxu1  ;;  %v4090_v18 = vpop.f32.mrb[21].mxu0  ;;  %v695_v19 = vsel %vm158_vm2, %v640_v11, -inf }
 0x679   :  { %696 = vmax.xlane.f32.xlu0 %v695_v19  ;;  %v692_v20 = vpop.f32.mrb[22].mxu0 }
 0x67a   :  { %v4091_v22 = vpop.f32.mrb[23].mxu0  ;;  %v698_v23 = vsel %vm158_vm2, %v690_v16, -inf }
 0x67b   :  { %699 = vmax.xlane.f32.xlu1 %v698_v23  ;;  %v266_v23 = vsel %vm158_vm2, %v4834_v8, 0.0 }
 0x68c   :  { %867 = vrot.lane.b32.xlu1 %v4787_v42, %s4704_s26 }
 0x68f   :  { %817 = vrot.lane.b32.xlu0 %v4785_v39, %s4704_s26 }
 0x690   :  { %865 = vrot.lane.b32.xlu1 %v4787_v42, %s4705_s27 }
 0x693   :  { %815 = vrot.lane.b32.xlu0 %v4785_v39, %s4705_s27 }
 0x706   :  { %v697_v25 = vpop.xlane.xlu0 %696 }
 0x707   :  { %v701_v26 = vsub.f32 %v640_v11, %v697_v25  ;;  %v269_v25 = vsel %vm158_vm2, %v4838_v10, 0.0 }
 0x708   :  { %v700_v27 = vpop.xlane.xlu1 %699 }
 0x709   :  { %v703_v28 = vmul.f32 1.442695, %v701_v26  ;;  %v702_v29 = vsub.f32 %v690_v16, %v700_v27 }
 0x70a   :  { %v818_v32 = vpop.permute.xlu0 %817 }
 0x70b   :  { %4492 = vpow2.f32 %v703_v28  ;;  %v705_v30 = vmul.f32 1.442695, %v702_v29  ;;  %v823_v36 = vsel %vm158_vm2, %v818_v32, 0 }
 0x70c   :  { %v868_v35 = vpop.permute.xlu1 %867 }
 0x70d   :  { %4494 = vpow2.f32 %v705_v30  ;;  %v873_v38 = vsel %vm158_vm2, %v868_v35, 0 }
 0x70e   :  { %v816_v40 = vpop.permute.xlu0 %815 }
 0x710   :  { %v866_v41 = vpop.permute.xlu1 %865 }
 0x715   :  { %v4493_v31 = vpop.eup %4492 }
 0x716   :  { %v713_v33 = vpack.c.bf16 %v4493_v31, %v4493_v31  ;;  %v707_v5 = vsel %vm158_vm2, %v4493_v31, 0.0 }
 0x717   :  { %v4495_v34 = vpop.eup %4494 }
 0x718   :  { %4095 = vmatmul.mubr.msk.bf16.vlgmr.msra.gmra.mrb[20].mxu1 %vm158_vm2, %v713_v33  ;;  %v714_v37 = vpack.c.bf16 %v4495_v34, %v4495_v34  ;;  %v710_v6 = vsel %vm158_vm2, %v4495_v34, 0.0 }
 0x719   :  { %4105 = vmatpush3.bf16.xpose.msra.mxu1 %v823_v36  ;;  %4106 = vmatprep.mubr.msk.bf16.mxu1 %vm4695_vm1, %v4694_v15 }
 0x71a   :  { %4101 = vmatmul.mubr.msk.bf16.vlgmr.msra.gmra.mrb[24].mxu0 %vm158_vm2, %v714_v37  ;;  %4116 = vmatprep.subr.bf16.mxu1 %v4694_v15 }
 0x71b   :  { %4111 = vmatpush3.bf16.xpose.msra.mxu0 %v873_v38  ;;  %4112 = vmatprep.mubr.msk.bf16.mxu0 %vm4695_vm1, %v4694_v15  ;;  %v4438_v38 = vld [vmem:[#allocation2 + $0x4] ss:$36 sps:$4 sm:$0xff]  }
 0x71c   :  { %4122 = vmatprep.subr.bf16.mxu0 %v4694_v15 }
 0x720   :  { %4107 = vmatmul.mubr.msk.bf16.vlgmr.msra.gmra.mrb[24].mxu1 %vm158_vm2, %v816_v40  ;;  %v4439_v40 = vld [vmem:[#allocation2 + $0x4c] ss:$36 sps:$4 sm:$0xff]  }
 0x721   :  { %4118 = vmatprep.mubr.msk.bf16.mxu1 %vm4695_vm1, %v4694_v15 }
 0x722   :  { %4113 = vmatmul.mubr.msk.bf16.vlgmr.msra.gmra.mrb[28].mxu0 %vm158_vm2, %v866_v41 }
 0x723   :  { %4124 = vmatprep.mubr.msk.bf16.mxu0 %vm4695_vm1, %v4694_v15 }
 0x7eb   :  { %v4942_v43 = vpop.f32.mrb[20].mxu1 }
 0x7ec   :  { %v4096_v44 = vpop.f32.mrb[21].mxu1 }
 0x7ed   :  { %v760_v45 = vpop.f32.mrb[22].mxu1  ;;  %v4944_v46 = vpop.f32.mrb[24].mxu0 }
 0x7ee   :  { %v4097_v48 = vpop.f32.mrb[23].mxu1  ;;  %v4102_v49 = vpop.f32.mrb[25].mxu0 }
 0x7ef   :  { %v808_v50 = vpop.f32.mrb[26].mxu0 }
 0x7f0   :  { %v4103_v51 = vpop.f32.mrb[27].mxu0 }
 0x7f3   :  { %v859_v53 = vpop.f32.mrb[24].mxu1 }
 0x7f4   :  { %v860_v55 = vadd.f32 %v859_v53, %v4808_v47  ;;  %v4108_v56 = vpop.f32.mrb[25].mxu1 }
 0x7f5   :  { %v862_v57 = vpop.f32.mrb[26].mxu1  ;;  %v909_v58 = vpop.f32.mrb[28].mxu0 }
 0x7f6   :  { %v910_v59 = vadd.f32 %v909_v58, %v4808_v47  ;;  %v4109_v60 = vpop.f32.mrb[27].mxu1  ;;  %v4114_v61 = vpop.f32.mrb[29].mxu0  ;;  %v915_v62 = vsel %vm158_vm2, %v860_v55, -inf  ;;  %v487_v47 = vsel %vm158_vm2, %v4882_v52, 0.0 }
 0x7f7   :  { %916 = vmax.xlane.f32.xlu0 %v915_v62  ;;  %v912_v63 = vpop.f32.mrb[30].mxu0 }
 0x7f8   :  { %v4115_v1 = vpop.f32.mrb[31].mxu0  ;;  %v918_v2 = vsel %vm158_vm2, %v910_v59, -inf }
 0x7f9   :  { %919 = vmax.xlane.f32.xlu1 %v918_v2 }
 0x80a   :  { %983 = vrot.lane.b32.xlu1 %v4787_v42, %s4706_s28 }
 0x80d   :  { %935 = vrot.lane.b32.xlu0 %v4785_v39, %s4706_s28 }
 0x82c   :  { %488 = vadd.xlane.f32.xlu0 %v487_v47 }
 0x82e   :  { %491 = vadd.xlane.f32.xlu1 %v490_v4 }
 0x830   :  { %708 = vadd.xlane.f32.xlu0 %v707_v5 }
 0x834   :  { %711 = vadd.xlane.f32.xlu0 %v710_v6 }
 0x884   :  { %v917_v7 = vpop.xlane.xlu0 %916 }
 0x885   :  { %v921_v9 = vsub.f32 %v860_v55, %v917_v7 }
 0x886   :  { %v920_v42 = vpop.xlane.xlu1 %919 }
 0x887   :  { %v923_v11 = vmul.f32 1.442695, %v921_v9  ;;  %v922_v12 = vsub.f32 %v910_v59, %v920_v42 }
 0x888   :  { %v936_v39 = vpop.permute.xlu0 %935 }
 0x889   :  { %4496 = vpow2.f32 %v923_v11  ;;  %v925_v13 = vmul.f32 1.442695, %v922_v12  ;;  %v941_v52 = vsel %vm279_vm3, %v936_v39, 0 }
 0x88a   :  { %4117 = vmatpush3.bf16.msra.mxu1 %v941_v52  ;;  %v984_v14 = vpop.permute.xlu1 %983 }
 0x88b   :  { %4498 = vpow2.f32 %v925_v13  ;;  %v989_v54 = vsel %vm279_vm3, %v984_v14, 0  ;;  %4128 = vmatprep.subr.bf16.mxu1 %v4694_v15 }
 0x88c   :  { %4123 = vmatpush3.bf16.msra.mxu0 %v989_v54 }
 0x88d   :  { %4136 = vmatprep.subr.bf16.mxu0 %v4694_v15 }
 0x893   :  { %v4497_v16 = vpop.eup %4496 }
 0x894   :  { %v927_v17 = vsel %vm158_vm2, %v4497_v16, 0.0  ;;  %v933_v18 = vpack.c.bf16 %v4497_v16, %v4497_v16  ;;  %v4442_v16 = vld [vmem:[#allocation2 + $0x54] ss:$36 sps:$4 sm:$0xff]  }
 0x895   :  { %v4499_v19 = vpop.eup %4498  ;;  %928 = vadd.xlane.f32.xlu0 %v927_v17  ;;  %v4443_v17 = vld [vmem:[#allocation2 + $0x50] ss:$36 sps:$4 sm:$0xff]  }
 0x896   :  { %4119 = vmatmul.mubr.msk.bf16.vlgmr.msra.gmra.mrb[28].mxu1 %vm158_vm2, %v933_v18  ;;  %v930_v20 = vsel %vm158_vm2, %v4499_v19, 0.0  ;;  %v934_v22 = vpack.c.bf16 %v4499_v19, %v4499_v19  ;;  %v4640_v18 = vld [vmem:[%s5506_s0] sm:$0xff]  ;;  %v4641_v19 = vld [vmem:[%s5506_s0 + $0x8] sm:$0xff] }
 0x897   :  { %931 = vadd.xlane.f32.xlu1 %v930_v20  ;;  %4132 = vmatprep.mubr.msk.bf16.mxu1 %vm4695_vm1, %v4694_v15  ;;  %v1207_v20 = vpack.c.bf16 %v4641_v19, %v4640_v18 }
 0x898   :  { %4125 = vmatmul.mubr.msk.bf16.vlgmr.msra.gmra.mrb[32].mxu0 %vm158_vm2, %v934_v22  ;;  %4129 = vmatpush3.bf16.msra.mxu1 %v4438_v38  ;;  %v3768_v22 = vld [vmem:[%s5510_s4 + $0x3] ss:$0 sm:$0xff] }
 0x899   :  { %267 = vadd.xlane.f32.xlu0 %v266_v23  ;;  %4140 = vmatprep.mubr.msk.bf16.mxu0 %vm4695_vm1, %v4694_v15 }
 0x89a   :  { %4130 = vmatprep.subr.bf16.mxu1 %v4694_v15 }
 0x89b   :  { %270 = vadd.xlane.f32.xlu1 %v269_v25 }
 0x89c   :  { %4131 = vmatpush3.bf16.msra.mxu1 %v4439_v40 }
 0x89d   :  { %4144 = vmatprep.subr.bf16.mxu1 %v4694_v15 }
 0x8b9   :  { %v489_v26 = vpop.xlane.xlu0 %488 }
 0x8ba   :  { %4500 = vrcp.f32 %v489_v26 }
 0x8bb   :  { %v492_v27 = vpop.xlane.xlu1 %491 }
 0x8bc   :  { %4502 = vrcp.f32 %v492_v27 }
 0x8bd   :  { %v709_v28 = vpop.xlane.xlu0 %708 }
 0x8be   :  { %4504 = vrcp.f32 %v709_v28 }
 0x8c1   :  { %v712_v29 = vpop.xlane.xlu0 %711 }
 0x8c2   :  { %4506 = vrcp.f32 %v712_v29 }
 0x8c4   :  { %v4501_v30 = vpop.eup %4500 }
 0x8c5   :  { %v593_v8 = vmul.f32 %v4501_v30, %v4910_v0 }
 0x8c6   :  { %v4503_v31 = vpop.eup %4502 }
 0x8c7   :  { %v594_v32 = vmul.f32 %v4503_v31, %v4912_v3 }
 0x8c8   :  { %v4505_v34 = vpop.eup %4504 }
 0x8c9   :  { %v4406_v33 = vpack.i.bf16 %v594_v32, %v593_v8  ;;  %v813_v35 = vmul.f32 %v4505_v34, %v4942_v43 }
 0x8cb   :  { %4407 = vrot.lane.b32.xlu0 %v4406_v33, %s4707_s29 }
 0x8cc   :  { %v4507_v10 = vpop.eup %4506 }
 0x8cd   :  { %v814_v36 = vmul.f32 %v4507_v10, %v4944_v46 }
 0x8cf   :  { %v4411_v37 = vpack.i.bf16 %v814_v36, %v813_v35  ;;  %v4444_v35 = vld [vmem:[#allocation2 + $0x10] ss:$36 sps:$4 sm:$0xff]   ;;  %v4445_v36 = vld [vmem:[#allocation2 + $0x58] ss:$36 sps:$4 sm:$0xff]  }
 0x8d1   :  { %4412 = vrot.lane.b32.xlu1 %v4411_v37, %s4708_s30 }
 0x922   :  { %v929_v0 = vpop.xlane.xlu0 %928 }
 0x923   :  { %4508 = vrcp.f32 %v929_v0 }
 0x924   :  { %v932_v3 = vpop.xlane.xlu1 %931 }
 0x925   :  { %4510 = vrcp.f32 %v932_v3 }
 0x926   :  { %v268_v58 = vpop.xlane.xlu0 %267 }
 0x927   :  { %4512 = vrcp.f32 %v268_v58 }
 0x928   :  { %v271_v59 = vpop.xlane.xlu1 %270 }
 0x929   :  { %4514 = vrcp.f32 %v271_v59 }
 0x92d   :  { %v4509_v43 = vpop.eup %4508 }
 0x92f   :  { %v4511_v45 = vpop.eup %4510 }
 0x931   :  { %v4513_v61 = vpop.eup %4512 }
 0x932   :  { %v373_v5 = vmul.f32 %v4513_v61, %v4862_v21  ;;  %v4440_v21 = vld [vmem:[#allocation2 + $0xc] ss:$36 sps:$4 sm:$0xff]  }
 0x933   :  { %v4515_v63 = vpop.eup %4514 }
 0x934   :  { %v374_v6 = vmul.f32 %v4515_v63, %v4864_v24  ;;  %v4441_v24 = vld [vmem:[#allocation2 + $0x8] ss:$36 sps:$4 sm:$0xff]  }
 0x935   :  { %4137 = vmatpush3.bf16.msra.mxu0 %v4441_v24 }
 0x936   :  { %4138 = vmatprep.subr.bf16.mxu0 %v4694_v15 }
 0x939   :  { %4139 = vmatpush3.bf16.msra.mxu0 %v4443_v17 }
 0x93a   :  { %4152 = vmatprep.subr.bf16.mxu0 %v4694_v15 }
 0x93d   :  { %v4408_v60 = vpop.permute.xlu0 %4407 }
 0x93e   :  { %v4410_v1 = vunpack.i.h.bf16 %v4408_v60  ;;  %v4409_v2 = vunpack.i.l.bf16 %v4408_v60  ;;  %v3780_v60 = vld [vmem:[%s5510_s4 + $0x4] ss:$0 sm:$0xff] }
 0x940   :  { %v1059_v9 = vsel %vm158_vm2, %v373_v5, %v4409_v2  ;;  %v1060_v42 = vsel %vm158_vm2, %v374_v6, %v4410_v1 }
 0x943   :  { %v4413_v62 = vpop.permute.xlu1 %4412 }
 0x944   :  { %v4415_v47 = vunpack.i.h.bf16 %v4413_v62  ;;  %v4414_v4 = vunpack.i.l.bf16 %v4413_v62 }
 0x946   :  { %v1063_v39 = vsel %vm1061_vm4, %v1060_v42, %v4415_v47  ;;  %v1062_v13 = vsel %vm1061_vm4, %v1059_v9, %v4414_v4 }
 0x969   :  { %v977_v41 = vpop.f32.mrb[28].mxu1 }
 0x96a   :  { %v4120_v44 = vpop.f32.mrb[29].mxu1  ;;  %v1033_v49 = vmul.f32 %v4509_v43, %v977_v41 }
 0x96b   :  { %v980_v46 = vpop.f32.mrb[30].mxu1  ;;  %v1025_v48 = vpop.f32.mrb[32].mxu0 }
 0x96c   :  { %v1034_v50 = vmul.f32 %v4511_v45, %v1025_v48  ;;  %v4121_v51 = vpop.f32.mrb[31].mxu1  ;;  %v4126_v53 = vpop.f32.mrb[33].mxu0 }
 0x96d   :  { %v1028_v55 = vpop.f32.mrb[34].mxu0 }
 0x96e   :  { %v4416_v56 = vpack.i.bf16 %v1034_v50, %v1033_v49  ;;  %v4127_v57 = vpop.f32.mrb[35].mxu0 }
 0x970   :  { %4417 = vrot.lane.b32.xlu1 %v4416_v56, %s4709_s6 }
 0x9e2   :  { %v4418_v7 = vpop.permute.xlu1 %4417 }
 0x9e3   :  { %v4420_v11 = vunpack.i.h.bf16 %v4418_v7  ;;  %v4419_v12 = vunpack.i.l.bf16 %v4418_v7 }
 0x9e5   :  { %v1066_v52 = vsel %vm1064_vm5, %v1063_v39, %v4420_v11  ;;  %v1065_v14 = vsel %vm1064_vm5, %v1062_v13, %v4419_v12 }
 0x9e6   :  { %v1071_v54 = vpack.c.bf16 %v1066_v52, %v1065_v14 }
 0x9e8   :  { %4133 = vmatmul.mubr.msk.bf16.vlgmr.msra.gmra.mrb[32].mxu1 %vm41_vm0, %v1071_v54 }
 0x9e9   :  { %4145 = vmatpush3.bf16.msra.mxu1 %v4440_v21  ;;  %4148 = vmatprep.mubr.msk.bf16.mxu1 %vm4695_vm1, %v4694_v15 }
 0x9ea   :  { %4146 = vmatprep.subr.bf16.mxu1 %v4694_v15 }
 0x9ed   :  { %4147 = vmatpush3.bf16.msra.mxu1 %v4442_v16 }
 0x9ee   :  { %4160 = vmatprep.subr.bf16.mxu1 %v4694_v15 }
 0x9f0   :  { %4149 = vmatmul.mubr.msk.bf16.vlgmr.msra.gmra.mrb[36].mxu1 %vm41_vm0, %v1207_v20 }
 0x9f1   :  { %4164 = vmatprep.mubr.msk.bf16.mxu1 %vm4695_vm1, %v4694_v15 }
 0xabb   :  { %v1128_v23 = vpop.f32.mrb[32].mxu1 }
 0xabc   :  { %v1129_v25 = vadd.f32 %v3768_v22, %v1128_v23  ;;  %v4134_v26 = vpop.f32.mrb[33].mxu1 }
 0xabd   :  { %v1131_v27 = vpop.f32.mrb[34].mxu1 }
 0xabe   :  { %v1132_v28 = vadd.f32 %v3768_v22, %v1131_v27  ;;  %v4135_v29 = vpop.f32.mrb[35].mxu1  ;;  %v1135_v30 = vmax.f32 %v1129_v25, 0.0 }
 0xac0   :  { %v1136_v31 = vmax.f32 %v1132_v28, 0.0 }
 0xac2   :  { %v1150_v8 = vpack.c.bf16 %v1136_v31, %v1135_v30 }
 0xac3   :  { %v1257_v32 = vpop.f32.mrb[36].mxu1 }
 0xac4   :  { %4141 = vmatmul.mubr.msk.bf16.vlgmr.msra.gmra.mrb[36].mxu0 %vm41_vm0, %v1150_v8  ;;  %v4150_v33 = vpop.f32.mrb[37].mxu1 }
 0xac5   :  { %4156 = vmatprep.mubr.msk.bf16.mxu0 %vm4695_vm1, %v4694_v15  ;;  %v1260_v34 = vpop.f32.mrb[38].mxu1  ;;  %4153 = vmatpush3.bf16.msra.mxu0 %v4444_v35 }
 0xac6   :  { %v4151_v10 = vpop.f32.mrb[39].mxu1  ;;  %4154 = vmatprep.subr.bf16.mxu0 %v4694_v15 }
 0xac9   :  { %4155 = vmatpush3.bf16.msra.mxu0 %v4445_v36 }
 0xaca   :  { %4168 = vmatprep.subr.bf16.mxu0 %v4694_v15 }
 0xb97   :  { %v1200_v37 = vpop.f32.mrb[36].mxu0 }
 0xb98   :  { %v1264_v38 = vadd.f32 %v1257_v32, %v1200_v37  ;;  %v4142_v0 = vpop.f32.mrb[37].mxu0 }
 0xb99   :  { %v1203_v3 = vpop.f32.mrb[38].mxu0 }
 0xb9a   :  { %v3778_v40 = vmul.f32 -1.442695, %v1264_v38  ;;  %v1265_v41 = vadd.f32 %v1260_v34, %v1203_v3  ;;  %v4143_v43 = vpop.f32.mrb[39].mxu0 }
 0xb9c   :  { %4516 = vpow2.f32 %v3778_v40  ;;  %v3779_v44 = vmul.f32 -1.442695, %v1265_v41  ;;  %v3787_v40 = vld [vmem:[%s5510_s4 + $0x6] ss:$0 sm:$0xff] }
 0xb9e   :  { %4518 = vpow2.f32 %v3779_v44  ;;  %v4446_v44 = vld [vmem:[#allocation2 + $0x14] ss:$36 sps:$4 sm:$0xff]  }
 0xb9f   :  { %4161 = vmatpush3.bf16.msra.mxu1 %v4446_v44 }
 0xba0   :  { %4162 = vmatprep.subr.bf16.mxu1 %v4694_v15 }
 0xba6   :  { %v4517_v45 = vpop.eup %4516 }
 0xba7   :  { %v1272_v46 = vadd.f32 1.0, %v4517_v45  ;;  %v4447_v45 = vld [vmem:[#allocation2 + $0x5c] ss:$36 sps:$4 sm:$0xff]  }
 0xba8   :  { %v4519_v48 = vpop.eup %4518  ;;  %4163 = vmatpush3.bf16.msra.mxu1 %v4447_v45 }
 0xba9   :  { %4520 = vrcp.f32 %v1272_v46  ;;  %v1273_v49 = vadd.f32 1.0, %v4519_v48  ;;  %4180 = vmatprep.subr.bf16.mxu1 %v4694_v15 }
 0xbab   :  { %4522 = vrcp.f32 %v1273_v49 }
 0xbb3   :  { %v4521_v50 = vpop.eup %4520 }
 0xbb4   :  { %v1300_v53 = vmul.f32 %v4640_v18, %v4521_v50 }
 0xbb5   :  { %v4523_v51 = vpop.eup %4522 }
 0xbb6   :  { %v1301_v55 = vmul.f32 %v4641_v19, %v4523_v51 }
 0xbb8   :  { %v1302_v56 = vpack.c.bf16 %v1301_v55, %v1300_v53  ;;  %v4448_v55 = vld [vmem:[%s5509_s3] sm:$0xff]  }
 0xbba   :  { %4157 = vmatmul.mubr.msk.bf16.vlgmr.msra.gmra.mrb[40].mxu0 %vm41_vm0, %v1302_v56 }
 0xbbb   :  { %4176 = vmatprep.mubr.msk.bf16.mxu0 %vm4695_vm1, %v4694_v15  ;;  %4169 = vmatpush3.bf16.msra.mxu0 %v4448_v55 }
 0xbbc   :  { %4170 = vmatprep.subr.bf16.mxu0 %v4694_v15 }
 0xc8d   :  { %v1352_v57 = vpop.f32.mrb[40].mxu0 }
 0xc8e   :  { %1361 = vrot.lane.b32.xlu1 %v1352_v57, %s4697_s19  ;;  %v4158_v58 = vpop.f32.mrb[41].mxu0 }
 0xc8f   :  { %v1355_v59 = vpop.f32.mrb[42].mxu0  ;;  %v4449_v58 = vld [vmem:[%s5509_s3 + $0x8] sm:$0xff]  }
 0xc90   :  { %1363 = vrot.lane.b32.xlu0 %v1355_v59, %s4697_s19  ;;  %v4159_v61 = vpop.f32.mrb[43].mxu0  ;;  %4171 = vmatpush3.bf16.msra.mxu0 %v4449_v58 }
 0xc91   :  { %4172 = vmatprep.subr.bf16.mxu0 %v4694_v15 }
 0xc92   :  { %1283 = vrot.lane.b32.xlu1 %v3780_v60, %s4710_s13 }
 0xc94   :  { %1375 = vrot.lane.b32.xlu0 %v4640_v18, %s4710_s13 }
 0xc96   :  { %1377 = vrot.lane.b32.xlu1 %v4641_v19, %s4710_s13 }
 0xd00   :  { %v1362_v62 = vpop.permute.xlu1 %1361 }
 0xd01   :  { %v1367_v63 = vadd.f32 %v1362_v62, %v1200_v37 }
 0xd02   :  { %v1364_v1 = vpop.permute.xlu0 %1363 }
 0xd03   :  { %4524 = vtanh.f32 %v1367_v63  ;;  %v1368_v2 = vadd.f32 %v1364_v1, %v1203_v3 }
 0xd04   :  { %v1284_v5 = vpop.permute.xlu1 %1283 }
 0xd05   :  { %4526 = vtanh.f32 %v1368_v2  ;;  %v1286_v6 = vadd.f32 %v1284_v5, %v1264_v38  ;;  %v1287_v7 = vadd.f32 %v1284_v5, %v1265_v41  ;;  %v3786_v41 = vld [vmem:[%s5510_s4 + $0x5] ss:$0 sm:$0xff] }
 0xd06   :  { %v1376_v21 = vpop.permute.xlu0 %1375 }
 0xd07   :  { %v3781_v9 = vmul.f32 -1.442695, %v1286_v6  ;;  %v3782_v42 = vmul.f32 -1.442695, %v1287_v7  ;;  %v4450_v6 = vld [vmem:[%s5509_s3 + $0x10] sm:$0xff]   ;;  %v4451_v7 = vld [vmem:[%s5509_s3 + $0x18] sm:$0xff]  }
 0xd08   :  { %v1378_v24 = vpop.permute.xlu1 %1377  ;;  %4173 = vmatpush3.bf16.msra.mxu0 %v4450_v6 }
 0xd09   :  { %4528 = vpow2.f32 %v3781_v9  ;;  %4174 = vmatprep.subr.bf16.mxu0 %v4694_v15  ;;  %v3788_v9 = vld [vmem:[%s5510_s4 + $0x7] ss:$0 sm:$0xff] }
 0xd0a   :  { %4530 = vpow2.f32 %v3782_v42 }
 0xd0c   :  { %4175 = vmatpush3.bf16.msra.mxu0 %v4451_v7 }
 0xd0d   :  { %v4525_v47 = vpop.eup %4524  ;;  %4196 = vmatprep.subr.bf16.mxu0 %v4694_v15 }
 0xd0e   :  { %1385 = vrot.lane.b32.xlu0 %v4525_v47, %s4696_s16 }
 0xd0f   :  { %v4527_v4 = vpop.eup %4526 }
 0xd10   :  { %1387 = vrot.lane.b32.xlu1 %v4527_v4, %s4696_s16 }
 0xd13   :  { %v4529_v11 = vpop.eup %4528 }
 0xd14   :  { %v4531_v12 = vpop.eup %4530  ;;  %v1294_v39 = vadd.f32 1.0, %v4529_v11 }
 0xd15   :  { %v1295_v13 = vadd.f32 1.0, %v4531_v12 }
 0xd16   :  { %4532 = vrcp.f32 %v1294_v39 }
 0xd17   :  { %4534 = vrcp.f32 %v1295_v13 }
 0xd20   :  { %v4533_v52 = vpop.eup %4532 }
 0xd21   :  { %v4535_v14 = vpop.eup %4534  ;;  %v1371_v54 = vsub.f32 1.0, %v4533_v52 }
 0xd22   :  { %v1372_v16 = vsub.f32 1.0, %v4535_v14 }
 0xd23   :  { %v1381_v18 = vmul.f32 %v1376_v21, %v1371_v54 }
 0xd24   :  { %v1382_v22 = vmul.f32 %v1378_v24, %v1372_v16  ;;  %v4452_v24 = vld [vmem:[#allocation2 + $0x18] ss:$36 sps:$4 sm:$0xff]   ;;  %v4453_v16 = vld [vmem:[#allocation2 + $0x60] ss:$36 sps:$4 sm:$0xff]  }
 0xd80   :  { %v1386_v17 = vpop.permute.xlu0 %1385 }
 0xd81   :  { %v1391_v19 = vmul.f32 %v4533_v52, %v1386_v17  ;;  %v3792_v17 = vld [vmem:[%s5510_s4 + $0x8] ss:$0 sm:$0xff] }
 0xd82   :  { %v1388_v20 = vpop.permute.xlu1 %1387 }
 0xd83   :  { %v5030_v23 = vadd.f32 %v1391_v19, %v1381_v18  ;;  %v1392_v25 = vmul.f32 %v4535_v14, %v1388_v20 }
 0xd85   :  { %v5032_v26 = vadd.f32 %v1392_v25, %v1382_v22  ;;  %1399 = vrot.lane.b32.xlu0 %v5030_v23, %s4696_s16 }
 0xd87   :  { %1401 = vrot.lane.b32.xlu1 %v5032_v26, %s4696_s16  ;;  %v1689_v43 = vpack.c.bf16 %v5032_v26, %v5030_v23 }
 0xdf7   :  { %v5038_v27 = vpop.permute.xlu0 %1399 }
 0xdf8   :  { %v1405_v28 = vsel %vm41_vm0, %v5038_v27, 0.0 }
 0xdf9   :  { %v5042_v29 = vpop.permute.xlu1 %1401  ;;  %1406 = vadd.xlane.f32.xlu0 %v1405_v28 }
 0xdfa   :  { %v1408_v30 = vsel %vm41_vm0, %v5042_v29, 0.0 }
 0xdfb   :  { %1409 = vadd.xlane.f32.xlu1 %v1408_v30 }
 0xe86   :  { %v1407_v31 = vpop.xlane.xlu0 %1406 }
 0xe87   :  { %v1411_v8 = vmul.f32 0.03125, %v1407_v31 }
 0xe88   :  { %v1410_v32 = vpop.xlane.xlu1 %1409 }
 0xe89   :  { %v1413_v33 = vsub.f32 %v5030_v23, %v1411_v8  ;;  %v1412_v34 = vmul.f32 0.03125, %v1410_v32  ;;  %v4454_v8 = vld [vmem:[#allocation2 + $0x1c] ss:$36 sps:$4 sm:$0xff]  }
 0xe8b   :  { %v1414_v10 = vsub.f32 %v5032_v26, %v1412_v34  ;;  %v1415_v35 = vmul.f32 %v1413_v33, %v1413_v33 }
 0xe8d   :  { %1419 = vrot.lane.b32.xlu0 %v1415_v35, %s4696_s16  ;;  %v1416_v36 = vmul.f32 %v1414_v10, %v1414_v10  ;;  %v4457_v35 = vld [vmem:[#allocation2 + $0x68] ss:$36 sps:$4 sm:$0xff]  }
 0xe8f   :  { %1421 = vrot.lane.b32.xlu1 %v1416_v36, %s4696_s16 }
 0xeff   :  { %v1420_v37 = vpop.permute.xlu0 %1419 }
 0xf00   :  { %v1425_v38 = vsel %vm41_vm0, %v1420_v37, 0.0 }
 0xf01   :  { %v1422_v0 = vpop.permute.xlu1 %1421  ;;  %1426 = vadd.xlane.f32.xlu0 %v1425_v38 }
 0xf02   :  { %v1428_v3 = vsel %vm41_vm0, %v1422_v0, 0.0 }
 0xf03   :  { %1429 = vadd.xlane.f32.xlu1 %v1428_v3 }
 0xf14   :  { %1454 = vrot.lane.b32.xlu1 %v3787_v40, %s4710_s13 }
 0xf17   :  { %1444 = vrot.lane.b32.xlu0 %v3786_v41, %s4710_s13 }
 0xf18   :  { %1691 = vrot.lane.b32.xlu1 %v1689_v43, %s4696_s16 }
 0xf8e   :  { %v1427_v46 = vpop.xlane.xlu0 %1426 }
 0xf8f   :  { %v1431_v48 = vmul.f32 0.03125, %v1427_v46 }
 0xf90   :  { %v1430_v49 = vpop.xlane.xlu1 %1429 }
 0xf91   :  { %v1433_v50 = vadd.f32 1e-05, %v1431_v48  ;;  %v1432_v51 = vmul.f32 0.03125, %v1430_v49 }
 0xf92   :  { %v1445_v57 = vpop.permute.xlu0 %1444 }
 0xf93   :  { %4536 = vrsqrt.f32 %v1433_v50  ;;  %v1434_v53 = vadd.f32 1e-05, %v1432_v51 }
 0xf94   :  { %v1455_v1 = vpop.permute.xlu1 %1454 }
 0xf95   :  { %4538 = vrsqrt.f32 %v1434_v53 }
 0xf98   :  { %v1692_v34 = vpop.permute.xlu1 %1691 }
 0xf9d   :  { %v4537_v56 = vpop.eup %4536 }
 0xf9e   :  { %v1437_v59 = vmul.f32 %v4537_v56, %v1413_v33  ;;  %v4455_v33 = vld [vmem:[#allocation2 + $0x64] ss:$36 sps:$4 sm:$0xff]  }
 0xf9f   :  { %v4539_v60 = vpop.eup %4538 }
 0xfa0   :  { %v1438_v61 = vmul.f32 %v4539_v60, %v1414_v10  ;;  %v1447_v62 = vmul.f32 %v1445_v57, %v1437_v59  ;;  %v4456_v10 = vld [vmem:[#allocation2 + $0x20] ss:$36 sps:$4 sm:$0xff]  }
 0xfa2   :  { %v1448_v63 = vmul.f32 %v1445_v57, %v1438_v61  ;;  %v1457_v2 = vadd.f32 %v1455_v1, %v1447_v62 }
 0xfa4   :  { %v1458_v47 = vadd.f32 %v1455_v1, %v1448_v63  ;;  %v3806_v63 = vld [vmem:[%s5510_s4 + $0x9] ss:$0 sm:$0xff] }
 0xfa6   :  { %v1463_v4 = vpack.c.bf16 %v1458_v47, %v1457_v2 }
 0xfa8   :  { %1472 = vrot.lane.b32.xlu0 %v1463_v4, %s4696_s16 }
0x101a   :  { %v1473_v5 = vpop.permute.xlu0 %1472 }
0x101b   :  { %4165 = vmatmul.mubr.msk.bf16.vlgmr.msra.gmra.mrb[40].mxu1 %vm41_vm0, %v1473_v5 }
0x101c   :  { %4184 = vmatprep.mubr.msk.bf16.mxu1 %vm4695_vm1, %v4694_v15  ;;  %4181 = vmatpush3.bf16.msra.mxu1 %v4452_v24 }
0x101d   :  { %4182 = vmatprep.subr.bf16.mxu1 %v4694_v15 }
0x1020   :  { %4183 = vmatpush3.bf16.msra.mxu1 %v4453_v16 }
0x1021   :  { %4188 = vmatprep.subr.bf16.mxu1 %v4694_v15 }
0x10ee   :  { %v1523_v42 = vpop.f32.mrb[40].mxu1 }
0x10ef   :  { %v1524_v11 = vadd.f32 %v3788_v9, %v1523_v42  ;;  %v4166_v12 = vpop.f32.mrb[41].mxu1 }
0x10f0   :  { %v1526_v39 = vpop.f32.mrb[42].mxu1 }
0x10f1   :  { %v1527_v13 = vadd.f32 %v3788_v9, %v1526_v39  ;;  %v4167_v52 = vpop.f32.mrb[43].mxu1  ;;  %v1530_v14 = vmax.f32 %v1524_v11, 0.0 }
0x10f3   :  { %v1531_v21 = vmax.f32 %v1527_v13, 0.0 }
0x10f5   :  { %v1540_v54 = vpack.c.bf16 %v1531_v21, %v1530_v14 }
0x10f7   :  { %4177 = vmatmul.mubr.msk.bf16.vlgmr.msra.gmra.mrb[44].mxu0 %vm1572_vm6, %v1540_v54 }
0x10f8   :  { %4200 = vmatprep.mubr.msk.bf16.mxu0 %vm4695_vm1, %v4694_v15  ;;  %4197 = vmatpush3.bf16.msra.mxu0 %v4456_v10 }
0x10f9   :  { %4198 = vmatprep.subr.bf16.mxu0 %v4694_v15 }
0x10fc   :  { %4199 = vmatpush3.bf16.msra.mxu0 %v4457_v35 }
0x10fd   :  { %4212 = vmatprep.subr.bf16.mxu0 %v4694_v15 }
0x11ca   :  { %v1610_v18 = vpop.f32.mrb[44].mxu0 }
0x11cb   :  { %v1611_v19 = vadd.f32 %v3792_v17, %v1610_v18  ;;  %v4178_v20 = vpop.f32.mrb[45].mxu0 }
0x11cc   :  { %v1613_v22 = vpop.f32.mrb[46].mxu0 }
0x11cd   :  { %v1614_v25 = vadd.f32 %v3792_v17, %v1613_v22  ;;  %v4179_v28 = vpop.f32.mrb[47].mxu0  ;;  %v1617_v30 = vmax.f32 %v1611_v19, 0.0 }
0x11cf   :  { %v1618_v31 = vmax.f32 %v1614_v25, 0.0 }
0x11d1   :  { %v1632_v32 = vpack.c.bf16 %v1618_v31, %v1617_v30 }
0x11d3   :  { %4185 = vmatmul.mubr.msk.bf16.vlgmr.msra.gmra.mrb[44].mxu1 %vm41_vm0, %v1632_v32 }
0x11d4   :  { %4189 = vmatpush3.bf16.msra.mxu1 %v4454_v8  ;;  %4192 = vmatprep.mubr.msk.bf16.mxu1 %vm4695_vm1, %v4694_v15 }
0x11d5   :  { %4190 = vmatprep.subr.bf16.mxu1 %v4694_v15 }
0x11d8   :  { %4191 = vmatpush3.bf16.msra.mxu1 %v4455_v33 }
0x11d9   :  { %4204 = vmatprep.subr.bf16.mxu1 %v4694_v15 }
0x11db   :  { %4193 = vmatmul.mubr.msk.bf16.vlgmr.msra.gmra.mrb[48].mxu1 %vm41_vm0, %v1692_v34 }
0x11dc   :  { %4208 = vmatprep.mubr.msk.bf16.mxu1 %vm4695_vm1, %v4694_v15 }
0x12a6   :  { %v1682_v36 = vpop.f32.mrb[44].mxu1 }
0x12a7   :  { %v4186_v37 = vpop.f32.mrb[45].mxu1 }
0x12a8   :  { %v1685_v38 = vpop.f32.mrb[46].mxu1 }
0x12a9   :  { %v4187_v0 = vpop.f32.mrb[47].mxu1 }
0x12ae   :  { %v1742_v3 = vpop.f32.mrb[48].mxu1 }
0x12af   :  { %v1749_v40 = vadd.f32 %v1742_v3, %v1682_v36  ;;  %v4194_v41 = vpop.f32.mrb[49].mxu1 }
0x12b0   :  { %v1745_v43 = vpop.f32.mrb[50].mxu1  ;;  %v3815_v41 = vld [vmem:[%s5510_s4 + $0xb] ss:$0 sm:$0xff] }
0x12b1   :  { %v3804_v44 = vmul.f32 -1.442695, %v1749_v40  ;;  %v1750_v45 = vadd.f32 %v1745_v43, %v1685_v38  ;;  %v4195_v46 = vpop.f32.mrb[51].mxu1  ;;  %v3814_v43 = vld [vmem:[%s5510_s4 + $0xa] ss:$0 sm:$0xff] }
0x12b3   :  { %4540 = vpow2.f32 %v3804_v44  ;;  %v3805_v48 = vmul.f32 -1.442695, %v1750_v45  ;;  %v4458_v44 = vld [vmem:[#allocation2 + $0x90] ss:$36 sps:$4 sm:$0xff]  }
0x12b4   :  { %4205 = vmatpush3.bf16.msra.mxu1 %v4458_v44 }
0x12b5   :  { %4542 = vpow2.f32 %v3805_v48  ;;  %4206 = vmatprep.subr.bf16.mxu1 %v4694_v15 }
0x12bd   :  { %v4541_v49 = vpop.eup %4540 }
0x12be   :  { %v1757_v50 = vadd.f32 1.0, %v4541_v49 }
0x12bf   :  { %v4543_v51 = vpop.eup %4542 }
0x12c0   :  { %4544 = vrcp.f32 %v1757_v50  ;;  %v1758_v53 = vadd.f32 1.0, %v4543_v51 }
0x12c2   :  { %4546 = vrcp.f32 %v1758_v53 }
0x12ca   :  { %v4545_v55 = vpop.eup %4544 }
0x12cb   :  { %v1785_v57 = vmul.f32 %v4545_v55, %v5038_v27 }
0x12cc   :  { %v4547_v56 = vpop.eup %4546 }
0x12cd   :  { %v1786_v58 = vmul.f32 %v4547_v56, %v5042_v29 }
0x12cf   :  { %v1787_v59 = vpack.c.bf16 %v1786_v58, %v1785_v57 }
0x12d1   :  { %4201 = vmatmul.mubr.msk.bf16.vlgmr.msra.gmra.mrb[48].mxu0 %vm41_vm0, %v1787_v59 }
0x12d2   :  { %4214 = vmatprep.mubr.msk.bf16.mxu0 %vm4695_vm1, %v4694_v15 }
0x13a4   :  { %v1837_v60 = vpop.f32.mrb[48].mxu0 }
0x13a5   :  { %1846 = vrot.lane.b32.xlu0 %v1837_v60, %s4697_s19  ;;  %v4202_v61 = vpop.f32.mrb[49].mxu0 }
0x13a6   :  { %v1840_v62 = vpop.f32.mrb[50].mxu0 }
0x13a7   :  { %1848 = vrot.lane.b32.xlu1 %v1840_v62, %s4697_s19  ;;  %v4203_v27 = vpop.f32.mrb[51].mxu0 }
0x13a9   :  { %1768 = vrot.lane.b32.xlu0 %v3806_v63, %s4710_s13 }
0x1417   :  { %v1847_v29 = vpop.permute.xlu0 %1846 }
0x1418   :  { %v1852_v1 = vadd.f32 %v1847_v29, %v1682_v36 }
0x1419   :  { %v1849_v2 = vpop.permute.xlu1 %1848 }
0x141a   :  { %4548 = vtanh.f32 %v1852_v1  ;;  %v1853_v47 = vadd.f32 %v1849_v2, %v1685_v38  ;;  %v3817_v2 = vld [vmem:[%s5510_s4 + $0xc] ss:$0 sm:$0xff] }
0x141b   :  { %v1769_v6 = vpop.permute.xlu0 %1768 }
0x141c   :  { %4550 = vtanh.f32 %v1853_v47  ;;  %v1771_v7 = vadd.f32 %v1769_v6, %v1749_v40  ;;  %v1772_v9 = vadd.f32 %v1769_v6, %v1750_v45  ;;  %v4459_v45 = vld [vmem:[#allocation2 + $0xd8] ss:$36 sps:$4 sm:$0xff]  }
0x141d   :  { %4207 = vmatpush3.bf16.msra.mxu1 %v4459_v45 }
0x141e   :  { %v3807_v42 = vmul.f32 -1.442695, %v1771_v7  ;;  %v3808_v11 = vmul.f32 -1.442695, %v1772_v9  ;;  %4218 = vmatprep.subr.bf16.mxu1 %v4694_v15 }
0x1420   :  { %4552 = vpow2.f32 %v3807_v42 }
0x1421   :  { %4554 = vpow2.f32 %v3808_v11 }
0x1424   :  { %v4549_v4 = vpop.eup %4548 }
0x1425   :  { %1862 = vrot.lane.b32.xlu1 %v4549_v4, %s4696_s16 }
0x1426   :  { %v4551_v5 = vpop.eup %4550 }
0x1427   :  { %1864 = vrot.lane.b32.xlu0 %v4551_v5, %s4696_s16 }
0x142a   :  { %v4553_v12 = vpop.eup %4552 }
0x142b   :  { %v4555_v39 = vpop.eup %4554  ;;  %v1779_v13 = vadd.f32 1.0, %v4553_v12 }
0x142c   :  { %v1780_v52 = vadd.f32 1.0, %v4555_v39 }
0x142d   :  { %4556 = vrcp.f32 %v1779_v13 }
0x142e   :  { %4558 = vrcp.f32 %v1780_v52 }
0x1437   :  { %v4557_v14 = vpop.eup %4556 }
0x1438   :  { %v4559_v21 = vpop.eup %4558  ;;  %v1856_v54 = vsub.f32 1.0, %v4557_v14 }
0x1439   :  { %v1857_v24 = vsub.f32 1.0, %v4559_v21 }
0x143a   :  { %v1858_v17 = vmul.f32 %v1856_v54, %v5030_v23 }
0x143b   :  { %v1859_v22 = vmul.f32 %v1857_v24, %v5032_v26 }
0x1497   :  { %v1863_v16 = vpop.permute.xlu1 %1862 }
0x1498   :  { %v1868_v18 = vmul.f32 %v4557_v14, %v1863_v16 }
0x1499   :  { %v1865_v19 = vpop.permute.xlu0 %1864 }
0x149a   :  { %v5120_v20 = vadd.f32 %v1868_v18, %v1858_v17  ;;  %v1869_v25 = vmul.f32 %v4559_v21, %v1865_v19  ;;  %v5191_v17 = vld [vmem:[%s5507_s1] sm:$0xff] }
0x149c   :  { %v5123_v28 = vadd.f32 %v1869_v25, %v1859_v22  ;;  %1877 = vrot.lane.b32.xlu1 %v5120_v20, %s4696_s16 }
0x149e   :  { %1879 = vrot.lane.b32.xlu0 %v5123_v28, %s4696_s16 }
0x150e   :  { %v5129_v30 = vpop.permute.xlu1 %1877 }
0x150f   :  { %v1883_v23 = vsel %vm41_vm0, %v5129_v30, 0.0 }
0x1510   :  { %v5133_v31 = vpop.permute.xlu0 %1879  ;;  %1884 = vadd.xlane.f32.xlu1 %v1883_v23 }
0x1511   :  { %v1886_v26 = vsel %vm41_vm0, %v5133_v31, 0.0 }
0x1512   :  { %1887 = vadd.xlane.f32.xlu0 %v1886_v26 }
0x159d   :  { %v1885_v8 = vpop.xlane.xlu1 %1884 }
0x159e   :  { %v1889_v32 = vmul.f32 0.03125, %v1885_v8 }
0x159f   :  { %v1888_v33 = vpop.xlane.xlu0 %1887 }
0x15a0   :  { %v1891_v34 = vsub.f32 %v5120_v20, %v1889_v32  ;;  %v1890_v10 = vmul.f32 0.03125, %v1888_v33 }
0x15a2   :  { %v1892_v35 = vsub.f32 %v5123_v28, %v1890_v10  ;;  %v1893_v36 = vmul.f32 %v1891_v34, %v1891_v34 }
0x15a4   :  { %1897 = vrot.lane.b32.xlu0 %v1893_v36, %s4696_s16  ;;  %v1894_v37 = vmul.f32 %v1892_v35, %v1892_v35 }
0x15a6   :  { %1899 = vrot.lane.b32.xlu1 %v1894_v37, %s4696_s16 }
0x1616   :  { %v1898_v38 = vpop.permute.xlu0 %1897 }
0x1617   :  { %v1903_v0 = vsel %vm41_vm0, %v1898_v38, 0.0 }
0x1618   :  { %1904 = vadd.xlane.f32.xlu1 %v1903_v0  ;;  %v1900_v3 = vpop.permute.xlu1 %1899 }
0x1619   :  { %v1906_v40 = vsel %vm41_vm0, %v1900_v3, 0.0 }
0x161a   :  { %1907 = vadd.xlane.f32.xlu0 %v1906_v40 }
0x1629   :  { %1932 = vrot.lane.b32.xlu1 %v3815_v41, %s4710_s13 }
0x1630   :  { %1922 = vrot.lane.b32.xlu0 %v3814_v43, %s4710_s13 }
0x16a5   :  { %v1905_v46 = vpop.xlane.xlu1 %1904 }
0x16a6   :  { %v1909_v48 = vmul.f32 0.03125, %v1905_v46 }
0x16a7   :  { %v1908_v49 = vpop.xlane.xlu0 %1907 }
0x16a8   :  { %v1911_v50 = vadd.f32 1e-05, %v1909_v48  ;;  %v1910_v51 = vmul.f32 0.03125, %v1908_v49 }
0x16a9   :  { %v1933_v61 = vpop.permute.xlu1 %1932 }
0x16aa   :  { %4560 = vrsqrt.f32 %v1911_v50  ;;  %v1912_v53 = vadd.f32 1e-05, %v1910_v51 }
0x16ab   :  { %v1923_v56 = vpop.permute.xlu0 %1922 }
0x16ac   :  { %4562 = vrsqrt.f32 %v1912_v53 }
0x16b4   :  { %v4561_v55 = vpop.eup %4560 }
0x16b5   :  { %v1915_v57 = vmul.f32 %v4561_v55, %v1891_v34 }
0x16b6   :  { %v4563_v58 = vpop.eup %4562 }
0x16b7   :  { %v1916_v59 = vmul.f32 %v4563_v58, %v1892_v35  ;;  %v1925_v60 = vmul.f32 %v1923_v56, %v1915_v57 }
0x16b9   :  { %v1926_v62 = vmul.f32 %v1923_v56, %v1916_v59  ;;  %v1935_v63 = vadd.f32 %v1933_v61, %v1925_v60 }
0x16bb   :  { %v1936_v27 = vadd.f32 %v1933_v61, %v1926_v62 }
0x16bd   :  { %v1942_v29 = vpack.c.bf16 %v1936_v27, %v1935_v63 }
0x16bf   :  { %1951 = vrot.lane.b32.xlu1 %v1942_v29, %s4696_s16 }
0x1731   :  { %v1952_v1 = vpop.permute.xlu1 %1951 }
0x1732   :  { %4209 = vmatmul.mubr.msk.bf16.vlgmr.msra.gmra.mrb[52].mxu1 %vm41_vm0, %v1952_v1 }
0x1733   :  { %4220 = vmatprep.mubr.msk.bf16.mxu1 %vm4695_vm1, %v4694_v15 }
0x1805   :  { %v2002_v47 = vpop.f32.mrb[52].mxu1 }
0x1806   :  { %v2003_v4 = vadd.f32 %v3817_v2, %v2002_v47  ;;  %v4210_v5 = vpop.f32.mrb[53].mxu1 }
0x1807   :  { %v2005_v6 = vpop.f32.mrb[54].mxu1 }
0x1808   :  { %v5160_v7 = vpack.c.bf16 %v2003_v4, %v2003_v4  ;;  %v2006_v9 = vadd.f32 %v3817_v2, %v2005_v6  ;;  %v4211_v42 = vpop.f32.mrb[55].mxu1 }
0x180a   :  { %v5162_v11 = vpack.c.bf16 %v2006_v9, %v2006_v9  ;;  %2012 = vrot.lane.b32.xlu0 %v5160_v7, %s4696_s16 }
0x180c   :  { %2061 = vrot.lane.b32.xlu1 %v5162_v11, %s4696_s16 }
0x180e   :  { %2129 = vrot.lane.b32.xlu0 %v5160_v7, %s4697_s19 }
0x1810   :  { %2177 = vrot.lane.b32.xlu1 %v5162_v11, %s4697_s19 }
0x187c   :  { %v2013_v12 = vpop.permute.xlu0 %2012 }
0x187d   :  { %v2018_v39 = vsel %vm158_vm2, %v2013_v12, 0 }
0x187e   :  { %4213 = vmatpush3.bf16.xpose.msra.mxu0 %v2018_v39  ;;  %v2062_v13 = vpop.permute.xlu1 %2061 }
0x187f   :  { %v2067_v52 = vsel %vm158_vm2, %v2062_v13, 0  ;;  %4224 = vmatprep.subr.bf16.mxu0 %v4694_v15 }
0x1880   :  { %4219 = vmatpush3.bf16.xpose.msra.mxu1 %v2067_v52  ;;  %v2130_v14 = vpop.permute.xlu0 %2129 }
0x1881   :  { %4230 = vmatprep.subr.bf16.mxu1 %v4694_v15  ;;  %v2135_v54 = vsel %vm279_vm3, %v2130_v14, 0 }
0x1882   :  { %v2178_v21 = vpop.permute.xlu1 %2177 }
0x1883   :  { %v2183_v24 = vsel %vm279_vm3, %v2178_v21, 0 }
0x1885   :  { %4215 = vmatmul.mubr.msk.bf16.vlgmr.msra.gmra.mrb[52].mxu0 %vm158_vm2, %v5160_v7 }
0x1886   :  { %4225 = vmatpush3.bf16.msra.mxu0 %v2135_v54  ;;  %4226 = vmatprep.mubr.msk.bf16.mxu0 %vm4695_vm1, %v4694_v15 }
0x1887   :  { %4221 = vmatmul.mubr.msk.bf16.vlgmr.msra.gmra.mrb[56].mxu1 %vm158_vm2, %v5162_v11  ;;  %4236 = vmatprep.subr.bf16.mxu0 %v4694_v15 }
0x1888   :  { %4231 = vmatpush3.bf16.msra.mxu1 %v2183_v24  ;;  %4232 = vmatprep.mubr.msk.bf16.mxu1 %vm4695_vm1, %v4694_v15 }
0x1889   :  { %4242 = vmatprep.subr.bf16.mxu1 %v4694_v15 }
0x1958   :  { %v2054_v16 = vpop.f32.mrb[52].mxu0 }
0x1959   :  { %v2055_v18 = vadd.f32 %v5191_v17, %v2054_v16  ;;  %v4216_v19 = vpop.f32.mrb[53].mxu0 }
0x195a   :  { %v2057_v22 = vpop.f32.mrb[54].mxu0  ;;  %v2103_v25 = vpop.f32.mrb[56].mxu1 }
0x195b   :  { %v2104_v23 = vadd.f32 %v5191_v17, %v2103_v25  ;;  %v4217_v26 = vpop.f32.mrb[55].mxu0  ;;  %v4222_v8 = vpop.f32.mrb[57].mxu1  ;;  %v2109_v32 = vsel %vm158_vm2, %v2055_v18, -inf }
0x195c   :  { %v2106_v33 = vpop.f32.mrb[58].mxu1  ;;  %2110 = vmax.xlane.f32.xlu0 %v2109_v32 }
0x195d   :  { %v4223_v34 = vpop.f32.mrb[59].mxu1  ;;  %v2112_v10 = vsel %vm158_vm2, %v2104_v23, -inf }
0x195e   :  { %2113 = vmax.xlane.f32.xlu1 %v2112_v10 }
0x196f   :  { %2281 = vrot.lane.b32.xlu1 %v5162_v11, %s4698_s20 }
0x1972   :  { %2231 = vrot.lane.b32.xlu0 %v5160_v7, %s4698_s20 }
0x1973   :  { %2279 = vrot.lane.b32.xlu1 %v5162_v11, %s4699_s21 }
0x1976   :  { %2229 = vrot.lane.b32.xlu0 %v5160_v7, %s4699_s21 }
0x1977   :  { %2397 = vrot.lane.b32.xlu1 %v5162_v11, %s4700_s22 }
0x197a   :  { %2349 = vrot.lane.b32.xlu0 %v5160_v7, %s4700_s22 }
0x19e9   :  { %v2111_v35 = vpop.xlane.xlu0 %2110 }
0x19ea   :  { %v2115_v36 = vsub.f32 %v2055_v18, %v2111_v35 }
0x19eb   :  { %v2114_v37 = vpop.xlane.xlu1 %2113 }
0x19ec   :  { %v2117_v38 = vmul.f32 1.442695, %v2115_v36  ;;  %v2116_v0 = vsub.f32 %v2104_v23, %v2114_v37 }
0x19ed   :  { %v2232_v40 = vpop.permute.xlu0 %2231 }
0x19ee   :  { %4564 = vpow2.f32 %v2117_v38  ;;  %v2119_v3 = vmul.f32 1.442695, %v2116_v0  ;;  %v2237_v48 = vsel %vm158_vm2, %v2232_v40, 0 }
0x19ef   :  { %v2282_v41 = vpop.permute.xlu1 %2281 }
0x19f0   :  { %4566 = vpow2.f32 %v2119_v3  ;;  %v2287_v51 = vsel %vm158_vm2, %v2282_v41, 0 }
0x19f1   :  { %v2230_v46 = vpop.permute.xlu0 %2229 }
0x19f3   :  { %v2280_v50 = vpop.permute.xlu1 %2279 }
0x19f5   :  { %v2350_v53 = vpop.permute.xlu0 %2349 }
0x19f6   :  { %v2355_v56 = vsel %vm279_vm3, %v2350_v53, 0 }
0x19f7   :  { %v2398_v55 = vpop.permute.xlu1 %2397 }
0x19f8   :  { %v5209_v43 = vpop.eup %4564  ;;  %v2403_v57 = vsel %vm279_vm3, %v2398_v55, 0 }
0x19f9   :  { %v2127_v44 = vpack.c.bf16 %v5209_v43, %v5209_v43 }
0x19fa   :  { %v5213_v45 = vpop.eup %4566 }
0x19fb   :  { %4227 = vmatmul.mubr.msk.bf16.vlgmr.msra.gmra.mrb[56].mxu0 %vm158_vm2, %v2127_v44  ;;  %v2128_v49 = vpack.c.bf16 %v5213_v45, %v5213_v45 }
0x19fc   :  { %4237 = vmatpush3.bf16.xpose.msra.mxu0 %v2237_v48  ;;  %4238 = vmatprep.mubr.msk.bf16.mxu0 %vm4695_vm1, %v4694_v15 }
0x19fd   :  { %4233 = vmatmul.mubr.msk.bf16.vlgmr.msra.gmra.mrb[60].mxu1 %vm158_vm2, %v2128_v49  ;;  %4248 = vmatprep.subr.bf16.mxu0 %v4694_v15 }
0x19fe   :  { %4243 = vmatpush3.bf16.xpose.msra.mxu1 %v2287_v51  ;;  %4244 = vmatprep.mubr.msk.bf16.mxu1 %vm4695_vm1, %v4694_v15 }
0x19ff   :  { %4254 = vmatprep.subr.bf16.mxu1 %v4694_v15 }
0x1a03   :  { %4239 = vmatmul.mubr.msk.bf16.vlgmr.msra.gmra.mrb[60].mxu0 %vm158_vm2, %v2230_v46 }
0x1a04   :  { %4249 = vmatpush3.bf16.msra.mxu0 %v2355_v56  ;;  %4250 = vmatprep.mubr.msk.bf16.mxu0 %vm4695_vm1, %v4694_v15 }
0x1a05   :  { %4245 = vmatmul.mubr.msk.bf16.vlgmr.msra.gmra.mrb[64].mxu1 %vm158_vm2, %v2280_v50  ;;  %4260 = vmatprep.subr.bf16.mxu0 %v4694_v15 }
0x1a06   :  { %4255 = vmatpush3.bf16.msra.mxu1 %v2403_v57  ;;  %4256 = vmatprep.mubr.msk.bf16.mxu1 %vm4695_vm1, %v4694_v15 }
0x1a07   :  { %4266 = vmatprep.subr.bf16.mxu1 %v4694_v15 }
0x1ace   :  { %v5237_v58 = vpop.f32.mrb[56].mxu0 }
0x1acf   :  { %v4228_v59 = vpop.f32.mrb[57].mxu0 }
0x1ad0   :  { %v2174_v60 = vpop.f32.mrb[58].mxu0  ;;  %v5239_v61 = vpop.f32.mrb[60].mxu1 }
0x1ad1   :  { %v4229_v62 = vpop.f32.mrb[59].mxu0  ;;  %v4234_v63 = vpop.f32.mrb[61].mxu1 }
0x1ad2   :  { %v2222_v27 = vpop.f32.mrb[62].mxu1 }
0x1ad3   :  { %v4235_v29 = vpop.f32.mrb[63].mxu1 }
0x1ad6   :  { %v2273_v1 = vpop.f32.mrb[60].mxu0 }
0x1ad7   :  { %v2274_v2 = vadd.f32 %v5191_v17, %v2273_v1  ;;  %v4240_v47 = vpop.f32.mrb[61].mxu0 }
0x1ad8   :  { %v2276_v4 = vpop.f32.mrb[62].mxu0  ;;  %v2323_v5 = vpop.f32.mrb[64].mxu1 }
0x1ad9   :  { %v2324_v6 = vadd.f32 %v5191_v17, %v2323_v5  ;;  %v4241_v9 = vpop.f32.mrb[63].mxu0  ;;  %v4246_v42 = vpop.f32.mrb[65].mxu1  ;;  %v2329_v12 = vsel %vm158_vm2, %v2274_v2, -inf }
0x1ada   :  { %v2326_v39 = vpop.f32.mrb[66].mxu1  ;;  %2330 = vmax.xlane.f32.xlu0 %v2329_v12 }
0x1adb   :  { %v4247_v13 = vpop.f32.mrb[67].mxu1  ;;  %v2332_v52 = vsel %vm158_vm2, %v2324_v6, -inf }
0x1adc   :  { %2333 = vmax.xlane.f32.xlu1 %v2332_v52 }
0x1aed   :  { %2501 = vrot.lane.b32.xlu1 %v5162_v11, %s4701_s23 }
0x1af0   :  { %2451 = vrot.lane.b32.xlu0 %v5160_v7, %s4701_s23 }
0x1af1   :  { %2499 = vrot.lane.b32.xlu1 %v5162_v11, %s4702_s24 }
0x1af4   :  { %2449 = vrot.lane.b32.xlu0 %v5160_v7, %s4702_s24 }
0x1af5   :  { %2617 = vrot.lane.b32.xlu1 %v5162_v11, %s4703_s25 }
0x1af8   :  { %2569 = vrot.lane.b32.xlu0 %v5160_v7, %s4703_s25 }
0x1b67   :  { %v2331_v14 = vpop.xlane.xlu0 %2330 }
0x1b68   :  { %v2335_v21 = vsub.f32 %v2274_v2, %v2331_v14 }
0x1b69   :  { %v2334_v54 = vpop.xlane.xlu1 %2333 }
0x1b6a   :  { %v2337_v24 = vmul.f32 1.442695, %v2335_v21  ;;  %v2336_v16 = vsub.f32 %v2324_v6, %v2334_v54 }
0x1b6b   :  { %v2452_v19 = vpop.permute.xlu0 %2451 }
0x1b6c   :  { %4568 = vpow2.f32 %v2337_v24  ;;  %v2339_v18 = vmul.f32 1.442695, %v2336_v16  ;;  %v2457_v32 = vsel %vm158_vm2, %v2452_v19, 0 }
0x1b6d   :  { %v2502_v22 = vpop.permute.xlu1 %2501 }
0x1b6e   :  { %4570 = vpow2.f32 %v2339_v18  ;;  %v2507_v10 = vsel %vm158_vm2, %v2502_v22, 0 }
0x1b6f   :  { %v2450_v8 = vpop.permute.xlu0 %2449 }
0x1b71   :  { %v2500_v34 = vpop.permute.xlu1 %2499 }
0x1b73   :  { %v2570_v35 = vpop.permute.xlu0 %2569 }
0x1b74   :  { %v2575_v37 = vsel %vm279_vm3, %v2570_v35, 0 }
0x1b75   :  { %v2618_v36 = vpop.permute.xlu1 %2617 }
0x1b76   :  { %v5257_v25 = vpop.eup %4568  ;;  %v2623_v38 = vsel %vm279_vm3, %v2618_v36, 0 }
0x1b77   :  { %v2347_v23 = vpack.c.bf16 %v5257_v25, %v5257_v25 }
0x1b78   :  { %v5261_v26 = vpop.eup %4570 }
0x1b79   :  { %4251 = vmatmul.mubr.msk.bf16.vlgmr.msra.gmra.mrb[64].mxu0 %vm158_vm2, %v2347_v23  ;;  %v2348_v33 = vpack.c.bf16 %v5261_v26, %v5261_v26 }
0x1b7a   :  { %4261 = vmatpush3.bf16.xpose.msra.mxu0 %v2457_v32  ;;  %4262 = vmatprep.mubr.msk.bf16.mxu0 %vm4695_vm1, %v4694_v15 }
0x1b7b   :  { %4257 = vmatmul.mubr.msk.bf16.vlgmr.msra.gmra.mrb[68].mxu1 %vm158_vm2, %v2348_v33  ;;  %4272 = vmatprep.subr.bf16.mxu0 %v4694_v15 }
0x1b7c   :  { %4267 = vmatpush3.bf16.xpose.msra.mxu1 %v2507_v10  ;;  %4268 = vmatprep.mubr.msk.bf16.mxu1 %vm4695_vm1, %v4694_v15 }
0x1b7d   :  { %4278 = vmatprep.subr.bf16.mxu1 %v4694_v15 }
0x1b81   :  { %4263 = vmatmul.mubr.msk.bf16.vlgmr.msra.gmra.mrb[68].mxu0 %vm158_vm2, %v2450_v8 }
0x1b82   :  { %4273 = vmatpush3.bf16.msra.mxu0 %v2575_v37  ;;  %4274 = vmatprep.mubr.msk.bf16.mxu0 %vm4695_vm1, %v4694_v15 }
0x1b83   :  { %4269 = vmatmul.mubr.msk.bf16.vlgmr.msra.gmra.mrb[72].mxu1 %vm158_vm2, %v2500_v34  ;;  %4284 = vmatprep.subr.bf16.mxu0 %v4694_v15 }
0x1b84   :  { %4279 = vmatpush3.bf16.msra.mxu1 %v2623_v38  ;;  %4280 = vmatprep.mubr.msk.bf16.mxu1 %vm4695_vm1, %v4694_v15 }
0x1b85   :  { %4290 = vmatprep.subr.bf16.mxu1 %v4694_v15 }
0x1c4c   :  { %v5285_v0 = vpop.f32.mrb[64].mxu0 }
0x1c4d   :  { %v4252_v3 = vpop.f32.mrb[65].mxu0 }
0x1c4e   :  { %v2394_v40 = vpop.f32.mrb[66].mxu0  ;;  %v5287_v41 = vpop.f32.mrb[68].mxu1 }
0x1c4f   :  { %v4253_v44 = vpop.f32.mrb[67].mxu0  ;;  %v4258_v46 = vpop.f32.mrb[69].mxu1 }
0x1c50   :  { %v2442_v48 = vpop.f32.mrb[70].mxu1 }
0x1c51   :  { %v4259_v49 = vpop.f32.mrb[71].mxu1 }
0x1c54   :  { %v2493_v50 = vpop.f32.mrb[68].mxu0 }
0x1c55   :  { %v2494_v51 = vadd.f32 %v5191_v17, %v2493_v50  ;;  %v4264_v53 = vpop.f32.mrb[69].mxu0  ;;  %v2341_v50 = vsel %vm158_vm2, %v5257_v25, 0.0 }
0x1c56   :  { %v2496_v55 = vpop.f32.mrb[70].mxu0  ;;  %v2543_v56 = vpop.f32.mrb[72].mxu1 }
0x1c57   :  { %v2544_v57 = vadd.f32 %v5191_v17, %v2543_v56  ;;  %v4265_v59 = vpop.f32.mrb[71].mxu0  ;;  %v4270_v60 = vpop.f32.mrb[73].mxu1  ;;  %v2549_v62 = vsel %vm158_vm2, %v2494_v51, -inf }
0x1c58   :  { %v2546_v63 = vpop.f32.mrb[74].mxu1  ;;  %2550 = vmax.xlane.f32.xlu0 %v2549_v62 }
0x1c59   :  { %v4271_v27 = vpop.f32.mrb[75].mxu1  ;;  %v2552_v29 = vsel %vm158_vm2, %v2544_v57, -inf }
0x1c5a   :  { %2553 = vmax.xlane.f32.xlu1 %v2552_v29 }
0x1c6b   :  { %2721 = vrot.lane.b32.xlu1 %v5162_v11, %s4704_s26 }
0x1c6e   :  { %2671 = vrot.lane.b32.xlu0 %v5160_v7, %s4704_s26 }
0x1c6f   :  { %2719 = vrot.lane.b32.xlu1 %v5162_v11, %s4705_s27 }
0x1c72   :  { %2669 = vrot.lane.b32.xlu0 %v5160_v7, %s4705_s27 }
0x1ce5   :  { %v2551_v1 = vpop.xlane.xlu0 %2550 }
0x1ce6   :  { %v2555_v2 = vsub.f32 %v2494_v51, %v2551_v1 }
0x1ce7   :  { %v2554_v47 = vpop.xlane.xlu1 %2553 }
0x1ce8   :  { %v2557_v4 = vmul.f32 1.442695, %v2555_v2  ;;  %v2556_v5 = vsub.f32 %v2544_v57, %v2554_v47 }
0x1ce9   :  { %v2672_v42 = vpop.permute.xlu0 %2671 }
0x1cea   :  { %4572 = vpow2.f32 %v2557_v4  ;;  %v2559_v6 = vmul.f32 1.442695, %v2556_v5  ;;  %v2677_v52 = vsel %vm158_vm2, %v2672_v42, 0  ;;  %v2121_v4 = vsel %vm158_vm2, %v5209_v43, 0.0 }
0x1ceb   :  { %v2722_v13 = vpop.permute.xlu1 %2721  ;;  %v2124_v5 = vsel %vm158_vm2, %v5213_v45, 0.0 }
0x1cec   :  { %4574 = vpow2.f32 %v2559_v6  ;;  %v2727_v21 = vsel %vm158_vm2, %v2722_v13, 0 }
0x1ced   :  { %v2670_v54 = vpop.permute.xlu0 %2669 }
0x1cef   :  { %v2720_v24 = vpop.permute.xlu1 %2719 }
0x1cf4   :  { %v4573_v9 = vpop.eup %4572 }
0x1cf5   :  { %v2567_v12 = vpack.c.bf16 %v4573_v9, %v4573_v9  ;;  %v2561_v51 = vsel %vm158_vm2, %v4573_v9, 0.0 }
0x1cf6   :  { %v4575_v39 = vpop.eup %4574 }
0x1cf7   :  { %4275 = vmatmul.mubr.msk.bf16.vlgmr.msra.gmra.mrb[72].mxu0 %vm158_vm2, %v2567_v12  ;;  %v2568_v14 = vpack.c.bf16 %v4575_v39, %v4575_v39  ;;  %v2564_v53 = vsel %vm158_vm2, %v4575_v39, 0.0 }
0x1cf8   :  { %4285 = vmatpush3.bf16.xpose.msra.mxu0 %v2677_v52  ;;  %4286 = vmatprep.mubr.msk.bf16.mxu0 %vm4695_vm1, %v4694_v15 }
0x1cf9   :  { %4281 = vmatmul.mubr.msk.bf16.vlgmr.msra.gmra.mrb[76].mxu1 %vm158_vm2, %v2568_v14  ;;  %4296 = vmatprep.subr.bf16.mxu0 %v4694_v15 }
0x1cfa   :  { %4291 = vmatpush3.bf16.xpose.msra.mxu1 %v2727_v21  ;;  %4292 = vmatprep.mubr.msk.bf16.mxu1 %vm4695_vm1, %v4694_v15 }
0x1cfb   :  { %4302 = vmatprep.subr.bf16.mxu1 %v4694_v15 }
0x1cff   :  { %4287 = vmatmul.mubr.msk.bf16.vlgmr.msra.gmra.mrb[76].mxu0 %vm158_vm2, %v2670_v54 }
0x1d00   :  { %4298 = vmatprep.mubr.msk.bf16.mxu0 %vm4695_vm1, %v4694_v15 }
0x1d01   :  { %4293 = vmatmul.mubr.msk.bf16.vlgmr.msra.gmra.mrb[80].mxu1 %vm158_vm2, %v2720_v24 }
0x1d02   :  { %4304 = vmatprep.mubr.msk.bf16.mxu1 %vm4695_vm1, %v4694_v15 }
0x1dca   :  { %v5317_v16 = vpop.f32.mrb[72].mxu0 }
0x1dcb   :  { %v4276_v18 = vpop.f32.mrb[73].mxu0 }
0x1dcc   :  { %v2614_v19 = vpop.f32.mrb[74].mxu0  ;;  %v5319_v22 = vpop.f32.mrb[76].mxu1 }
0x1dcd   :  { %v4277_v23 = vpop.f32.mrb[75].mxu0  ;;  %v4282_v8 = vpop.f32.mrb[77].mxu1  ;;  %v4460_v19 = vld [vmem:[#allocation2 + $0x94] ss:$36 sps:$4 sm:$0xff]  }
0x1dce   :  { %v2662_v32 = vpop.f32.mrb[78].mxu1 }
0x1dcf   :  { %v4283_v33 = vpop.f32.mrb[79].mxu1 }
0x1dd2   :  { %v2713_v34 = vpop.f32.mrb[76].mxu0 }
0x1dd3   :  { %v2714_v10 = vadd.f32 %v5191_v17, %v2713_v34  ;;  %v4288_v35 = vpop.f32.mrb[77].mxu0 }
0x1dd4   :  { %v2716_v36 = vpop.f32.mrb[78].mxu0  ;;  %v2763_v37 = vpop.f32.mrb[80].mxu1 }
0x1dd5   :  { %v2764_v38 = vadd.f32 %v5191_v17, %v2763_v37  ;;  %v4289_v3 = vpop.f32.mrb[79].mxu0  ;;  %v4294_v40 = vpop.f32.mrb[81].mxu1  ;;  %v2769_v44 = vsel %vm158_vm2, %v2714_v10, -inf  ;;  %v2344_v17 = vsel %vm158_vm2, %v5261_v26, 0.0 }
0x1dd6   :  { %v2766_v46 = vpop.f32.mrb[82].mxu1  ;;  %2770 = vmax.xlane.f32.xlu0 %v2769_v44  ;;  %v3059_v44 = vpack.c.bf16 %v5123_v28, %v5120_v20 }
0x1dd7   :  { %v4295_v48 = vpop.f32.mrb[83].mxu1  ;;  %v2772_v49 = vsel %vm158_vm2, %v2764_v38, -inf }
0x1dd8   :  { %2773 = vmax.xlane.f32.xlu1 %v2772_v49 }
0x1de9   :  { %2837 = vrot.lane.b32.xlu1 %v5162_v11, %s4706_s28 }
0x1dec   :  { %2789 = vrot.lane.b32.xlu0 %v5160_v7, %s4706_s28 }
0x1e0b   :  { %2342 = vadd.xlane.f32.xlu0 %v2341_v50 }
0x1e0d   :  { %2345 = vadd.xlane.f32.xlu1 %v2344_v17 }
0x1e0f   :  { %2562 = vadd.xlane.f32.xlu0 %v2561_v51 }
0x1e13   :  { %2565 = vadd.xlane.f32.xlu0 %v2564_v53 }
0x1e63   :  { %v2771_v55 = vpop.xlane.xlu0 %2770 }
0x1e64   :  { %v2775_v56 = vsub.f32 %v2714_v10, %v2771_v55 }
0x1e65   :  { %v2774_v11 = vpop.xlane.xlu1 %2773 }
0x1e66   :  { %v2777_v57 = vmul.f32 1.442695, %v2775_v56  ;;  %v2776_v59 = vsub.f32 %v2764_v38, %v2774_v11 }
0x1e67   :  { %v2790_v7 = vpop.permute.xlu0 %2789 }
0x1e68   :  { %4576 = vpow2.f32 %v2777_v57  ;;  %v2779_v60 = vmul.f32 1.442695, %v2776_v59  ;;  %v2795_v25 = vsel %vm279_vm3, %v2790_v7, 0 }
0x1e69   :  { %v2838_v62 = vpop.permute.xlu1 %2837  ;;  %4297 = vmatpush3.bf16.msra.mxu0 %v2795_v25 }
0x1e6a   :  { %4578 = vpow2.f32 %v2779_v60  ;;  %v2843_v26 = vsel %vm279_vm3, %v2838_v62, 0  ;;  %4308 = vmatprep.subr.bf16.mxu0 %v4694_v15 }
0x1e6b   :  { %4303 = vmatpush3.bf16.msra.mxu1 %v2843_v26 }
0x1e6c   :  { %4316 = vmatprep.subr.bf16.mxu1 %v4694_v15 }
0x1e72   :  { %v4577_v63 = vpop.eup %4576 }
0x1e73   :  { %v2781_v27 = vsel %vm158_vm2, %v4577_v63, 0.0  ;;  %v2787_v29 = vpack.c.bf16 %v4577_v63, %v4577_v63 }
0x1e74   :  { %v4579_v1 = vpop.eup %4578  ;;  %2782 = vadd.xlane.f32.xlu0 %v2781_v27 }
0x1e75   :  { %4299 = vmatmul.mubr.msk.bf16.vlgmr.msra.gmra.mrb[80].mxu0 %vm158_vm2, %v2787_v29  ;;  %v2784_v2 = vsel %vm158_vm2, %v4579_v1, 0.0  ;;  %v2788_v47 = vpack.c.bf16 %v4579_v1, %v4579_v1 }
0x1e76   :  { %2785 = vadd.xlane.f32.xlu1 %v2784_v2  ;;  %4312 = vmatprep.mubr.msk.bf16.mxu0 %vm4695_vm1, %v4694_v15  ;;  %v4462_v2 = vld [vmem:[#allocation2 + $0x9c] ss:$36 sps:$4 sm:$0xff]  }
0x1e77   :  { %4305 = vmatmul.mubr.msk.bf16.vlgmr.msra.gmra.mrb[84].mxu1 %vm158_vm2, %v2788_v47  ;;  %4309 = vmatpush3.bf16.msra.mxu0 %v4460_v19  ;;  %v4466_v19 = vld [vmem:[#allocation2 + $0xa0] ss:$36 sps:$4 sm:$0xff]  }
0x1e78   :  { %2122 = vadd.xlane.f32.xlu0 %v2121_v4  ;;  %4320 = vmatprep.mubr.msk.bf16.mxu1 %vm4695_vm1, %v4694_v15  ;;  %v4464_v4 = vld [vmem:[#allocation2 + $0x98] ss:$36 sps:$4 sm:$0xff]  }
0x1e79   :  { %4310 = vmatprep.subr.bf16.mxu0 %v4694_v15  ;;  %4317 = vmatpush3.bf16.msra.mxu1 %v4464_v4 }
0x1e7a   :  { %2125 = vadd.xlane.f32.xlu1 %v2124_v5  ;;  %4318 = vmatprep.subr.bf16.mxu1 %v4694_v15  ;;  %v4465_v5 = vld [vmem:[#allocation2 + $0xe0] ss:$36 sps:$4 sm:$0xff]  }
0x1e7d   :  { %4319 = vmatpush3.bf16.msra.mxu1 %v4465_v5 }
0x1e7e   :  { %4332 = vmatprep.subr.bf16.mxu1 %v4694_v15 }
0x1e98   :  { %v2343_v6 = vpop.xlane.xlu0 %2342 }
0x1e99   :  { %4580 = vrcp.f32 %v2343_v6  ;;  %v3838_v6 = vld [vmem:[%s5510_s4 + $0xd] ss:$0 sm:$0xff] }
0x1e9a   :  { %v2346_v9 = vpop.xlane.xlu1 %2345 }
0x1e9b   :  { %4582 = vrcp.f32 %v2346_v9 }
0x1e9c   :  { %v2563_v42 = vpop.xlane.xlu0 %2562 }
0x1e9d   :  { %4584 = vrcp.f32 %v2563_v42 }
0x1ea0   :  { %v2566_v12 = vpop.xlane.xlu0 %2565 }
0x1ea1   :  { %4586 = vrcp.f32 %v2566_v12 }
0x1ea3   :  { %v4581_v39 = vpop.eup %4580 }
0x1ea4   :  { %v2447_v43 = vmul.f32 %v4581_v39, %v5285_v0 }
0x1ea5   :  { %v4583_v13 = vpop.eup %4582 }
0x1ea6   :  { %v2448_v52 = vmul.f32 %v4583_v13, %v5287_v41  ;;  %v4461_v41 = vld [vmem:[#allocation2 + $0xdc] ss:$36 sps:$4 sm:$0xff]  }
0x1ea7   :  { %v4585_v21 = vpop.eup %4584  ;;  %4311 = vmatpush3.bf16.msra.mxu0 %v4461_v41 }
0x1ea8   :  { %v4421_v14 = vpack.i.bf16 %v2448_v52, %v2447_v43  ;;  %v2667_v54 = vmul.f32 %v4585_v21, %v5317_v16  ;;  %4324 = vmatprep.subr.bf16.mxu0 %v4694_v15 }
0x1eaa   :  { %4422 = vrot.lane.b32.xlu0 %v4421_v14, %s4707_s29 }
0x1eab   :  { %v4587_v45 = vpop.eup %4586 }
0x1eac   :  { %v2668_v24 = vmul.f32 %v4587_v45, %v5319_v22 }
0x1eae   :  { %v4426_v18 = vpack.i.bf16 %v2668_v24, %v2667_v54 }
0x1eb0   :  { %4427 = vrot.lane.b32.xlu1 %v4426_v18, %s4708_s30 }
0x1f01   :  { %v2783_v23 = vpop.xlane.xlu0 %2782 }
0x1f02   :  { %4588 = vrcp.f32 %v2783_v23  ;;  %v4467_v23 = vld [vmem:[#allocation2 + $0xe8] ss:$36 sps:$4 sm:$0xff]  }
0x1f03   :  { %v2786_v0 = vpop.xlane.xlu1 %2785 }
0x1f04   :  { %4590 = vrcp.f32 %v2786_v0 }
0x1f05   :  { %v2123_v46 = vpop.xlane.xlu0 %2122 }
0x1f06   :  { %4592 = vrcp.f32 %v2123_v46 }
0x1f07   :  { %v2126_v48 = vpop.xlane.xlu1 %2125 }
0x1f08   :  { %4594 = vrcp.f32 %v2126_v48 }
0x1f0c   :  { %v4589_v32 = vpop.eup %4588 }
0x1f0e   :  { %v4591_v33 = vpop.eup %4590 }
0x1f10   :  { %v4593_v50 = vpop.eup %4592 }
0x1f11   :  { %v2227_v57 = vmul.f32 %v4593_v50, %v5237_v58  ;;  %v4463_v58 = vld [vmem:[#allocation2 + $0xe4] ss:$36 sps:$4 sm:$0xff]  }
0x1f12   :  { %v4595_v51 = vpop.eup %4594 }
0x1f13   :  { %v2228_v59 = vmul.f32 %v4595_v51, %v5239_v61 }
0x1f1c   :  { %v4423_v49 = vpop.permute.xlu0 %4422 }
0x1f1d   :  { %v4425_v53 = vunpack.i.h.bf16 %v4423_v49  ;;  %v4424_v55 = vunpack.i.l.bf16 %v4423_v49 }
0x1f1f   :  { %v2914_v60 = vsel %vm158_vm2, %v2228_v59, %v4425_v53  ;;  %v2913_v25 = vsel %vm158_vm2, %v2227_v57, %v4424_v55 }
0x1f22   :  { %v4428_v17 = vpop.permute.xlu1 %4427 }
0x1f23   :  { %v4430_v56 = vunpack.i.h.bf16 %v4428_v17  ;;  %v4429_v11 = vunpack.i.l.bf16 %v4428_v17  ;;  %v3851_v17 = vld [vmem:[%s5510_s4 + $0xe] ss:$0 sm:$0xff] }
0x1f25   :  { %v2915_v63 = vsel %vm1061_vm4, %v2913_v25, %v4429_v11  ;;  %v2916_v27 = vsel %vm1061_vm4, %v2914_v60, %v4430_v56 }
0x1f48   :  { %v2831_v8 = vpop.f32.mrb[80].mxu0 }
0x1f49   :  { %v4300_v16 = vpop.f32.mrb[81].mxu0  ;;  %v2887_v10 = vmul.f32 %v4589_v32, %v2831_v8 }
0x1f4a   :  { %v2834_v22 = vpop.f32.mrb[82].mxu0  ;;  %v2879_v34 = vpop.f32.mrb[84].mxu1 }
0x1f4b   :  { %v2888_v35 = vmul.f32 %v4591_v33, %v2879_v34  ;;  %v4301_v36 = vpop.f32.mrb[83].mxu0  ;;  %v4306_v37 = vpop.f32.mrb[85].mxu1 }
0x1f4c   :  { %v2882_v38 = vpop.f32.mrb[86].mxu1 }
0x1f4d   :  { %v4431_v3 = vpack.i.bf16 %v2888_v35, %v2887_v10  ;;  %v4307_v40 = vpop.f32.mrb[87].mxu1 }
0x1f4f   :  { %4432 = vrot.lane.b32.xlu1 %v4431_v3, %s4709_s6 }
0x1f53   :  { %3061 = vrot.lane.b32.xlu1 %v3059_v44, %s4696_s16 }
0x1fc1   :  { %v4433_v7 = vpop.permute.xlu1 %4432 }
0x1fc2   :  { %v4435_v62 = vunpack.i.h.bf16 %v4433_v7  ;;  %v4434_v26 = vunpack.i.l.bf16 %v4433_v7 }
0x1fc4   :  { %v2918_v29 = vsel %vm1064_vm5, %v2916_v27, %v4435_v62  ;;  %v2917_v1 = vsel %vm1064_vm5, %v2915_v63, %v4434_v26 }
0x1fc5   :  { %v2923_v47 = vpack.c.bf16 %v2918_v29, %v2917_v1  ;;  %v3062_v61 = vpop.permute.xlu1 %3061 }
0x1fc7   :  { %4313 = vmatmul.mubr.msk.bf16.vlgmr.msra.gmra.mrb[84].mxu0 %vm41_vm0, %v2923_v47 }
0x1fc8   :  { %4325 = vmatpush3.bf16.msra.mxu0 %v4462_v2  ;;  %4328 = vmatprep.mubr.msk.bf16.mxu0 %vm4695_vm1, %v4694_v15 }
0x1fc9   :  { %4326 = vmatprep.subr.bf16.mxu0 %v4694_v15 }
0x1fcc   :  { %4327 = vmatpush3.bf16.msra.mxu0 %v4463_v58 }
0x1fcd   :  { %4340 = vmatprep.subr.bf16.mxu0 %v4694_v15 }
0x1fcf   :  { %4329 = vmatmul.mubr.msk.bf16.vlgmr.msra.gmra.mrb[88].mxu0 %vm41_vm0, %v3062_v61 }
0x1fd0   :  { %4344 = vmatprep.mubr.msk.bf16.mxu0 %vm4695_vm1, %v4694_v15 }
0x209a   :  { %v2980_v9 = vpop.f32.mrb[84].mxu0 }
0x209b   :  { %v2981_v42 = vadd.f32 %v3838_v6, %v2980_v9  ;;  %v4314_v12 = vpop.f32.mrb[85].mxu0 }
0x209c   :  { %v2983_v39 = vpop.f32.mrb[86].mxu0 }
0x209d   :  { %v2984_v13 = vadd.f32 %v3838_v6, %v2983_v39  ;;  %v4315_v43 = vpop.f32.mrb[87].mxu0  ;;  %v2987_v52 = vmax.f32 %v2981_v42, 0.0 }
0x209f   :  { %v2988_v14 = vmax.f32 %v2984_v13, 0.0 }
0x20a1   :  { %v3002_v21 = vpack.c.bf16 %v2988_v14, %v2987_v52 }
0x20a2   :  { %v3112_v45 = vpop.f32.mrb[88].mxu0 }
0x20a3   :  { %4321 = vmatmul.mubr.msk.bf16.vlgmr.msra.gmra.mrb[88].mxu1 %vm41_vm0, %v3002_v21  ;;  %v4330_v54 = vpop.f32.mrb[89].mxu0 }
0x20a4   :  { %v3115_v24 = vpop.f32.mrb[90].mxu0  ;;  %4336 = vmatprep.mubr.msk.bf16.mxu1 %vm4695_vm1, %v4694_v15  ;;  %4333 = vmatpush3.bf16.msra.mxu1 %v4466_v19 }
0x20a5   :  { %v4331_v18 = vpop.f32.mrb[91].mxu0  ;;  %4334 = vmatprep.subr.bf16.mxu1 %v4694_v15 }
0x20a8   :  { %4335 = vmatpush3.bf16.msra.mxu1 %v4467_v23 }
0x20a9   :  { %4348 = vmatprep.subr.bf16.mxu1 %v4694_v15 }
0x2176   :  { %v3052_v0 = vpop.f32.mrb[88].mxu1 }
0x2177   :  { %v3119_v41 = vadd.f32 %v3112_v45, %v3052_v0  ;;  %v4322_v8 = vpop.f32.mrb[89].mxu1 }
0x2178   :  { %v3055_v32 = vpop.f32.mrb[90].mxu1  ;;  %v3860_v8 = vld [vmem:[%s5510_s4 + $0x10] ss:$0 sm:$0xff] }
0x2179   :  { %v3849_v16 = vmul.f32 -1.442695, %v3119_v41  ;;  %v3120_v33 = vadd.f32 %v3115_v24, %v3055_v32  ;;  %v4323_v22 = vpop.f32.mrb[91].mxu1 }
0x217a   :  { %v4469_v22 = vld [vmem:[#allocation2 + $0xec] ss:$36 sps:$4 sm:$0xff]  }
0x217b   :  { %4596 = vpow2.f32 %v3849_v16  ;;  %v3850_v34 = vmul.f32 -1.442695, %v3120_v33 }
0x217d   :  { %4598 = vpow2.f32 %v3850_v34 }
0x2185   :  { %v4597_v10 = vpop.eup %4596 }
0x2186   :  { %v3127_v35 = vadd.f32 1.0, %v4597_v10 }
0x2187   :  { %v4599_v36 = vpop.eup %4598 }
0x2188   :  { %4600 = vrcp.f32 %v3127_v35  ;;  %v3128_v37 = vadd.f32 1.0, %v4599_v36 }
0x218a   :  { %4602 = vrcp.f32 %v3128_v37 }
0x2192   :  { %v4601_v38 = vpop.eup %4600 }
0x2193   :  { %v3155_v40 = vmul.f32 %v4601_v38, %v5129_v30 }
0x2194   :  { %v4603_v3 = vpop.eup %4602 }
0x2195   :  { %v3156_v44 = vmul.f32 %v4603_v3, %v5133_v31  ;;  %v4470_v3 = vld [vmem:[%s5509_s3 + $0x20] sm:$0xff]  }
0x2197   :  { %v3157_v46 = vpack.c.bf16 %v3156_v44, %v3155_v40  ;;  %v4471_v44 = vld [vmem:[%s5509_s3 + $0x28] sm:$0xff]  }
0x2199   :  { %4337 = vmatmul.mubr.msk.bf16.vlgmr.msra.gmra.mrb[92].mxu1 %vm41_vm0, %v3157_v46 }
0x219a   :  { %4356 = vmatprep.mubr.msk.bf16.mxu1 %vm4695_vm1, %v4694_v15  ;;  %4349 = vmatpush3.bf16.msra.mxu1 %v4470_v3 }
0x219b   :  { %4350 = vmatprep.subr.bf16.mxu1 %v4694_v15 }
0x219e   :  { %4351 = vmatpush3.bf16.msra.mxu1 %v4471_v44 }
0x219f   :  { %4352 = vmatprep.subr.bf16.mxu1 %v4694_v15 }
0x226c   :  { %v3207_v48 = vpop.f32.mrb[92].mxu1 }
0x226d   :  { %3216 = vrot.lane.b32.xlu0 %v3207_v48, %s4697_s19  ;;  %v4338_v49 = vpop.f32.mrb[93].mxu1 }
0x226e   :  { %v3210_v50 = vpop.f32.mrb[94].mxu1 }
0x226f   :  { %3218 = vrot.lane.b32.xlu1 %v3210_v50, %s4697_s19  ;;  %v4339_v30 = vpop.f32.mrb[95].mxu1 }
0x2271   :  { %3138 = vrot.lane.b32.xlu0 %v3851_v17, %s4710_s13 }
0x22df   :  { %v3217_v31 = vpop.permute.xlu0 %3216 }
0x22e0   :  { %v3222_v51 = vadd.f32 %v3217_v31, %v3052_v0 }
0x22e1   :  { %v3219_v53 = vpop.permute.xlu1 %3218 }
0x22e2   :  { %4604 = vtanh.f32 %v3222_v51  ;;  %v3223_v55 = vadd.f32 %v3219_v53, %v3055_v32  ;;  %v3859_v32 = vld [vmem:[%s5510_s4 + $0xf] ss:$0 sm:$0xff] }
0x22e3   :  { %v3139_v57 = vpop.permute.xlu0 %3138 }
0x22e4   :  { %4606 = vtanh.f32 %v3223_v55  ;;  %v3141_v59 = vadd.f32 %v3139_v57, %v3119_v41  ;;  %v3142_v7 = vadd.f32 %v3139_v57, %v3120_v33  ;;  %v4468_v33 = vld [vmem:[#allocation2 + $0xa4] ss:$36 sps:$4 sm:$0xff]   ;;  %v4473_v57 = vld [vmem:[%s5509_s3 + $0x38] sm:$0xff]  }
0x22e5   :  { %4341 = vmatpush3.bf16.msra.mxu0 %v4468_v33 }
0x22e6   :  { %v3852_v60 = vmul.f32 -1.442695, %v3141_v59  ;;  %v3853_v25 = vmul.f32 -1.442695, %v3142_v7  ;;  %4342 = vmatprep.subr.bf16.mxu0 %v4694_v15  ;;  %v3862_v59 = vld [vmem:[%s5510_s4 + $0x11] ss:$0 sm:$0xff] }
0x22e8   :  { %4608 = vpow2.f32 %v3852_v60 }
0x22e9   :  { %4610 = vpow2.f32 %v3853_v25  ;;  %4343 = vmatpush3.bf16.msra.mxu0 %v4469_v22 }
0x22ea   :  { %4360 = vmatprep.subr.bf16.mxu0 %v4694_v15 }
0x22ec   :  { %v4605_v56 = vpop.eup %4604 }
0x22ed   :  { %3232 = vrot.lane.b32.xlu1 %v4605_v56, %s4696_s16 }
0x22ee   :  { %v4607_v11 = vpop.eup %4606 }
0x22ef   :  { %3234 = vrot.lane.b32.xlu0 %v4607_v11, %s4696_s16  ;;  %v4472_v11 = vld [vmem:[%s5509_s3 + $0x30] sm:$0xff]  }
0x22f0   :  { %4353 = vmatpush3.bf16.msra.mxu1 %v4472_v11 }
0x22f1   :  { %4354 = vmatprep.subr.bf16.mxu1 %v4694_v15 }
0x22f2   :  { %v4609_v62 = vpop.eup %4608 }
0x22f3   :  { %v4611_v26 = vpop.eup %4610  ;;  %v3149_v63 = vadd.f32 1.0, %v4609_v62 }
0x22f4   :  { %v3150_v27 = vadd.f32 1.0, %v4611_v26  ;;  %4355 = vmatpush3.bf16.msra.mxu1 %v4473_v57 }
0x22f5   :  { %4612 = vrcp.f32 %v3149_v63  ;;  %4376 = vmatprep.subr.bf16.mxu1 %v4694_v15 }
0x22f6   :  { %4614 = vrcp.f32 %v3150_v27 }
0x22ff   :  { %v4613_v29 = vpop.eup %4612 }
0x2300   :  { %v4615_v1 = vpop.eup %4614  ;;  %v3226_v2 = vsub.f32 1.0, %v4613_v29 }
0x2301   :  { %v3227_v47 = vsub.f32 1.0, %v4615_v1 }
0x2302   :  { %v3228_v61 = vmul.f32 %v3226_v2, %v5120_v20  ;;  %v4474_v2 = vld [vmem:[#allocation2 + $0xa8] ss:$36 sps:$4 sm:$0xff]  }
0x2303   :  { %v3229_v9 = vmul.f32 %v3227_v47, %v5123_v28  ;;  %v4475_v47 = vld [vmem:[#allocation2 + $0xf0] ss:$36 sps:$4 sm:$0xff]  }
0x235f   :  { %v3233_v58 = vpop.permute.xlu1 %3232 }
0x2360   :  { %v3238_v4 = vmul.f32 %v4613_v29, %v3233_v58  ;;  %v3875_v58 = vld [vmem:[%s5510_s4 + $0x12] ss:$0 sm:$0xff] }
0x2361   :  { %v3235_v5 = vpop.permute.xlu0 %3234 }
0x2362   :  { %v5403_v6 = vadd.f32 %v3238_v4, %v3228_v61  ;;  %v3239_v42 = vmul.f32 %v4615_v1, %v3235_v5 }
0x2364   :  { %v5406_v12 = vadd.f32 %v3239_v42, %v3229_v9  ;;  %3246 = vrot.lane.b32.xlu1 %v5403_v6, %s4696_s16 }
0x2366   :  { %3248 = vrot.lane.b32.xlu0 %v5406_v12, %s4696_s16  ;;  %v3536_v16 = vpack.c.bf16 %v5406_v12, %v5403_v6 }
0x23d6   :  { %v5412_v39 = vpop.permute.xlu1 %3246 }
0x23d7   :  { %v3252_v20 = vsel %vm41_vm0, %v5412_v39, 0.0 }
0x23d8   :  { %v5416_v13 = vpop.permute.xlu0 %3248  ;;  %3253 = vadd.xlane.f32.xlu1 %v3252_v20 }
0x23d9   :  { %v3255_v28 = vsel %vm41_vm0, %v5416_v13, 0.0 }
0x23da   :  { %3256 = vadd.xlane.f32.xlu0 %v3255_v28 }
0x2465   :  { %v3254_v43 = vpop.xlane.xlu1 %3253 }
0x2466   :  { %v3258_v52 = vmul.f32 0.03125, %v3254_v43 }
0x2467   :  { %v3257_v14 = vpop.xlane.xlu0 %3256 }
0x2468   :  { %v3260_v21 = vsub.f32 %v5403_v6, %v3258_v52  ;;  %v3259_v45 = vmul.f32 0.03125, %v3257_v14  ;;  %v4476_v52 = vld [vmem:[#allocation2 + $0xac] ss:$36 sps:$4 sm:$0xff]  }
0x246a   :  { %v3262_v54 = vmul.f32 %v3260_v21, %v3260_v21  ;;  %v3261_v24 = vsub.f32 %v5406_v12, %v3259_v45 }
0x246c   :  { %v3263_v18 = vmul.f32 %v3261_v24, %v3261_v24  ;;  %3266 = vrot.lane.b32.xlu0 %v3262_v54, %s4696_s16  ;;  %v4478_v54 = vld [vmem:[#allocation2 + $0xb0] ss:$36 sps:$4 sm:$0xff]  }
0x246e   :  { %3268 = vrot.lane.b32.xlu1 %v3263_v18, %s4696_s16 }
0x24de   :  { %v3267_v19 = vpop.permute.xlu0 %3266 }
0x24df   :  { %v3272_v23 = vsel %vm41_vm0, %v3267_v19, 0.0 }
0x24e0   :  { %3273 = vadd.xlane.f32.xlu1 %v3272_v23  ;;  %v3269_v0 = vpop.permute.xlu1 %3268 }
0x24e1   :  { %v3275_v41 = vsel %vm41_vm0, %v3269_v0, 0.0 }
0x24e2   :  { %3276 = vadd.xlane.f32.xlu0 %v3275_v41 }
0x24f1   :  { %3301 = vrot.lane.b32.xlu1 %v3860_v8, %s4710_s13 }
0x24f8   :  { %3291 = vrot.lane.b32.xlu0 %v3859_v32, %s4710_s13 }
0x24fc   :  { %3538 = vrot.lane.b32.xlu0 %v3536_v16, %s4696_s16 }
0x256d   :  { %v3274_v34 = vpop.xlane.xlu1 %3273 }
0x256e   :  { %v3278_v10 = vmul.f32 0.03125, %v3274_v34 }
0x256f   :  { %v3277_v35 = vpop.xlane.xlu0 %3276 }
0x2570   :  { %v3280_v36 = vadd.f32 1e-05, %v3278_v10  ;;  %v3279_v37 = vmul.f32 0.03125, %v3277_v35 }
0x2571   :  { %v3302_v30 = vpop.permute.xlu1 %3301 }
0x2572   :  { %4616 = vrsqrt.f32 %v3280_v36  ;;  %v3281_v38 = vadd.f32 1e-05, %v3279_v37 }
0x2573   :  { %v3292_v49 = vpop.permute.xlu0 %3291 }
0x2574   :  { %4618 = vrsqrt.f32 %v3281_v38 }
0x2577   :  { %v3539_v45 = vpop.permute.xlu0 %3538 }
0x257c   :  { %v4617_v40 = vpop.eup %4616 }
0x257d   :  { %v3284_v46 = vmul.f32 %v4617_v40, %v3260_v21  ;;  %v4477_v21 = vld [vmem:[#allocation2 + $0xf4] ss:$36 sps:$4 sm:$0xff]  }
0x257e   :  { %v4619_v48 = vpop.eup %4618 }
0x257f   :  { %v3285_v50 = vmul.f32 %v4619_v48, %v3261_v24  ;;  %v3294_v17 = vmul.f32 %v3292_v49, %v3284_v46  ;;  %v4479_v24 = vld [vmem:[#allocation2 + $0xf8] ss:$36 sps:$4 sm:$0xff]  }
0x2581   :  { %v3295_v31 = vmul.f32 %v3292_v49, %v3285_v50  ;;  %v3304_v51 = vadd.f32 %v3302_v30, %v3294_v17  ;;  %v3890_v17 = vld [vmem:[%s5510_s4 + $0x13] ss:$0 sm:$0xff]  ;;  %s4711_s4 = smov [#allocation5]  }
0x2583   :  { %v3305_v53 = vadd.f32 %v3302_v30, %v3295_v31 }
0x2585   :  { %v3310_v55 = vpack.c.bf16 %v3305_v53, %v3304_v51 }
0x2587   :  { %3319 = vrot.lane.b32.xlu1 %v3310_v55, %s4696_s16 }
0x25f9   :  { %v3320_v56 = vpop.permute.xlu1 %3319 }
0x25fa   :  { %4345 = vmatmul.mubr.msk.bf16.vlgmr.msra.gmra.mrb[92].mxu0 %vm41_vm0, %v3320_v56 }
0x25fb   :  { %4364 = vmatprep.mubr.msk.bf16.mxu0 %vm4695_vm1, %v4694_v15  ;;  %4361 = vmatpush3.bf16.msra.mxu0 %v4474_v2 }
0x25fc   :  { %4362 = vmatprep.subr.bf16.mxu0 %v4694_v15 }
0x25ff   :  { %4363 = vmatpush3.bf16.msra.mxu0 %v4475_v47 }
0x2600   :  { %4368 = vmatprep.subr.bf16.mxu0 %v4694_v15 }
0x26cd   :  { %v3370_v7 = vpop.f32.mrb[92].mxu0 }
0x26ce   :  { %v3371_v60 = vadd.f32 %v3862_v59, %v3370_v7  ;;  %v4346_v25 = vpop.f32.mrb[93].mxu0 }
0x26cf   :  { %v3373_v62 = vpop.f32.mrb[94].mxu0 }
0x26d0   :  { %v3374_v26 = vadd.f32 %v3862_v59, %v3373_v62  ;;  %v4347_v63 = vpop.f32.mrb[95].mxu0  ;;  %v3377_v27 = vmax.f32 %v3371_v60, 0.0 }
0x26d2   :  { %v3378_v29 = vmax.f32 %v3374_v26, 0.0 }
0x26d4   :  { %v3388_v1 = vpack.c.bf16 %v3378_v29, %v3377_v27 }
0x26d6   :  { %4357 = vmatmul.mubr.msk.bf16.vlgmr.msra.gmra.mrb[96].mxu1 %vm1572_vm6, %v3388_v1 }
0x26d7   :  { %4380 = vmatprep.mubr.msk.bf16.mxu1 %vm4695_vm1, %v4694_v15  ;;  %4377 = vmatpush3.bf16.msra.mxu1 %v4478_v54 }
0x26d8   :  { %4378 = vmatprep.subr.bf16.mxu1 %v4694_v15 }
0x26db   :  { %4379 = vmatpush3.bf16.msra.mxu1 %v4479_v24 }
0x27a9   :  { %v3457_v61 = vpop.f32.mrb[96].mxu1 }
0x27aa   :  { %v3458_v4 = vadd.f32 %v3875_v58, %v3457_v61  ;;  %v4358_v5 = vpop.f32.mrb[97].mxu1 }
0x27ab   :  { %v3460_v9 = vpop.f32.mrb[98].mxu1 }
0x27ac   :  { %v3461_v42 = vadd.f32 %v3875_v58, %v3460_v9  ;;  %v4359_v20 = vpop.f32.mrb[99].mxu1  ;;  %v3464_v28 = vmax.f32 %v3458_v4, 0.0 }
0x27ae   :  { %v3465_v43 = vmax.f32 %v3461_v42, 0.0 }
0x27b0   :  { %v3479_v14 = vpack.c.bf16 %v3465_v43, %v3464_v28 }
0x27b2   :  { %4365 = vmatmul.mubr.msk.bf16.vlgmr.msra.gmra.mrb[96].mxu0 %vm41_vm0, %v3479_v14 }
0x27b3   :  { %4369 = vmatpush3.bf16.msra.mxu0 %v4476_v52  ;;  %4372 = vmatprep.mubr.msk.bf16.mxu0 %vm4695_vm1, %v4694_v15 }
0x27b4   :  { %4370 = vmatprep.subr.bf16.mxu0 %v4694_v15 }
0x27b7   :  { %4371 = vmatpush3.bf16.msra.mxu0 %v4477_v21 }
0x27ba   :  { %4373 = vmatmul.mubr.msk.bf16.vlgmr.msra.gmra.mrb[100].mxu0 %vm41_vm0, %v3539_v45 }
0x2885   :  { %v3529_v18 = vpop.f32.mrb[96].mxu0 }
0x2886   :  { %v4366_v19 = vpop.f32.mrb[97].mxu0 }
0x2887   :  { %v3532_v23 = vpop.f32.mrb[98].mxu0 }
0x2888   :  { %v4367_v0 = vpop.f32.mrb[99].mxu0 }
0x288d   :  { %v3589_v41 = vpop.f32.mrb[100].mxu0 }
0x288e   :  { %v3596_v8 = vadd.f32 %v3589_v41, %v3529_v18  ;;  %v4374_v32 = vpop.f32.mrb[101].mxu0 }
0x288f   :  { %v3592_v16 = vpop.f32.mrb[102].mxu0 }
0x2890   :  { %v3888_v33 = vmul.f32 -1.442695, %v3596_v8  ;;  %v3597_v22 = vadd.f32 %v3592_v16, %v3532_v23  ;;  %v4375_v34 = vpop.f32.mrb[103].mxu0 }
0x2892   :  { %4620 = vpow2.f32 %v3888_v33  ;;  %v3889_v10 = vmul.f32 -1.442695, %v3597_v22 }
0x2894   :  { %4622 = vpow2.f32 %v3889_v10 }
0x289c   :  { %v4621_v35 = vpop.eup %4620 }
0x289d   :  { %v3604_v36 = vadd.f32 1.0, %v4621_v35 }
0x289e   :  { %v4623_v37 = vpop.eup %4622 }
0x289f   :  { %4624 = vrcp.f32 %v3604_v36  ;;  %v3605_v15 = vadd.f32 1.0, %v4623_v37 }
0x28a1   :  { %4626 = vrcp.f32 %v3605_v15 }
0x28a9   :  { %v4625_v38 = vpop.eup %4624 }
0x28aa   :  { %v3632_v40 = vmul.f32 %v4625_v38, %v5412_v39 }
0x28ab   :  { %v4627_v3 = vpop.eup %4626 }
0x28ac   :  { %v3633_v44 = vmul.f32 %v4627_v3, %v5416_v13 }
0x28ae   :  { %v3634_v46 = vpack.c.bf16 %v3633_v44, %v3632_v40 }
0x28b0   :  { %4381 = vmatmul.mubr.msk.bf16.vlgmr.msra.gmra.mrb[100].mxu1 %vm41_vm0, %v3634_v46 }
0x2983   :  { %v3684_v48 = vpop.f32.mrb[100].mxu1 }
0x2984   :  { %3693 = vrot.lane.b32.xlu1 %v3684_v48, %s4697_s19  ;;  %v4382_v49 = vpop.f32.mrb[101].mxu1 }
0x2985   :  { %v3687_v50 = vpop.f32.mrb[102].mxu1 }
0x2986   :  { %3695 = vrot.lane.b32.xlu0 %v3687_v50, %s4697_s19  ;;  %v4383_v30 = vpop.f32.mrb[103].mxu1  ;;  %s3734_s19 = sshll.u32 %s4711_s4, 4  ;;  %s3735_s19 = int_to_ptr.vmem [resolvable:$true] %s3734_s19 }
0x2987   :  { %p4670_p9 = scmp.lt.s32.totalorder %s3735_s19, %s3735_s19 }
0x2988   :  { %3615 = vrot.lane.b32.xlu1 %v3890_v17, %s4710_s13  ;;  %s4665_s13 = scalar_lea.vmem %s3735_s19, 256 }
0x2989   :  { %p4666_p8 = scmp.ne.s32.totalorder %s3735_s19, %s4665_s13  ;;  %p4671_p10 = scmp.lt.s32.totalorder %s4665_s13, %s4665_s13 }
0x298b   :  { %p4672_p11 = por %p4671_p10, %p4670_p9 }
0x298d   :  { %p4673_p12 = pnand %p4672_p11, %p4666_p8 }
0x29f6   :  { %v3694_v39 = vpop.permute.xlu1 %3693 }
0x29f7   :  { %v3699_v31 = vadd.f32 %v3694_v39, %v3529_v18 }
0x29f8   :  { %v3696_v13 = vpop.permute.xlu0 %3695 }
0x29f9   :  { %4628 = vtanh.f32 %v3699_v31  ;;  %v3700_v51 = vadd.f32 %v3696_v13, %v3532_v23 }
0x29fa   :  { %v3616_v56 = vpop.permute.xlu1 %3615 }
0x29fb   :  { %4630 = vtanh.f32 %v3700_v51  ;;  %v3618_v11 = vadd.f32 %v3616_v56, %v3596_v8  ;;  %v3619_v57 = vadd.f32 %v3616_v56, %v3597_v22 }
0x29fd   :  { %v3891_v59 = vmul.f32 -1.442695, %v3618_v11  ;;  %v3892_v7 = vmul.f32 -1.442695, %v3619_v57 }
0x29ff   :  { %4632 = vpow2.f32 %v3891_v59 }
0x2a00   :  { %4634 = vpow2.f32 %v3892_v7 }
0x2a03   :  { %v4629_v53 = vpop.eup %4628 }
0x2a04   :  { %3709 = vrot.lane.b32.xlu0 %v4629_v53, %s4696_s16 }
0x2a05   :  { %v4631_v55 = vpop.eup %4630 }
0x2a06   :  { %3711 = vrot.lane.b32.xlu1 %v4631_v55, %s4696_s16 }
0x2a09   :  { %v4633_v60 = vpop.eup %4632 }
0x2a0a   :  { %v4635_v25 = vpop.eup %4634  ;;  %v3626_v62 = vadd.f32 1.0, %v4633_v60 }
0x2a0b   :  { %v3627_v26 = vadd.f32 1.0, %v4635_v25 }
0x2a0c   :  { %4636 = vrcp.f32 %v3626_v62 }
0x2a0d   :  { %4638 = vrcp.f32 %v3627_v26 }
0x2a16   :  { %v4637_v63 = vpop.eup %4636 }
0x2a17   :  { %v4639_v27 = vpop.eup %4638  ;;  %v3703_v29 = vsub.f32 1.0, %v4637_v63 }
0x2a18   :  { %v3704_v1 = vsub.f32 1.0, %v4639_v27 }
0x2a19   :  { %v3705_v47 = vmul.f32 %v3703_v29, %v5403_v6 }
0x2a1a   :  { %v3706_v5 = vmul.f32 %v3704_v1, %v5406_v12 }
0x2a76   :  { %v3710_v2 = vpop.permute.xlu0 %3709 }
0x2a77   :  { %v3715_v58 = vmul.f32 %v4637_v63, %v3710_v2 }
0x2a78   :  { %v3712_v61 = vpop.permute.xlu1 %3711 }
0x2a79   :  { %v3717_v4 = vadd.f32 %v3715_v58, %v3705_v47  ;;  %v3716_v9 = vmul.f32 %v4639_v27, %v3712_v61 }
0x2a7b   :  { %v3718_v42 = vadd.f32 %v3716_v9, %v3706_v5  ;;  %3721 = vrot.lane.b32.xlu0 %v3717_v4, %s4696_s16 }
0x2a7d   :  { %3723 = vrot.lane.b32.xlu1 %v3718_v42, %s4696_s16 }
0x2aed   :  { %v3722_v20 = vpop.permute.xlu0 %3721 }
0x2aee   :  { %3727 = vst.msk [vmem:[#allocation5] sm:$0xff] %vm41_vm0, %v3722_v20 }
0x2aef   :  { %v3724_v28 = vpop.permute.xlu1 %3723 }
0x2af0   :  { %3728 = vst.msk [vmem:[#allocation5 + $0x8] sm:$0xff] %vm41_vm0, %v3724_v28 }
0x2af1   :  { %4676 = shalt.err (!%p4673_p12)
}
0x2af2   :  { %s4677_s16 = scalar_lea.hbm %s5511_s5, 256 }
0x2af3   :  { %p4678_p13 = scmp.ne.s32.totalorder %s5511_s5, %s4677_s16  ;;  %p4681_p0 = scmp.lt.u32.totalorder %s4677_s16, %s5511_s5 }
0x2af5   :  { %p4683_p1 = pnand %p4681_p0, %p4678_p13 }
0x2af7   :  { %4686 = shalt.err (!%p4683_p1)
}
0x2af8   :  { %s4712_s22 = smov 128  }
0x2af9   :  { %3740 = dma.vmem_to_hbm [thread:$0]  %s3735_s19, 256, %s5511_s5, [#allocation4], %s4712_s22, %s4712_s22, %s4707_s29  }
0x2afa   :  { %4689 = dma.done.wait [#allocation4], 256  }
0x2afb   :  { %4690 = vsyncadd [#allocation4], 4294967040 }
0x2afc   :  { %3744 = vsyncpa [#allocation3], 1 }
0x2afd   :  { %3745 = vsyncpa [#allocation4], 1 }

</bundles_post_ra>
